<compile_context>
chip_gen: v7x
topology: tpu7x:2x2x1
jax: 0.10.0
libtpu: 0.0.40
codegen_flags: <defaults>
</compile_context>

<pallas_src>
import numpy as np
import jax
import jax.numpy as jnp
from jax import lax
from jax.experimental import pallas as pl
from jax.experimental.pallas import tpu as pltpu


TB = 8  # batch tile per grid step (multiple of 8 keeps all blocks (8,128)-aligned)


# ---------------------------------------------------------------------------
# Fused kernel: conv1+ReLU+pool -> conv2+ReLU+pool -> fc1 -> fc2 -> fc3
# ---------------------------------------------------------------------------
def _lenet_kernel(x_ref, cb1_ref, cb1b_ref, cb2_ref, cb2b_ref,
                  w1_ref, b1_ref, w2_ref, b2_ref, w3_ref, b3_ref,
                  out_ref, s1_ref, s2_ref):
    tb = x_ref.shape[0]

    # ---- conv1 (valid 5x5, cin=1) as 5 banded GEMMs over kernel rows --------
    # rows = (b, oh);  columns of cb1 are ordered (dj, j, co) with ow = 2j+dj.
    y1 = None
    for ki in range(5):
        slab = x_ref[:, pl.ds(ki, 24), :].reshape(tb * 24, 28)
        t = jnp.dot(slab, cb1_ref[ki], preferred_element_type=jnp.float32)
        y1 = t if y1 is None else y1 + t
    y1 = jnp.maximum(y1 + cb1b_ref[...], 0.0)                     # (tb*24, 256)

    # ---- 2x2 max-pool #1: width via static lane split, height via stride-2
    #      sublane reads from VMEM scratch. ----------------------------------
    y1 = jnp.maximum(y1[:, :128], y1[:, 128:])                    # (tb*24, 128)
    s1_ref[...] = y1.reshape(tb, 24, 128)
    p1 = jnp.maximum(s1_ref[:, pl.ds(0, 12, 2), :],
                     s1_ref[:, pl.ds(1, 12, 2), :])               # (tb, 12, 128)

    # ---- conv2 (valid 5x5, cin=6) the same way ------------------------------
    y2 = None
    for ki in range(5):
        slab = p1[:, ki:ki + 8, :].reshape(tb * 8, 128)
        t = jnp.dot(slab, cb2_ref[ki], preferred_element_type=jnp.float32)
        y2 = t if y2 is None else y2 + t
    y2 = jnp.maximum(y2 + cb2b_ref[...], 0.0)                     # (tb*8, 128)

    # ---- 2x2 max-pool #2 (width half) ---------------------------------------
    y2 = jnp.maximum(y2[:, :64], y2[:, 64:])                      # (tb*8, 64)
    s2_ref[...] = y2.reshape(tb, 8, 64)

    # ---- fc1: the height-pool of conv2 and the NCHW flatten are folded into
    #      4 pre-permuted weight blocks -> sum of 4 small GEMMs ---------------
    h = None
    for i in range(4):
        row = jnp.maximum(s2_ref[:, 2 * i, :], s2_ref[:, 2 * i + 1, :])  # (tb, 64)
        t = jnp.dot(row, w1_ref[i], preferred_element_type=jnp.float32)
        h = t if h is None else h + t
    h = jnp.maximum(h + b1_ref[...], 0.0)                         # (tb, 128)

    # ---- fc2 + fc3 (padded to 128 lanes; padding columns stay exactly 0) ----
    h = jnp.maximum(
        jnp.dot(h, w2_ref[...], preferred_element_type=jnp.float32) + b2_ref[...],
        0.0)
    out_ref[...] = (jnp.dot(h, w3_ref[...], preferred_element_type=jnp.float32)
                    + b3_ref[...])


# ---------------------------------------------------------------------------
# One-time parameter packing (hoisted out of the forward pass)
# ---------------------------------------------------------------------------
def _banded_conv(w_oihw, in_wpad, cin_pad, out_w, out_jpad, cout_pad):
    """Lower a valid 5x5 conv to per-kernel-row banded GEMM weights.

    Result B has shape (5, in_wpad*cin_pad, 2*out_jpad*cout_pad).  For an input
    row-slab X[(b,oh), m*cin_pad+ci], sum_ki X_ki @ B[ki] gives conv outputs at
    columns (dj, j, co) with ow = 2*j + dj  (pool-parity-major for lane-split
    max pooling).  All padding rows/columns are zero.
    """
    w = np.asarray(w_oihw, np.float32)
    cout, cin, kh, kw = w.shape
    bmat = np.zeros((kh, in_wpad * cin_pad, 2 * out_jpad * cout_pad), np.float32)
    for ki in range(kh):
        for dj in range(2):
            for j in range(out_w // 2):
                ow = 2 * j + dj
                col0 = dj * out_jpad * cout_pad + j * cout_pad
                for kj in range(kw):
                    row0 = (ow + kj) * cin_pad
                    for co in range(cout):
                        for ci in range(cin):
                            bmat[ki, row0 + ci, col0 + co] = w[co, ci, ki, kj]
    return bmat


def _bias_row(b, out_w, out_jpad, cout_pad):
    b = np.asarray(b, np.float32)
    row = np.zeros((1, 2 * out_jpad * cout_pad), np.float32)
    for dj in range(2):
        for j in range(out_w // 2):
            c0 = dj * out_jpad * cout_pad + j * cout_pad
            row[0, c0:c0 + b.shape[0]] = b
    return row


def pack_params(params):
    """Repack PyTorch-layout parameters into MXU/lane-friendly operands."""
    cb1 = _banded_conv(params["conv1_w"], in_wpad=28, cin_pad=1,
                       out_w=24, out_jpad=16, cout_pad=8)          # (5, 28, 256)
    cb1b = _bias_row(params["conv1_b"], out_w=24, out_jpad=16, cout_pad=8)
    cb2 = _banded_conv(params["conv2_w"], in_wpad=16, cin_pad=8,
                       out_w=8, out_jpad=4, cout_pad=16)           # (5, 128, 128)
    cb2b = _bias_row(params["conv2_b"], out_w=8, out_jpad=4, cout_pad=16)

    # fc1: fold PyTorch's flatten (idx = c*16 + i*4 + j of the NCHW feature
    # map) and the in-kernel activation layout (row i, lane = j*16 + c).
    fc1_w = np.asarray(params["fc1_w"], np.float32)                # (120, 256)
    w1 = np.zeros((4, 64, 128), np.float32)
    for i in range(4):
        for j in range(4):
            for c in range(16):
                w1[i, j * 16 + c, :120] = fc1_w[:, c * 16 + i * 4 + j]
    b1 = np.zeros((1, 128), np.float32); b1[0, :120] = np.asarray(params["fc1_b"])
    w2 = np.zeros((128, 128), np.float32)
    w2[:120, :84] = np.asarray(params["fc2_w"], np.float32).T
    b2 = np.zeros((1, 128), np.float32); b2[0, :84] = np.asarray(params["fc2_b"])
    w3 = np.zeros((128, 128), np.float32)
    w3[:84, :10] = np.asarray(params["fc3_w"], np.float32).T
    b3 = np.zeros((1, 128), np.float32); b3[0, :10] = np.asarray(params["fc3_b"])

    packed = (cb1, cb1b, cb2, cb2b, w1, b1, w2, b2, w3, b3)
    return tuple(jnp.asarray(a) for a in packed)


# ---------------------------------------------------------------------------
# Forward pass wrapper
# ---------------------------------------------------------------------------
@jax.jit
def net_forward(packed, x_nchw):
    """Forward of `Net` for NCHW input [B, 1, 28, 28] -> logits [B, 10]."""
    cb1, cb1b, cb2, cb2b, w1, b1, w2, b2, w3, b3 = packed
    B = x_nchw.shape[0]
    x = x_nchw.reshape(B, 28, 28).astype(jnp.float32)
    Bp = ((B + TB - 1) // TB) * TB
    if Bp != B:
        x = jnp.pad(x, ((0, Bp - B), (0, 0), (0, 0)))

    flops = 2 * Bp * (5 * 24 * 28 * 256 + 5 * 8 * 128 * 128
                      + 4 * 64 * 128 + 2 * 128 * 128)
    bytes_accessed = 4 * (Bp * 28 * 28 + Bp * 128
                          + sum(int(np.prod(a.shape)) for a in packed))

    out = pl.pallas_call(
        _lenet_kernel,
        out_shape=jax.ShapeDtypeStruct((Bp, 128), jnp.float32),
        grid_spec=pltpu.PrefetchScalarGridSpec(
            num_scalar_prefetch=0,
            grid=(Bp // TB,),
            in_specs=[
                pl.BlockSpec((TB, 28, 28), lambda i: (i, 0, 0)),    # x tile
                pl.BlockSpec((5, 28, 256), lambda i: (0, 0, 0)),    # conv1 band
                pl.BlockSpec((1, 256), lambda i: (0, 0)),           # conv1 bias
                pl.BlockSpec((5, 128, 128), lambda i: (0, 0, 0)),   # conv2 band
                pl.BlockSpec((1, 128), lambda i: (0, 0)),           # conv2 bias
                pl.BlockSpec((4, 64, 128), lambda i: (0, 0, 0)),    # fc1 blocks
                pl.BlockSpec((1, 128), lambda i: (0, 0)),           # fc1 bias
                pl.BlockSpec((128, 128), lambda i: (0, 0)),         # fc2 w
                pl.BlockSpec((1, 128), lambda i: (0, 0)),           # fc2 bias
                pl.BlockSpec((128, 128), lambda i: (0, 0)),         # fc3 w
                pl.BlockSpec((1, 128), lambda i: (0, 0)),           # fc3 bias
            ],
            out_specs=pl.BlockSpec((TB, 128), lambda i: (i, 0)),
            scratch_shapes=[
                pltpu.VMEM((TB, 24, 128), jnp.float32),   # pool1 height scratch
                pltpu.VMEM((TB, 8, 64), jnp.float32),     # pool2 height scratch
            ],
        ),
        compiler_params=pltpu.CompilerParams(
            dimension_semantics=("parallel",),
            vmem_limit_bytes=32 * 1024 * 1024,
        ),
        cost_estimate=pl.CostEstimate(
            flops=flops, transcendentals=0, bytes_accessed=bytes_accessed),
    )(x, cb1, cb1b, cb2, cb2b, w1, b1, w2, b2, w3, b3)

    return out[:B, :10]


# ---------------------------------------------------------------------------
# Parameter init (PyTorch-default-style) and pure-JAX reference for validation
# ---------------------------------------------------------------------------
def init_params(key):
    ks = jax.random.split(key, 10)

    def u(k, shape, fan_in):
        bound = 1.0 / float(np.sqrt(fan_in))
        return jax.random.uniform(k, shape, jnp.float32, -bound, bound)

    return {
        "conv1_w": u(ks[0], (6, 1, 5, 5), 1 * 5 * 5),
        "conv1_b": u(ks[1], (6,), 1 * 5 * 5),
        "conv2_w": u(ks[2], (16, 6, 5, 5), 6 * 5 * 5),
        "conv2_b": u(ks[3], (16,), 6 * 5 * 5),
        "fc1_w":   u(ks[4], (120, 256), 256),
        "fc1_b":   u(ks[5], (120,), 256),
        "fc2_w":   u(ks[6], (84, 120), 120),
        "fc2_b":   u(ks[7], (84,), 120),
        "fc3_w":   u(ks[8], (10, 84), 84),
        "fc3_b":   u(ks[9], (10,), 84),
    }


def reference_forward(params, x):
    dn = ("NCHW", "OIHW", "NCHW")
    hp = lax.Precision.HIGHEST
    y = lax.conv_general_dilated(x, params["conv1_w"], (1, 1), "VALID",
                                 dimension_numbers=dn, precision=hp)
    y = jnp.maximum(y + params["conv1_b"].reshape(1, -1, 1, 1), 0.0)
    y = lax.reduce_window(y, -jnp.inf, lax.max, (1, 1, 2, 2), (1, 1, 2, 2), "VALID")
    y = lax.conv_general_dilated(y, params["conv2_w"], (1, 1), "VALID",
                                 dimension_numbers=dn, precision=hp)
    y = jnp.maximum(y + params["conv2_b"].reshape(1, -1, 1, 1), 0.0)
    y = lax.reduce_window(y, -jnp.inf, lax.max, (1, 1, 2, 2), (1, 1, 2, 2), "VALID")
    y = y.reshape(y.shape[0], -1)
    y = jnp.maximum(jnp.dot(y, params["fc1_w"].T, precision=hp) + params["fc1_b"], 0.0)
    y = jnp.maximum(jnp.dot(y, params["fc2_w"].T, precision=hp) + params["fc2_b"], 0.0)
    return jnp.dot(y, params["fc3_w"].T, precision=hp) + params["fc3_b"]


if __name__ == "__main__":
    key = jax.random.PRNGKey(0)
    k_params, k_input = jax.random.split(key)

    params = init_params(k_params)
    packed = pack_params(params)        # one-time repack (outside the hot path)

    # MNIST-shaped input (spatial size fixed by fc1's 16*4*4 input dimension).
    x = jax.random.normal(k_input, (2, 1, 28, 28), dtype=jnp.float32)

    out = jax.block_until_ready(net_forward(packed, x))
    assert out.shape == (2, 10) and out.dtype == jnp.float32

    ref = jax.block_until_ready(reference_forward(params, x))
    if not bool(jnp.allclose(out, ref, atol=5e-3, rtol=5e-3)):
        raise AssertionError(
            "mismatch vs reference: max|d|="
            f"{float(jnp.max(jnp.abs(out - ref))):.3e}")

    print("KERNEL_OK")
</pallas_src>

<mosaic_0001>
module attributes {stable_mosaic.version = 11 : i64} {
  func.func @_lenet_kernel(%arg0: i32, %arg1: memref<8x28x28xf32, #tpu.memory_space<vmem>>, %arg2: memref<5x28x256xf32, #tpu.memory_space<vmem>>, %arg3: memref<1x256xf32, #tpu.memory_space<vmem>>, %arg4: memref<5x128x128xf32, #tpu.memory_space<vmem>>, %arg5: memref<1x128xf32, #tpu.memory_space<vmem>>, %arg6: memref<4x64x128xf32, #tpu.memory_space<vmem>>, %arg7: memref<1x128xf32, #tpu.memory_space<vmem>>, %arg8: memref<128x128xf32, #tpu.memory_space<vmem>>, %arg9: memref<1x128xf32, #tpu.memory_space<vmem>>, %arg10: memref<128x128xf32, #tpu.memory_space<vmem>>, %arg11: memref<1x128xf32, #tpu.memory_space<vmem>>, %arg12: memref<8x128xf32, #tpu.memory_space<vmem>>, %arg13: memref<8x24x128xf32, #tpu.memory_space<vmem>>, %arg14: memref<8x8x64xf32, #tpu.memory_space<vmem>>) attributes {dimension_semantics = [#tpu.dimension_semantics<parallel>], iteration_bounds = array<i64: 1>, scalar_prefetch = 0 : i64, scratch_operands = 2 : i64, tpu.core_type = #tpu.core_type<tc>, window_params = [{transform_indices = @transform_0, window_bounds = array<i64: 8, 28, 28>}, {pipeline_mode = #tpu.pipeline_mode<synchronous>, transform_indices = @transform_1, window_bounds = array<i64: 5, 28, 256>}, {pipeline_mode = #tpu.pipeline_mode<synchronous>, transform_indices = @transform_2, window_bounds = array<i64: 1, 256>}, {pipeline_mode = #tpu.pipeline_mode<synchronous>, transform_indices = @transform_3, window_bounds = array<i64: 5, 128, 128>}, {pipeline_mode = #tpu.pipeline_mode<synchronous>, transform_indices = @transform_4, window_bounds = array<i64: 1, 128>}, {pipeline_mode = #tpu.pipeline_mode<synchronous>, transform_indices = @transform_5, window_bounds = array<i64: 4, 64, 128>}, {pipeline_mode = #tpu.pipeline_mode<synchronous>, transform_indices = @transform_6, window_bounds = array<i64: 1, 128>}, {pipeline_mode = #tpu.pipeline_mode<synchronous>, transform_indices = @transform_7, window_bounds = array<i64: 128, 128>}, {pipeline_mode = #tpu.pipeline_mode<synchronous>, transform_indices = @transform_8, window_bounds = array<i64: 1, 128>}, {pipeline_mode = #tpu.pipeline_mode<synchronous>, transform_indices = @transform_9, window_bounds = array<i64: 128, 128>}, {pipeline_mode = #tpu.pipeline_mode<synchronous>, transform_indices = @transform_10, window_bounds = array<i64: 1, 128>}, {transform_indices = @transform_11, window_bounds = array<i64: 8, 128>}]} {
    %c0 = arith.constant 0 : index
    %c0_0 = arith.constant 0 : index
    %c0_1 = arith.constant 0 : index
    %0 = vector.load %arg1[%c0, %c0_0, %c0_1] : memref<8x28x28xf32, #tpu.memory_space<vmem>>, vector<8x24x28xf32>
    %1 = vector.shape_cast %0 : vector<8x24x28xf32> to vector<192x28xf32>
    %c0_2 = arith.constant 0 : index
    %c0_3 = arith.constant 0 : index
    %c0_4 = arith.constant 0 : index
    %2 = vector.load %arg2[%c0_2, %c0_3, %c0_4] : memref<5x28x256xf32, #tpu.memory_space<vmem>>, vector<1x28x256xf32>
    %3 = vector.shape_cast %2 : vector<1x28x256xf32> to vector<28x256xf32>
    %cst = arith.constant dense<0.000000e+00> : vector<192x256xf32>
    %4 = tpu.matmul %1, %3, %cst {dimension_numbers = #tpu.dot_dimension_numbers<[1], [0], [0], [1], [0, 0, 1, 1], [], []>} : vector<192x28xf32>, vector<28x256xf32>, vector<192x256xf32> -> vector<192x256xf32>
    %c0_5 = arith.constant 0 : index
    %c1 = arith.constant 1 : index
    %c0_6 = arith.constant 0 : index
    %5 = vector.load %arg1[%c0_5, %c1, %c0_6] : memref<8x28x28xf32, #tpu.memory_space<vmem>>, vector<8x24x28xf32>
    %6 = vector.shape_cast %5 : vector<8x24x28xf32> to vector<192x28xf32>
    %c1_7 = arith.constant 1 : index
    %c0_8 = arith.constant 0 : index
    %c0_9 = arith.constant 0 : index
    %7 = vector.load %arg2[%c1_7, %c0_8, %c0_9] : memref<5x28x256xf32, #tpu.memory_space<vmem>>, vector<1x28x256xf32>
    %8 = vector.shape_cast %7 : vector<1x28x256xf32> to vector<28x256xf32>
    %cst_10 = arith.constant dense<0.000000e+00> : vector<192x256xf32>
    %9 = tpu.matmul %6, %8, %cst_10 {dimension_numbers = #tpu.dot_dimension_numbers<[1], [0], [0], [1], [0, 0, 1, 1], [], []>} : vector<192x28xf32>, vector<28x256xf32>, vector<192x256xf32> -> vector<192x256xf32>
    %10 = arith.addf %4, %9 : vector<192x256xf32>
    %c0_11 = arith.constant 0 : index
    %c2 = arith.constant 2 : index
    %c0_12 = arith.constant 0 : index
    %11 = vector.load %arg1[%c0_11, %c2, %c0_12] : memref<8x28x28xf32, #tpu.memory_space<vmem>>, vector<8x24x28xf32>
    %12 = vector.shape_cast %11 : vector<8x24x28xf32> to vector<192x28xf32>
    %c2_13 = arith.constant 2 : index
    %c0_14 = arith.constant 0 : index
    %c0_15 = arith.constant 0 : index
    %13 = vector.load %arg2[%c2_13, %c0_14, %c0_15] : memref<5x28x256xf32, #tpu.memory_space<vmem>>, vector<1x28x256xf32>
    %14 = vector.shape_cast %13 : vector<1x28x256xf32> to vector<28x256xf32>
    %cst_16 = arith.constant dense<0.000000e+00> : vector<192x256xf32>
    %15 = tpu.matmul %12, %14, %cst_16 {dimension_numbers = #tpu.dot_dimension_numbers<[1], [0], [0], [1], [0, 0, 1, 1], [], []>} : vector<192x28xf32>, vector<28x256xf32>, vector<192x256xf32> -> vector<192x256xf32>
    %16 = arith.addf %10, %15 : vector<192x256xf32>
    %c0_17 = arith.constant 0 : index
    %c3 = arith.constant 3 : index
    %c0_18 = arith.constant 0 : index
    %17 = vector.load %arg1[%c0_17, %c3, %c0_18] : memref<8x28x28xf32, #tpu.memory_space<vmem>>, vector<8x24x28xf32>
    %18 = vector.shape_cast %17 : vector<8x24x28xf32> to vector<192x28xf32>
    %c3_19 = arith.constant 3 : index
    %c0_20 = arith.constant 0 : index
    %c0_21 = arith.constant 0 : index
    %19 = vector.load %arg2[%c3_19, %c0_20, %c0_21] : memref<5x28x256xf32, #tpu.memory_space<vmem>>, vector<1x28x256xf32>
    %20 = vector.shape_cast %19 : vector<1x28x256xf32> to vector<28x256xf32>
    %cst_22 = arith.constant dense<0.000000e+00> : vector<192x256xf32>
    %21 = tpu.matmul %18, %20, %cst_22 {dimension_numbers = #tpu.dot_dimension_numbers<[1], [0], [0], [1], [0, 0, 1, 1], [], []>} : vector<192x28xf32>, vector<28x256xf32>, vector<192x256xf32> -> vector<192x256xf32>
    %22 = arith.addf %16, %21 : vector<192x256xf32>
    %c0_23 = arith.constant 0 : index
    %c4 = arith.constant 4 : index
    %c0_24 = arith.constant 0 : index
    %23 = vector.load %arg1[%c0_23, %c4, %c0_24] : memref<8x28x28xf32, #tpu.memory_space<vmem>>, vector<8x24x28xf32>
    %24 = vector.shape_cast %23 : vector<8x24x28xf32> to vector<192x28xf32>
    %c4_25 = arith.constant 4 : index
    %c0_26 = arith.constant 0 : index
    %c0_27 = arith.constant 0 : index
    %25 = vector.load %arg2[%c4_25, %c0_26, %c0_27] : memref<5x28x256xf32, #tpu.memory_space<vmem>>, vector<1x28x256xf32>
    %26 = vector.shape_cast %25 : vector<1x28x256xf32> to vector<28x256xf32>
    %cst_28 = arith.constant dense<0.000000e+00> : vector<192x256xf32>
    %27 = tpu.matmul %24, %26, %cst_28 {dimension_numbers = #tpu.dot_dimension_numbers<[1], [0], [0], [1], [0, 0, 1, 1], [], []>} : vector<192x28xf32>, vector<28x256xf32>, vector<192x256xf32> -> vector<192x256xf32>
    %28 = arith.addf %22, %27 : vector<192x256xf32>
    %c0_29 = arith.constant 0 : index
    %c0_30 = arith.constant 0 : index
    %29 = vector.load %arg3[%c0_29, %c0_30] : memref<1x256xf32, #tpu.memory_space<vmem>>, vector<1x256xf32>
    %30 = vector.broadcast %29 : vector<1x256xf32> to vector<192x256xf32>
    %31 = arith.addf %28, %30 : vector<192x256xf32>
    %cst_31 = arith.constant 0.000000e+00 : f32
    %32 = vector.broadcast %cst_31 : f32 to vector<192x256xf32>
    %33 = arith.maximumf %31, %32 : vector<192x256xf32>
    %34 = vector.extract_strided_slice %33 {offsets = [0, 0], sizes = [192, 128], strides = [1, 1]} : vector<192x256xf32> to vector<192x128xf32>
    %35 = vector.extract_strided_slice %33 {offsets = [0, 128], sizes = [192, 128], strides = [1, 1]} : vector<192x256xf32> to vector<192x128xf32>
    %36 = arith.maximumf %34, %35 : vector<192x128xf32>
    %37 = vector.shape_cast %36 : vector<192x128xf32> to vector<8x24x128xf32>
    %c0_32 = arith.constant 0 : index
    %c0_33 = arith.constant 0 : index
    %c0_34 = arith.constant 0 : index
    %38 = vector.load %arg13[%c0_32, %c0_33, %c0_34] : memref<8x24x128xf32, #tpu.memory_space<vmem>>, vector<8x24x128xf32>
    tpu.vector_store %arg13[%c0_32, %c0_33, %c0_34], %37 {strides = array<i32>} : memref<8x24x128xf32, #tpu.memory_space<vmem>>, vector<8x24x128xf32>,
    %c0_35 = arith.constant 0 : index
    %c0_36 = arith.constant 0 : index
    %c0_37 = arith.constant 0 : index
    %39 = tpu.strided_load %arg13[%c0_35, %c0_36, %c0_37] {strides = array<i32: 1, 2, 1>} : memref<8x24x128xf32, #tpu.memory_space<vmem>>, vector<8x12x128xf32>
    %c0_38 = arith.constant 0 : index
    %c1_39 = arith.constant 1 : index
    %c0_40 = arith.constant 0 : index
    %40 = tpu.strided_load %arg13[%c0_38, %c1_39, %c0_40] {strides = array<i32: 1, 2, 1>} : memref<8x24x128xf32, #tpu.memory_space<vmem>>, vector<8x12x128xf32>
    %41 = arith.maximumf %39, %40 : vector<8x12x128xf32>
    %42 = vector.extract_strided_slice %41 {offsets = [0, 0, 0], sizes = [8, 8, 128], strides = [1, 1, 1]} : vector<8x12x128xf32> to vector<8x8x128xf32>
    %43 = vector.shape_cast %42 : vector<8x8x128xf32> to vector<64x128xf32>
    %c0_41 = arith.constant 0 : index
    %c0_42 = arith.constant 0 : index
    %c0_43 = arith.constant 0 : index
    %44 = vector.load %arg4[%c0_41, %c0_42, %c0_43] : memref<5x128x128xf32, #tpu.memory_space<vmem>>, vector<1x128x128xf32>
    %45 = vector.shape_cast %44 : vector<1x128x128xf32> to vector<128x128xf32>
    %cst_44 = arith.constant dense<0.000000e+00> : vector<64x128xf32>
    %46 = tpu.matmul %43, %45, %cst_44 {dimension_numbers = #tpu.dot_dimension_numbers<[1], [0], [0], [1], [0, 0, 1, 1], [], []>} : vector<64x128xf32>, vector<128x128xf32>, vector<64x128xf32> -> vector<64x128xf32>
    %47 = vector.extract_strided_slice %41 {offsets = [0, 1, 0], sizes = [8, 8, 128], strides = [1, 1, 1]} : vector<8x12x128xf32> to vector<8x8x128xf32>
    %48 = vector.shape_cast %47 : vector<8x8x128xf32> to vector<64x128xf32>
    %c1_45 = arith.constant 1 : index
    %c0_46 = arith.constant 0 : index
    %c0_47 = arith.constant 0 : index
    %49 = vector.load %arg4[%c1_45, %c0_46, %c0_47] : memref<5x128x128xf32, #tpu.memory_space<vmem>>, vector<1x128x128xf32>
    %50 = vector.shape_cast %49 : vector<1x128x128xf32> to vector<128x128xf32>
    %cst_48 = arith.constant dense<0.000000e+00> : vector<64x128xf32>
    %51 = tpu.matmul %48, %50, %cst_48 {dimension_numbers = #tpu.dot_dimension_numbers<[1], [0], [0], [1], [0, 0, 1, 1], [], []>} : vector<64x128xf32>, vector<128x128xf32>, vector<64x128xf32> -> vector<64x128xf32>
    %52 = arith.addf %46, %51 : vector<64x128xf32>
    %53 = vector.extract_strided_slice %41 {offsets = [0, 2, 0], sizes = [8, 8, 128], strides = [1, 1, 1]} : vector<8x12x128xf32> to vector<8x8x128xf32>
    %54 = vector.shape_cast %53 : vector<8x8x128xf32> to vector<64x128xf32>
    %c2_49 = arith.constant 2 : index
    %c0_50 = arith.constant 0 : index
    %c0_51 = arith.constant 0 : index
    %55 = vector.load %arg4[%c2_49, %c0_50, %c0_51] : memref<5x128x128xf32, #tpu.memory_space<vmem>>, vector<1x128x128xf32>
    %56 = vector.shape_cast %55 : vector<1x128x128xf32> to vector<128x128xf32>
    %cst_52 = arith.constant dense<0.000000e+00> : vector<64x128xf32>
    %57 = tpu.matmul %54, %56, %cst_52 {dimension_numbers = #tpu.dot_dimension_numbers<[1], [0], [0], [1], [0, 0, 1, 1], [], []>} : vector<64x128xf32>, vector<128x128xf32>, vector<64x128xf32> -> vector<64x128xf32>
    %58 = arith.addf %52, %57 : vector<64x128xf32>
    %59 = vector.extract_strided_slice %41 {offsets = [0, 3, 0], sizes = [8, 8, 128], strides = [1, 1, 1]} : vector<8x12x128xf32> to vector<8x8x128xf32>
    %60 = vector.shape_cast %59 : vector<8x8x128xf32> to vector<64x128xf32>
    %c3_53 = arith.constant 3 : index
    %c0_54 = arith.constant 0 : index
    %c0_55 = arith.constant 0 : index
    %61 = vector.load %arg4[%c3_53, %c0_54, %c0_55] : memref<5x128x128xf32, #tpu.memory_space<vmem>>, vector<1x128x128xf32>
    %62 = vector.shape_cast %61 : vector<1x128x128xf32> to vector<128x128xf32>
    %cst_56 = arith.constant dense<0.000000e+00> : vector<64x128xf32>
    %63 = tpu.matmul %60, %62, %cst_56 {dimension_numbers = #tpu.dot_dimension_numbers<[1], [0], [0], [1], [0, 0, 1, 1], [], []>} : vector<64x128xf32>, vector<128x128xf32>, vector<64x128xf32> -> vector<64x128xf32>
    %64 = arith.addf %58, %63 : vector<64x128xf32>
    %65 = vector.extract_strided_slice %41 {offsets = [0, 4, 0], sizes = [8, 8, 128], strides = [1, 1, 1]} : vector<8x12x128xf32> to vector<8x8x128xf32>
    %66 = vector.shape_cast %65 : vector<8x8x128xf32> to vector<64x128xf32>
    %c4_57 = arith.constant 4 : index
    %c0_58 = arith.constant 0 : index
    %c0_59 = arith.constant 0 : index
    %67 = vector.load %arg4[%c4_57, %c0_58, %c0_59] : memref<5x128x128xf32, #tpu.memory_space<vmem>>, vector<1x128x128xf32>
    %68 = vector.shape_cast %67 : vector<1x128x128xf32> to vector<128x128xf32>
    %cst_60 = arith.constant dense<0.000000e+00> : vector<64x128xf32>
    %69 = tpu.matmul %66, %68, %cst_60 {dimension_numbers = #tpu.dot_dimension_numbers<[1], [0], [0], [1], [0, 0, 1, 1], [], []>} : vector<64x128xf32>, vector<128x128xf32>, vector<64x128xf32> -> vector<64x128xf32>
    %70 = arith.addf %64, %69 : vector<64x128xf32>
    %c0_61 = arith.constant 0 : index
    %c0_62 = arith.constant 0 : index
    %71 = vector.load %arg5[%c0_61, %c0_62] : memref<1x128xf32, #tpu.memory_space<vmem>>, vector<1x128xf32>
    %72 = vector.broadcast %71 : vector<1x128xf32> to vector<64x128xf32>
    %73 = arith.addf %70, %72 : vector<64x128xf32>
    %cst_63 = arith.constant 0.000000e+00 : f32
    %74 = vector.broadcast %cst_63 : f32 to vector<64x128xf32>
    %75 = arith.maximumf %73, %74 : vector<64x128xf32>
    %76 = vector.extract_strided_slice %75 {offsets = [0, 0], sizes = [64, 64], strides = [1, 1]} : vector<64x128xf32> to vector<64x64xf32>
    %77 = vector.extract_strided_slice %75 {offsets = [0, 64], sizes = [64, 64], strides = [1, 1]} : vector<64x128xf32> to vector<64x64xf32>
    %78 = arith.maximumf %76, %77 : vector<64x64xf32>
    %79 = vector.shape_cast %78 : vector<64x64xf32> to vector<8x8x64xf32>
    %c0_64 = arith.constant 0 : index
    %c0_65 = arith.constant 0 : index
    %c0_66 = arith.constant 0 : index
    %80 = vector.load %arg14[%c0_64, %c0_65, %c0_66] : memref<8x8x64xf32, #tpu.memory_space<vmem>>, vector<8x8x64xf32>
    tpu.vector_store %arg14[%c0_64, %c0_65, %c0_66], %79 {strides = array<i32>} : memref<8x8x64xf32, #tpu.memory_space<vmem>>, vector<8x8x64xf32>,
    %c0_67 = arith.constant 0 : index
    %c0_68 = arith.constant 0 : index
    %c0_69 = arith.constant 0 : index
    %81 = vector.load %arg14[%c0_67, %c0_68, %c0_69] : memref<8x8x64xf32, #tpu.memory_space<vmem>>, vector<8x1x64xf32>
    %82 = vector.shape_cast %81 : vector<8x1x64xf32> to vector<8x64xf32>
    %c0_70 = arith.constant 0 : index
    %c1_71 = arith.constant 1 : index
    %c0_72 = arith.constant 0 : index
    %83 = vector.load %arg14[%c0_70, %c1_71, %c0_72] : memref<8x8x64xf32, #tpu.memory_space<vmem>>, vector<8x1x64xf32>
    %84 = vector.shape_cast %83 : vector<8x1x64xf32> to vector<8x64xf32>
    %85 = arith.maximumf %82, %84 : vector<8x64xf32>
    %c0_73 = arith.constant 0 : index
    %c0_74 = arith.constant 0 : index
    %c0_75 = arith.constant 0 : index
    %86 = vector.load %arg6[%c0_73, %c0_74, %c0_75] : memref<4x64x128xf32, #tpu.memory_space<vmem>>, vector<1x64x128xf32>
    %87 = vector.shape_cast %86 : vector<1x64x128xf32> to vector<64x128xf32>
    %cst_76 = arith.constant dense<0.000000e+00> : vector<8x128xf32>
    %88 = tpu.matmul %85, %87, %cst_76 {dimension_numbers = #tpu.dot_dimension_numbers<[1], [0], [0], [1], [0, 0, 1, 1], [], []>} : vector<8x64xf32>, vector<64x128xf32>, vector<8x128xf32> -> vector<8x128xf32>
    %c0_77 = arith.constant 0 : index
    %c2_78 = arith.constant 2 : index
    %c0_79 = arith.constant 0 : index
    %89 = vector.load %arg14[%c0_77, %c2_78, %c0_79] : memref<8x8x64xf32, #tpu.memory_space<vmem>>, vector<8x1x64xf32>
    %90 = vector.shape_cast %89 : vector<8x1x64xf32> to vector<8x64xf32>
    %c0_80 = arith.constant 0 : index
    %c3_81 = arith.constant 3 : index
    %c0_82 = arith.constant 0 : index
    %91 = vector.load %arg14[%c0_80, %c3_81, %c0_82] : memref<8x8x64xf32, #tpu.memory_space<vmem>>, vector<8x1x64xf32>
    %92 = vector.shape_cast %91 : vector<8x1x64xf32> to vector<8x64xf32>
    %93 = arith.maximumf %90, %92 : vector<8x64xf32>
    %c1_83 = arith.constant 1 : index
    %c0_84 = arith.constant 0 : index
    %c0_85 = arith.constant 0 : index
    %94 = vector.load %arg6[%c1_83, %c0_84, %c0_85] : memref<4x64x128xf32, #tpu.memory_space<vmem>>, vector<1x64x128xf32>
    %95 = vector.shape_cast %94 : vector<1x64x128xf32> to vector<64x128xf32>
    %cst_86 = arith.constant dense<0.000000e+00> : vector<8x128xf32>
    %96 = tpu.matmul %93, %95, %cst_86 {dimension_numbers = #tpu.dot_dimension_numbers<[1], [0], [0], [1], [0, 0, 1, 1], [], []>} : vector<8x64xf32>, vector<64x128xf32>, vector<8x128xf32> -> vector<8x128xf32>
    %97 = arith.addf %88, %96 : vector<8x128xf32>
    %c0_87 = arith.constant 0 : index
    %c4_88 = arith.constant 4 : index
    %c0_89 = arith.constant 0 : index
    %98 = vector.load %arg14[%c0_87, %c4_88, %c0_89] : memref<8x8x64xf32, #tpu.memory_space<vmem>>, vector<8x1x64xf32>
    %99 = vector.shape_cast %98 : vector<8x1x64xf32> to vector<8x64xf32>
    %c0_90 = arith.constant 0 : index
    %c5 = arith.constant 5 : index
    %c0_91 = arith.constant 0 : index
    %100 = vector.load %arg14[%c0_90, %c5, %c0_91] : memref<8x8x64xf32, #tpu.memory_space<vmem>>, vector<8x1x64xf32>
    %101 = vector.shape_cast %100 : vector<8x1x64xf32> to vector<8x64xf32>
    %102 = arith.maximumf %99, %101 : vector<8x64xf32>
    %c2_92 = arith.constant 2 : index
    %c0_93 = arith.constant 0 : index
    %c0_94 = arith.constant 0 : index
    %103 = vector.load %arg6[%c2_92, %c0_93, %c0_94] : memref<4x64x128xf32, #tpu.memory_space<vmem>>, vector<1x64x128xf32>
    %104 = vector.shape_cast %103 : vector<1x64x128xf32> to vector<64x128xf32>
    %cst_95 = arith.constant dense<0.000000e+00> : vector<8x128xf32>
    %105 = tpu.matmul %102, %104, %cst_95 {dimension_numbers = #tpu.dot_dimension_numbers<[1], [0], [0], [1], [0, 0, 1, 1], [], []>} : vector<8x64xf32>, vector<64x128xf32>, vector<8x128xf32> -> vector<8x128xf32>
    %106 = arith.addf %97, %105 : vector<8x128xf32>
    %c0_96 = arith.constant 0 : index
    %c6 = arith.constant 6 : index
    %c0_97 = arith.constant 0 : index
    %107 = vector.load %arg14[%c0_96, %c6, %c0_97] : memref<8x8x64xf32, #tpu.memory_space<vmem>>, vector<8x1x64xf32>
    %108 = vector.shape_cast %107 : vector<8x1x64xf32> to vector<8x64xf32>
    %c0_98 = arith.constant 0 : index
    %c7 = arith.constant 7 : index
    %c0_99 = arith.constant 0 : index
    %109 = vector.load %arg14[%c0_98, %c7, %c0_99] : memref<8x8x64xf32, #tpu.memory_space<vmem>>, vector<8x1x64xf32>
    %110 = vector.shape_cast %109 : vector<8x1x64xf32> to vector<8x64xf32>
    %111 = arith.maximumf %108, %110 : vector<8x64xf32>
    %c3_100 = arith.constant 3 : index
    %c0_101 = arith.constant 0 : index
    %c0_102 = arith.constant 0 : index
    %112 = vector.load %arg6[%c3_100, %c0_101, %c0_102] : memref<4x64x128xf32, #tpu.memory_space<vmem>>, vector<1x64x128xf32>
    %113 = vector.shape_cast %112 : vector<1x64x128xf32> to vector<64x128xf32>
    %cst_103 = arith.constant dense<0.000000e+00> : vector<8x128xf32>
    %114 = tpu.matmul %111, %113, %cst_103 {dimension_numbers = #tpu.dot_dimension_numbers<[1], [0], [0], [1], [0, 0, 1, 1], [], []>} : vector<8x64xf32>, vector<64x128xf32>, vector<8x128xf32> -> vector<8x128xf32>
    %115 = arith.addf %106, %114 : vector<8x128xf32>
    %c0_104 = arith.constant 0 : index
    %c0_105 = arith.constant 0 : index
    %116 = vector.load %arg7[%c0_104, %c0_105] : memref<1x128xf32, #tpu.memory_space<vmem>>, vector<1x128xf32>
    %117 = vector.broadcast %116 : vector<1x128xf32> to vector<8x128xf32>
    %118 = arith.addf %115, %117 : vector<8x128xf32>
    %cst_106 = arith.constant 0.000000e+00 : f32
    %119 = vector.broadcast %cst_106 : f32 to vector<8x128xf32>
    %120 = arith.maximumf %118, %119 : vector<8x128xf32>
    %c0_107 = arith.constant 0 : index
    %c0_108 = arith.constant 0 : index
    %121 = vector.load %arg8[%c0_107, %c0_108] : memref<128x128xf32, #tpu.memory_space<vmem>>, vector<128x128xf32>
    %cst_109 = arith.constant dense<0.000000e+00> : vector<8x128xf32>
    %122 = tpu.matmul %120, %121, %cst_109 {dimension_numbers = #tpu.dot_dimension_numbers<[1], [0], [0], [1], [0, 0, 1, 1], [], []>} : vector<8x128xf32>, vector<128x128xf32>, vector<8x128xf32> -> vector<8x128xf32>
    %c0_110 = arith.constant 0 : index
    %c0_111 = arith.constant 0 : index
    %123 = vector.load %arg9[%c0_110, %c0_111] : memref<1x128xf32, #tpu.memory_space<vmem>>, vector<1x128xf32>
    %124 = vector.broadcast %123 : vector<1x128xf32> to vector<8x128xf32>
    %125 = arith.addf %122, %124 : vector<8x128xf32>
    %cst_112 = arith.constant 0.000000e+00 : f32
    %126 = vector.broadcast %cst_112 : f32 to vector<8x128xf32>
    %127 = arith.maximumf %125, %126 : vector<8x128xf32>
    %c0_113 = arith.constant 0 : index
    %c0_114 = arith.constant 0 : index
    %128 = vector.load %arg10[%c0_113, %c0_114] : memref<128x128xf32, #tpu.memory_space<vmem>>, vector<128x128xf32>
    %cst_115 = arith.constant dense<0.000000e+00> : vector<8x128xf32>
    %129 = tpu.matmul %127, %128, %cst_115 {dimension_numbers = #tpu.dot_dimension_numbers<[1], [0], [0], [1], [0, 0, 1, 1], [], []>} : vector<8x128xf32>, vector<128x128xf32>, vector<8x128xf32> -> vector<8x128xf32>
    %c0_116 = arith.constant 0 : index
    %c0_117 = arith.constant 0 : index
    %130 = vector.load %arg11[%c0_116, %c0_117] : memref<1x128xf32, #tpu.memory_space<vmem>>, vector<1x128xf32>
    %131 = vector.broadcast %130 : vector<1x128xf32> to vector<8x128xf32>
    %132 = arith.addf %129, %131 : vector<8x128xf32>
    %c0_118 = arith.constant 0 : index
    %c0_119 = arith.constant 0 : index
    %133 = vector.load %arg12[%c0_118, %c0_119] : memref<8x128xf32, #tpu.memory_space<vmem>>, vector<8x128xf32>
    tpu.vector_store %arg12[%c0_118, %c0_119], %132 {strides = array<i32>} : memref<8x128xf32, #tpu.memory_space<vmem>>, vector<8x128xf32>,
    return
  }
  func.func @transform_0(%arg0: i32) -> (i32, i32, i32) {
    %c0_i32 = arith.constant 0 : i32
    %c0_i32_0 = arith.constant 0 : i32
    %c0_i32_1 = arith.constant 0 : i32
    return %arg0, %c0_i32, %c0_i32_0 : i32, i32, i32
  }
  func.func @transform_1(%arg0: i32) -> (i32, i32, i32) {
    %c0_i32 = arith.constant 0 : i32
    %c0_i32_0 = arith.constant 0 : i32
    %c0_i32_1 = arith.constant 0 : i32
    %c0_i32_2 = arith.constant 0 : i32
    return %c0_i32, %c0_i32_0, %c0_i32_1 : i32, i32, i32
  }
  func.func @transform_2(%arg0: i32) -> (i32, i32) {
    %c0_i32 = arith.constant 0 : i32
    %c0_i32_0 = arith.constant 0 : i32
    %c0_i32_1 = arith.constant 0 : i32
    return %c0_i32, %c0_i32_0 : i32, i32
  }
  func.func @transform_3(%arg0: i32) -> (i32, i32, i32) {
    %c0_i32 = arith.constant 0 : i32
    %c0_i32_0 = arith.constant 0 : i32
    %c0_i32_1 = arith.constant 0 : i32
    %c0_i32_2 = arith.constant 0 : i32
    return %c0_i32, %c0_i32_0, %c0_i32_1 : i32, i32, i32
  }
  func.func @transform_4(%arg0: i32) -> (i32, i32) {
    %c0_i32 = arith.constant 0 : i32
    %c0_i32_0 = arith.constant 0 : i32
    %c0_i32_1 = arith.constant 0 : i32
    return %c0_i32, %c0_i32_0 : i32, i32
  }
  func.func @transform_5(%arg0: i32) -> (i32, i32, i32) {
    %c0_i32 = arith.constant 0 : i32
    %c0_i32_0 = arith.constant 0 : i32
    %c0_i32_1 = arith.constant 0 : i32
    %c0_i32_2 = arith.constant 0 : i32
    return %c0_i32, %c0_i32_0, %c0_i32_1 : i32, i32, i32
  }
  func.func @transform_6(%arg0: i32) -> (i32, i32) {
    %c0_i32 = arith.constant 0 : i32
    %c0_i32_0 = arith.constant 0 : i32
    %c0_i32_1 = arith.constant 0 : i32
    return %c0_i32, %c0_i32_0 : i32, i32
  }
  func.func @transform_7(%arg0: i32) -> (i32, i32) {
    %c0_i32 = arith.constant 0 : i32
    %c0_i32_0 = arith.constant 0 : i32
    %c0_i32_1 = arith.constant 0 : i32
    return %c0_i32, %c0_i32_0 : i32, i32
  }
  func.func @transform_8(%arg0: i32) -> (i32, i32) {
    %c0_i32 = arith.constant 0 : i32
    %c0_i32_0 = arith.constant 0 : i32
    %c0_i32_1 = arith.constant 0 : i32
    return %c0_i32, %c0_i32_0 : i32, i32
  }
  func.func @transform_9(%arg0: i32) -> (i32, i32) {
    %c0_i32 = arith.constant 0 : i32
    %c0_i32_0 = arith.constant 0 : i32
    %c0_i32_1 = arith.constant 0 : i32
    return %c0_i32, %c0_i32_0 : i32, i32
  }
  func.func @transform_10(%arg0: i32) -> (i32, i32) {
    %c0_i32 = arith.constant 0 : i32
    %c0_i32_0 = arith.constant 0 : i32
    %c0_i32_1 = arith.constant 0 : i32
    return %c0_i32, %c0_i32_0 : i32, i32
  }
  func.func @transform_11(%arg0: i32) -> (i32, i32) {
    %c0_i32 = arith.constant 0 : i32
    %c0_i32_0 = arith.constant 0 : i32
    return %arg0, %c0_i32 : i32, i32
  }
}

</mosaic_0001>

<bundles_post_ra>
// kernel: net_forward.1
= control target key start
LH: loop header
LB: loop body
LE: loop exit
PB: predicated region body
PF: predicated region fallthrough
CT: control target
= control target key end

     0   :  { %16 = vsyncpa [#allocation5], 0  ;;  %s6335_s0 = inlined_call_operand.vmem [shape: f32[8,28,28], index: 0, kind: input, shape index: {}]   ;;  %s6336_s1 = inlined_call_operand.vmem [shape: f32[5,28,256], index: 1, kind: input, shape index: {}]   ;;  %s6337_s2 = inlined_call_operand.vmem [shape: f32[1,256], index: 2, kind: input, shape index: {}]   ;;  %s6338_s3 = inlined_call_operand.hbm [shape: f32[5,128,128], index: 3, kind: input, shape index: {}]   ;;  %s6339_s4 = inlined_call_operand.vmem [shape: f32[1,128], index: 4, kind: input, shape index: {}]   ;;  %s6340_s5 = inlined_call_operand.hbm [shape: f32[4,64,128], index: 5, kind: input, shape index: {}]   ;;  %s6341_s6 = inlined_call_operand.vmem [shape: f32[1,128], index: 6, kind: input, shape index: {}]   ;;  %s6342_s7 = inlined_call_operand.vmem [shape: f32[128,128], index: 7, kind: input, shape index: {}]   ;;  %s6343_s8 = inlined_call_operand.vmem [shape: f32[1,128], index: 8, kind: input, shape index: {}]   ;;  %s6344_s9 = inlined_call_operand.vmem [shape: f32[128,128], index: 9, kind: input, shape index: {}]   ;;  %s6345_s10 = inlined_call_operand.vmem [shape: f32[1,128], index: 10, kind: input, shape index: {}]   ;;  %s6346_s11 = inlined_call_operand.vmem [shape: f32[8,128], index: 11, kind: output, shape index: {}]  }
   0x1   :  { %17 = vsyncpa [#allocation7], 0  ;;  %s4930_s17 = smov [#allocation4]   ;;  %s4882_s21 = scalar_lea.hbm %s6338_s3, 10240 }
   0x2   :  { %s29_s18 = sshll.u32 %s4930_s17, 4  ;;  %p4883_p0 = scmp.ne.s32.totalorder %s6338_s3, %s4882_s21  ;;  %s30_s18 = int_to_ptr.vmem [resolvable:$true] %s29_s18 }
   0x3   :  { %p4886_p1 = scmp.lt.u32.totalorder %s4882_s21, %s6338_s3 }
   0x5   :  { %p4888_p2 = pnand %p4886_p1, %p4883_p0 }
   0x7   :  { %4891 = shalt.err (!%p4888_p2)
}
   0x8   :  { %s4892_s26 = scalar_lea.vmem %s30_s18, 10240  ;;  %p4897_p4 = scmp.lt.s32.totalorder %s30_s18, %s30_s18 }
   0x9   :  { %p4893_p3 = scmp.ne.s32.totalorder %s30_s18, %s4892_s26  ;;  %p4898_p5 = scmp.lt.s32.totalorder %s4892_s26, %s4892_s26 }
   0xb   :  { %p4899_p6 = por %p4898_p5, %p4897_p4 }
   0xd   :  { %p4900_p7 = pnand %p4899_p6, %p4893_p3 }
   0xf   :  { %4903 = shalt.err (!%p4900_p7)
}
  0x10   :  { %s4931_s27 = smov 128   ;;  %s4932_s28 = smov 8  }
  0x11   :  { %35 = dma.hbm_to_vmem [thread:$0]  %s6338_s3, 10240, %s30_s18, [#allocation5], %s4931_s27, %s4931_s27, %s4932_s28  }
  0x12   :  { %s4933_s12 = smov [#allocation6]   ;;  %s4904_s16 = scalar_lea.hbm %s6340_s5, 4096 }
  0x13   :  { %s43_s13 = sshll.u32 %s4933_s12, 4  ;;  %p4905_p8 = scmp.ne.s32.totalorder %s6340_s5, %s4904_s16  ;;  %s44_s13 = int_to_ptr.vmem [resolvable:$true] %s43_s13 }
  0x14   :  { %p4908_p9 = scmp.lt.u32.totalorder %s4904_s16, %s6340_s5 }
  0x16   :  { %p4910_p10 = pnand %p4908_p9, %p4905_p8 }
  0x18   :  { %4913 = shalt.err (!%p4910_p10)
}
  0x19   :  { %s4914_s22 = scalar_lea.vmem %s44_s13, 4096  ;;  %p4919_p12 = scmp.lt.s32.totalorder %s44_s13, %s44_s13 }
  0x1a   :  { %p4915_p11 = scmp.ne.s32.totalorder %s44_s13, %s4914_s22  ;;  %p4920_p13 = scmp.lt.s32.totalorder %s4914_s22, %s4914_s22 }
  0x1c   :  { %p4921_p0 = por %p4920_p13, %p4919_p12 }
  0x1e   :  { %p4922_p1 = pnand %p4921_p0, %p4915_p11 }
  0x20   :  { %4925 = shalt.err (!%p4922_p1)
}
  0x21   :  { %49 = dma.hbm_to_vmem [thread:$0]  %s6340_s5, 4096, %s44_s13, [#allocation7], %s4931_s27, %s4931_s27, %s4932_s28  }
  0x22   :  { %4926 = dma.done.wait [#allocation5], 10240  }
  0x23   :  { %4927 = vsyncadd [#allocation5], 4294957056 }
  0x24   :  { %4928 = dma.done.wait [#allocation7], 4096  }
  0x25   :  { %4929 = vsyncadd [#allocation7], 4294963200  ;;  %v6347_v0 = vmov 0.0   ;;  %vm204_vm0 = vcmask 1043456   ;;  %v91_v1 = vld [vmem:[%s6336_s1 + $0x8] sm:$0xff]  ;;  %v93_v2 = vld [vmem:[%s6336_s1 + $0x18] sm:$0xff] }
  0x26   :  { %562 = vmatprep.mubr.f32.mxu0 %v6347_v0  ;;  %275 = vmatprep.mubr.f32.mxu1 %v6347_v0  ;;  %v90_v3 = vld [vmem:[%s6336_s1] sm:$0xff]  ;;  %v4353_v4 = vpack.c.bf16 %v93_v2, %v91_v1  ;;  %v92_v5 = vld [vmem:[%s6336_s1 + $0x10] sm:$0xff]  ;;  %v95_v6 = vld [vmem:[%s6336_s1 + $0x28] sm:$0xff]  ;;  %vm4935_vm1 = vmmov 1   ;;  %vm131_vm3 = vcmask 228352   ;;  %vm2078_vm4 = vcmask 1046528  }
  0x27   :  { %v97_v7 = vld [vmem:[%s6336_s1 + $0x38] sm:$0xf]  ;;  %v4355_v8 = vpack.c.bf16 %v92_v5, %v90_v3  ;;  %vm5044_vm2 = vmpackc.low %vm204_vm0, %vm4935_vm1  ;;  %v94_v11 = vld [vmem:[%s6336_s1 + $0x20] sm:$0xff]  ;;  %vm2338_vm5 = vcmask 1045504   ;;  %vm2501_vm6 = vcmask 1044480   ;;  %s4937_s24 = smov 64  }
  0x28   :  { %v4357_v10 = vpack.c.bf16 %v97_v7, %v95_v6  ;;  %v96_v12 = vld [vmem:[%s6336_s1 + $0x30] sm:$0xf]  ;;  %4354 = vmatprep.subr.bf16.mxu0 %v4353_v4  ;;  %v3678_v13 = vld [vmem:[%s6336_s1 + $0x88] sm:$0xff]  ;;  %v3680_v14 = vld [vmem:[%s6336_s1 + $0x98] sm:$0xff]  ;;  %vm4938_vm7 = vmmov 0   ;;  %vm2889_vm8 = vcmask 523264  }
  0x29   :  { %4356 = vmatpush1.bf16.msra.mxu0 %v4355_v8  ;;  %v4360_v15 = vpack.c.bf16 %v96_v12, %v94_v11  ;;  %v4363_v16 = vpack.c.bf16 %v3680_v14, %v3678_v13  ;;  %v3677_v17 = vld [vmem:[%s6336_s1 + $0x80] sm:$0xff]  ;;  %v3679_v18 = vld [vmem:[%s6336_s1 + $0x90] sm:$0xff]  ;;  %v3682_v21 = vld [vmem:[%s6336_s1 + $0xa8] sm:$0xff]  ;;  %vm2972_vm9 = vcmask 1041409   ;;  %vm2975_vm10 = vcmask 1042434  }
  0x2a   :  { %4359 = vmatprep.subr.msk.bf16.mxu0 %vm5044_vm2, %v4357_v10  ;;  %v66_v19 = vld [vmem:[%s6335_s0] sm:$0xff]  ;;  %v4365_v20 = vpack.c.bf16 %v3679_v18, %v3677_v17  ;;  %v3684_v22 = vld [vmem:[%s6336_s1 + $0xb8] sm:$0xf]  ;;  %v3683_v25 = vld [vmem:[%s6336_s1 + $0xb0] sm:$0xf]  ;;  %vm2978_vm11 = vcmask 1043459  }
  0x2b   :  { %v4367_v23 = vpack.c.bf16 %v3684_v22, %v3682_v21  ;;  %v3681_v24 = vld [vmem:[%s6336_s1 + $0xa0] sm:$0xff]  ;;  %v67_v26 = vld [vmem:[%s6335_s0 + $0x8] sm:$0xff]  ;;  %v3714_v29 = vld [vmem:[%s6336_s1 + $0xd8] sm:$0xff]  ;;  %vm2981_vm12 = vcmask 1044484   ;;  %vm2984_vm13 = vcmask 1045509   ;;  %vm2987_vm14 = vcmask 1046534  }
  0x2c   :  { %v4370_v27 = vpack.c.bf16 %v3683_v25, %v3681_v24  ;;  %v3712_v28 = vld [vmem:[%s6336_s1 + $0xc8] sm:$0xff]  ;;  %v68_v31 = vld [vmem:[%s6335_s0 + $0x10] sm:$0xff]  ;;  %v69_v32 = vld [vmem:[%s6335_s0 + $0x20] sm:$0xff]  ;;  %vm2990_vm15 = vcmask 1047559  }
  0x2d   :  { %4362 = vmatpush1.bf16.msk.msra.mxu0 %vm5044_vm2, %v4360_v15  ;;  %v4373_v30 = vpack.c.bf16 %v3714_v29, %v3712_v28  ;;  %v70_v33 = vld [vmem:[%s6335_s0 + $0x28] sm:$0xff]  ;;  %v71_v34 = vld [vmem:[%s6335_s0 + $0x30] sm:$0xff]  ;;  %v72_v35 = vld [vmem:[%s6335_s0 + $0x40] sm:$0xff] }
  0x2e   :  { %4364 = vmatprep.subr.bf16.mxu0 %v4363_v16  ;;  %v73_v36 = vld [vmem:[%s6335_s0 + $0x48] sm:$0xff]  ;;  %v74_v37 = vld [vmem:[%s6335_s0 + $0x50] sm:$0xff]  ;;  %v75_v38 = vld [vmem:[%s6335_s0 + $0x60] sm:$0xff] }
  0x2f   :  { %v76_v39 = vld [vmem:[%s6335_s0 + $0x68] sm:$0xff]  ;;  %v77_v40 = vld [vmem:[%s6335_s0 + $0x70] sm:$0xff]  ;;  %v78_v41 = vld [vmem:[%s6335_s0 + $0x80] sm:$0xff] }
  0x30   :  { %3653 = vmatmul.mubr.msk.f32.vlgmr.msra.gmra.mrb[0].mxu0 %vm131_vm3, %v66_v19  ;;  %v79_v42 = vld [vmem:[%s6335_s0 + $0x88] sm:$0xff]  ;;  %v80_v43 = vld [vmem:[%s6335_s0 + $0x90] sm:$0xff]  ;;  %v81_v44 = vld [vmem:[%s6335_s0 + $0xa0] sm:$0xff] }
  0x31   :  { %4366 = vmatpush1.bf16.msra.mxu0 %v4365_v20  ;;  %568 = vmatprep.mubr.f32.mxu0 %v6347_v0  ;;  %v82_v45 = vld [vmem:[%s6335_s0 + $0xa8] sm:$0xff]  ;;  %v83_v46 = vld [vmem:[%s6335_s0 + $0xb0] sm:$0xff]  ;;  %v84_v47 = vld [vmem:[%s6335_s0 + $0xc0] sm:$0xff] }
  0x32   :  { %4369 = vmatprep.subr.msk.bf16.mxu0 %vm5044_vm2, %v4367_v23  ;;  %v85_v48 = vld [vmem:[%s6335_s0 + $0xc8] sm:$0xff]  ;;  %v86_v49 = vld [vmem:[%s6335_s0 + $0xd0] sm:$0xff]  ;;  %v87_v50 = vld [vmem:[%s6335_s0 + $0xe0] sm:$0xff] }
  0x33   :  { %v88_v51 = vld [vmem:[%s6335_s0 + $0xe8] sm:$0xff]  ;;  %v89_v52 = vld [vmem:[%s6335_s0 + $0xf0] sm:$0xff]  ;;  %v3711_v53 = vld [vmem:[%s6336_s1 + $0xc0] sm:$0xff] }
  0x34   :  { %3654 = vmatmul.mubr.msk.f32.gmra.mrb[2].mxu0 %vm131_vm3, %v67_v26  ;;  %v3713_v54 = vld [vmem:[%s6336_s1 + $0xd0] sm:$0xff]  ;;  %v3716_v55 = vld [vmem:[%s6336_s1 + $0xe8] sm:$0xff]  ;;  %v3718_v56 = vld [vmem:[%s6336_s1 + $0xf8] sm:$0xf] }
  0x35   :  { %574 = vmatprep.mubr.f32.mxu0 %v6347_v0  ;;  %4372 = vmatpush1.bf16.msk.msra.mxu0 %vm5044_vm2, %v4370_v27  ;;  %v707_v57 = vld [vmem:[%s6335_s0 + $0x2] sm:$0xff]  ;;  %v4375_v58 = vpack.c.bf16 %v3713_v54, %v3711_v53  ;;  %v4377_v59 = vpack.c.bf16 %v3718_v56, %v3716_v55  ;;  %v3717_v61 = vld [vmem:[%s6336_s1 + $0xf0] sm:$0xf]  ;;  %v3748_v63 = vld [vmem:[%s6336_s1 + $0x118] sm:$0xff] }
  0x36   :  { %4374 = vmatprep.subr.bf16.mxu0 %v4373_v30  ;;  %v3715_v60 = vld [vmem:[%s6336_s1 + $0xe0] sm:$0xff]  ;;  %v3746_v62 = vld [vmem:[%s6336_s1 + $0x108] sm:$0xff]  ;;  %v709_v4 = vld [vmem:[%s6335_s0 + $0x12] sm:$0xff] }
  0x37   :  { %v708_v1 = vld [vmem:[%s6335_s0 + $0xa] sm:$0xff]  ;;  %v4380_v2 = vpack.c.bf16 %v3717_v61, %v3715_v60  ;;  %v4383_v3 = vpack.c.bf16 %v3748_v63, %v3746_v62  ;;  %v710_v5 = vld [vmem:[%s6335_s0 + $0x22] sm:$0xff]  ;;  %v712_v7 = vld [vmem:[%s6335_s0 + $0x32] sm:$0xff] }
  0x38   :  { %3655 = vmatmul.mubr.msk.f32.gmra.mrb[4].mxu0 %vm131_vm3, %v68_v31  ;;  %v711_v6 = vld [vmem:[%s6335_s0 + $0x2a] sm:$0xff]  ;;  %v713_v8 = vld [vmem:[%s6335_s0 + $0x42] sm:$0xff]  ;;  %v715_v11 = vld [vmem:[%s6335_s0 + $0x52] sm:$0xff] }
  0x39   :  { %580 = vmatprep.mubr.f32.mxu0 %v6347_v0  ;;  %v714_v10 = vld [vmem:[%s6335_s0 + $0x4a] sm:$0xff]  ;;  %v716_v12 = vld [vmem:[%s6335_s0 + $0x62] sm:$0xff]  ;;  %v718_v14 = vld [vmem:[%s6335_s0 + $0x72] sm:$0xff] }
  0x3a   :  { %v717_v13 = vld [vmem:[%s6335_s0 + $0x6a] sm:$0xff]  ;;  %v719_v15 = vld [vmem:[%s6335_s0 + $0x82] sm:$0xff]  ;;  %v3620_v18 = vld [vmem:[%s6336_s1 + $0x58] sm:$0xff] }
  0x3b   :  { %v720_v16 = vld [vmem:[%s6335_s0 + $0x8a] sm:$0xff]  ;;  %v721_v19 = vld [vmem:[%s6335_s0 + $0x92] sm:$0xff]  ;;  %v3617_v21 = vld [vmem:[%s6336_s1 + $0x40] sm:$0xff] }
  0x3c   :  { %3656 = vmatmul.mubr.msk.f32.gmra.mrb[6].mxu0 %vm131_vm3, %v69_v32  ;;  %v3618_v17 = vld [vmem:[%s6336_s1 + $0x48] sm:$0xff]  ;;  %v3619_v22 = vld [vmem:[%s6336_s1 + $0x50] sm:$0xff]  ;;  %v3624_v25 = vld [vmem:[%s6336_s1 + $0x78] sm:$0xf] }
  0x3d   :  { %586 = vmatprep.mubr.f32.mxu0 %v6347_v0  ;;  %v4343_v20 = vpack.c.bf16 %v3620_v18, %v3618_v17  ;;  %v4345_v23 = vpack.c.bf16 %v3619_v22, %v3617_v21  ;;  %v3622_v24 = vld [vmem:[%s6336_s1 + $0x68] sm:$0xff]  ;;  %v3621_v28 = vld [vmem:[%s6336_s1 + $0x60] sm:$0xff]  ;;  %v3623_v29 = vld [vmem:[%s6336_s1 + $0x70] sm:$0xf] }
  0x3e   :  { %v722_v26 = vld [vmem:[%s6335_s0 + $0xa2] sm:$0xff]  ;;  %v4347_v27 = vpack.c.bf16 %v3624_v25, %v3622_v24  ;;  %v4350_v30 = vpack.c.bf16 %v3623_v29, %v3621_v28  ;;  %v723_v31 = vld [vmem:[%s6335_s0 + $0xaa] sm:$0xff]  ;;  %v1077_v60 = vld [vmem:[%s6335_s0 + $0x13] sm:$0xff] }
  0x3f   :  { %4344 = vmatprep.subr.bf16.mxu1 %v4343_v20  ;;  %v98_v32 = vld [vmem:[%s6335_s0 + $0x1] sm:$0xff]  ;;  %v106_v53 = vld [vmem:[%s6335_s0 + $0x51] sm:$0xff]  ;;  %v108_v61 = vld [vmem:[%s6335_s0 + $0x69] sm:$0xff] }
  0x40   :  { %3657 = vmatmul.mubr.msk.f32.gmra.mrb[8].mxu0 %vm131_vm3, %v70_v33  ;;  %4346 = vmatpush1.bf16.msra.mxu1 %v4345_v23  ;;  %v724_v33 = vld [vmem:[%s6335_s0 + $0xb2] sm:$0xff]  ;;  %v3749_v55 = vld [vmem:[%s6336_s1 + $0x120] sm:$0xff]  ;;  %v120_v22 = vld [vmem:[%s6335_s0 + $0xe9] sm:$0xff] }
  0x41   :  { %592 = vmatprep.mubr.f32.mxu0 %v6347_v0  ;;  %4349 = vmatprep.subr.msk.bf16.mxu1 %vm5044_vm2, %v4347_v27  ;;  %v3751_v56 = vld [vmem:[%s6336_s1 + $0x130] sm:$0xf]  ;;  %v1078_v62 = vld [vmem:[%s6335_s0 + $0x23] sm:$0xff] }
  0x42   :  { %v109_v9 = vld [vmem:[%s6335_s0 + $0x71] sm:$0xff]  ;;  %v1087_v17 = vld [vmem:[%s6335_s0 + $0x83] sm:$0xff] }
  0x43   :  { %v1079_v63 = vld [vmem:[%s6335_s0 + $0x2b] sm:$0xff]  ;;  %v119_v20 = vld [vmem:[%s6335_s0 + $0xe1] sm:$0xff]  ;;  %v1089_v21 = vld [vmem:[%s6335_s0 + $0x93] sm:$0xff] }
  0x44   :  { %3658 = vmatmul.mubr.msk.f32.gmra.mrb[10].mxu0 %vm131_vm3, %v71_v34  ;;  %4352 = vmatpush1.bf16.msk.msra.mxu1 %vm5044_vm2, %v4350_v30  ;;  %v99_v34 = vld [vmem:[%s6335_s0 + $0x9] sm:$0xff]  ;;  %v118_v18 = vld [vmem:[%s6335_s0 + $0xd1] sm:$0xff]  ;;  %v2112_v25 = vld [vmem:[#allocation4 + $0x80] sm:$0xff] }
  0x45   :  { %598 = vmatprep.mubr.f32.mxu0 %v6347_v0  ;;  %v1090_v23 = vld [vmem:[%s6335_s0 + $0xa3] sm:$0xff]  ;;  %v121_v24 = vld [vmem:[%s6335_s0 + $0xf1] sm:$0xff] }
  0x46   :  { %v1091_v27 = vld [vmem:[%s6335_s0 + $0xab] sm:$0xff]  ;;  %v1092_v29 = vld [vmem:[%s6335_s0 + $0xb3] sm:$0xff]  ;;  %v1093_v30 = vld [vmem:[%s6335_s0 + $0xc3] sm:$0xff] }
  0x47   :  { %3627 = vmatmul.mubr.msk.f32.vlgmr.msra.gmra.mrb[0].mxu1 %vm131_vm3, %v98_v32  ;;  %v1095_v32 = vld [vmem:[%s6335_s0 + $0xd3] sm:$0xff] }
  0x48   :  { %3659 = vmatmul.mubr.msk.f32.gmra.mrb[12].mxu0 %vm131_vm3, %v72_v35  ;;  %281 = vmatprep.mubr.f32.mxu1 %v6347_v0  ;;  %v725_v35 = vld [vmem:[%s6335_s0 + $0xc2] sm:$0xff] }
  0x49   :  { %604 = vmatprep.mubr.f32.mxu0 %v6347_v0 }
  0x4b   :  { %3628 = vmatmul.mubr.msk.f32.gmra.mrb[2].mxu1 %vm131_vm3, %v99_v34  ;;  %v1097_v34 = vld [vmem:[%s6335_s0 + $0xeb] sm:$0xff] }
  0x4c   :  { %3660 = vmatmul.mubr.msk.f32.gmra.mrb[14].mxu0 %vm131_vm3, %v73_v36  ;;  %287 = vmatprep.mubr.f32.mxu1 %v6347_v0  ;;  %v100_v36 = vld [vmem:[%s6335_s0 + $0x11] sm:$0xff] }
  0x4d   :  { %610 = vmatprep.mubr.f32.mxu0 %v6347_v0 }
  0x4f   :  { %3629 = vmatmul.mubr.msk.f32.gmra.mrb[4].mxu1 %vm131_vm3, %v100_v36  ;;  %v1443_v36 = vld [vmem:[%s6335_s0 + $0x4] sm:$0xff] }
  0x50   :  { %3661 = vmatmul.mubr.msk.f32.gmra.mrb[16].mxu0 %vm131_vm3, %v74_v37  ;;  %293 = vmatprep.mubr.f32.mxu1 %v6347_v0  ;;  %v726_v37 = vld [vmem:[%s6335_s0 + $0xca] sm:$0xff] }
  0x51   :  { %616 = vmatprep.mubr.f32.mxu0 %v6347_v0 }
  0x54   :  { %3662 = vmatmul.mubr.msk.f32.gmra.mrb[18].mxu0 %vm131_vm3, %v75_v38  ;;  %v101_v38 = vld [vmem:[%s6335_s0 + $0x21] sm:$0xff] }
  0x55   :  { %622 = vmatprep.mubr.f32.mxu0 %v6347_v0  ;;  %3630 = vmatmul.mubr.msk.f32.gmra.mrb[6].mxu1 %vm131_vm3, %v101_v38  ;;  %v1445_v38 = vld [vmem:[%s6335_s0 + $0x14] sm:$0xff] }
  0x56   :  { %299 = vmatprep.mubr.f32.mxu1 %v6347_v0 }
  0x58   :  { %3663 = vmatmul.mubr.msk.f32.gmra.mrb[20].mxu0 %vm131_vm3, %v76_v39  ;;  %v727_v39 = vld [vmem:[%s6335_s0 + $0xd2] sm:$0xff] }
  0x59   :  { %628 = vmatprep.mubr.f32.mxu0 %v6347_v0 }
  0x5c   :  { %3664 = vmatmul.mubr.msk.f32.gmra.mrb[22].mxu0 %vm131_vm3, %v77_v40  ;;  %v102_v40 = vld [vmem:[%s6335_s0 + $0x29] sm:$0xff] }
  0x5d   :  { %634 = vmatprep.mubr.f32.mxu0 %v6347_v0  ;;  %3631 = vmatmul.mubr.msk.f32.gmra.mrb[8].mxu1 %vm131_vm3, %v102_v40  ;;  %v1447_v40 = vld [vmem:[%s6335_s0 + $0x2c] sm:$0xff] }
  0x5e   :  { %305 = vmatprep.mubr.f32.mxu1 %v6347_v0 }
  0x60   :  { %3665 = vmatmul.mubr.msk.f32.gmra.mrb[24].mxu0 %vm131_vm3, %v78_v41  ;;  %v728_v41 = vld [vmem:[%s6335_s0 + $0xe2] sm:$0xff] }
  0x61   :  { %640 = vmatprep.mubr.f32.mxu0 %v6347_v0 }
  0x64   :  { %3666 = vmatmul.mubr.msk.f32.gmra.mrb[26].mxu0 %vm131_vm3, %v79_v42  ;;  %v103_v42 = vld [vmem:[%s6335_s0 + $0x31] sm:$0xff] }
  0x65   :  { %646 = vmatprep.mubr.f32.mxu0 %v6347_v0  ;;  %3632 = vmatmul.mubr.msk.f32.gmra.mrb[10].mxu1 %vm131_vm3, %v103_v42  ;;  %v1449_v42 = vld [vmem:[%s6335_s0 + $0x44] sm:$0xff] }
  0x66   :  { %311 = vmatprep.mubr.f32.mxu1 %v6347_v0 }
  0x68   :  { %3667 = vmatmul.mubr.msk.f32.gmra.mrb[28].mxu0 %vm131_vm3, %v80_v43  ;;  %v729_v43 = vld [vmem:[%s6335_s0 + $0xea] sm:$0xff] }
  0x69   :  { %652 = vmatprep.mubr.f32.mxu0 %v6347_v0 }
  0x6c   :  { %3668 = vmatmul.mubr.msk.f32.gmra.mrb[30].mxu0 %vm131_vm3, %v81_v44  ;;  %v104_v44 = vld [vmem:[%s6335_s0 + $0x41] sm:$0xff] }
  0x6d   :  { %658 = vmatprep.mubr.f32.mxu0 %v6347_v0  ;;  %3633 = vmatmul.mubr.msk.f32.gmra.mrb[12].mxu1 %vm131_vm3, %v104_v44  ;;  %v1451_v44 = vld [vmem:[%s6335_s0 + $0x54] sm:$0xff] }
  0x6e   :  { %317 = vmatprep.mubr.f32.mxu1 %v6347_v0 }
  0x70   :  { %3669 = vmatmul.mubr.msk.f32.gmra.mrb[32].mxu0 %vm131_vm3, %v82_v45  ;;  %v730_v45 = vld [vmem:[%s6335_s0 + $0xf2] sm:$0xff] }
  0x71   :  { %664 = vmatprep.mubr.f32.mxu0 %v6347_v0 }
  0x74   :  { %3670 = vmatmul.mubr.msk.f32.gmra.mrb[34].mxu0 %vm131_vm3, %v83_v46  ;;  %v105_v46 = vld [vmem:[%s6335_s0 + $0x49] sm:$0xff] }
  0x75   :  { %670 = vmatprep.mubr.f32.mxu0 %v6347_v0  ;;  %3634 = vmatmul.mubr.msk.f32.gmra.mrb[14].mxu1 %vm131_vm3, %v105_v46  ;;  %v1453_v46 = vld [vmem:[%s6335_s0 + $0x6c] sm:$0xff] }
  0x76   :  { %323 = vmatprep.mubr.f32.mxu1 %v6347_v0 }
  0x78   :  { %3671 = vmatmul.mubr.msk.f32.gmra.mrb[36].mxu0 %vm131_vm3, %v84_v47  ;;  %v3745_v47 = vld [vmem:[%s6336_s1 + $0x100] sm:$0xff] }
  0x79   :  { %676 = vmatprep.mubr.f32.mxu0 %v6347_v0  ;;  %3635 = vmatmul.mubr.msk.f32.gmra.mrb[16].mxu1 %vm131_vm3, %v106_v53  ;;  %v1460_v53 = vld [vmem:[%s6335_s0 + $0xb4] sm:$0xff] }
  0x7a   :  { %329 = vmatprep.mubr.f32.mxu1 %v6347_v0 }
  0x7c   :  { %3672 = vmatmul.mubr.msk.f32.gmra.mrb[38].mxu0 %vm131_vm3, %v85_v48  ;;  %v3747_v48 = vld [vmem:[%s6336_s1 + $0x110] sm:$0xff] }
  0x7d   :  { %682 = vmatprep.mubr.f32.mxu0 %v6347_v0 }
  0x80   :  { %3673 = vmatmul.mubr.msk.f32.gmra.mrb[40].mxu0 %vm131_vm3, %v86_v49  ;;  %v3750_v49 = vld [vmem:[%s6336_s1 + $0x128] sm:$0xff] }
  0x81   :  { %688 = vmatprep.mubr.f32.mxu0 %v6347_v0 }
  0x84   :  { %3674 = vmatmul.mubr.msk.f32.gmra.mrb[42].mxu0 %vm131_vm3, %v87_v50  ;;  %v3752_v50 = vld [vmem:[%s6336_s1 + $0x138] sm:$0xf] }
  0x85   :  { %694 = vmatprep.mubr.f32.mxu0 %v6347_v0  ;;  %v4387_v54 = vpack.c.bf16 %v3752_v50, %v3750_v49  ;;  %v1456_v49 = vld [vmem:[%s6335_s0 + $0x8c] sm:$0xff]  ;;  %v1457_v50 = vld [vmem:[%s6335_s0 + $0x94] sm:$0xff] }
  0x88   :  { %3675 = vmatmul.mubr.msk.f32.gmra.mrb[44].mxu0 %vm131_vm3, %v88_v51  ;;  %v1075_v51 = vld [vmem:[%s6335_s0 + $0x3] sm:$0xff] }
  0x89   :  { %700 = vmatprep.mubr.f32.mxu0 %v6347_v0 }
  0x8c   :  { %3676 = vmatmul.mubr.msk.f32.gmra.mrb[46].mxu0 %vm131_vm3, %v89_v52  ;;  %v4385_v52 = vpack.c.bf16 %v3747_v48, %v3745_v47  ;;  %v1454_v47 = vld [vmem:[%s6335_s0 + $0x74] sm:$0xff]  ;;  %v1455_v48 = vld [vmem:[%s6335_s0 + $0x84] sm:$0xff] }
  0x8d   :  { %882 = vmatprep.mubr.f32.mxu0 %v6347_v0 }
  0x90   :  { %3687 = vmatmul.mubr.msk.f32.vlgmr.msra.gmra.mrb[0].mxu0 %vm131_vm3, %v707_v57  ;;  %v1076_v57 = vld [vmem:[%s6335_s0 + $0xb] sm:$0xff] }
  0x91   :  { %4376 = vmatpush1.bf16.msra.mxu0 %v4375_v58  ;;  %888 = vmatprep.mubr.f32.mxu0 %v6347_v0  ;;  %v4390_v58 = vpack.c.bf16 %v3751_v56, %v3749_v55  ;;  %v1462_v55 = vld [vmem:[%s6335_s0 + $0xcc] sm:$0xff]  ;;  %v1463_v56 = vld [vmem:[%s6335_s0 + $0xd4] sm:$0xff] }
  0x92   :  { %4379 = vmatprep.subr.msk.bf16.mxu0 %vm5044_vm2, %v4377_v59  ;;  %v107_v59 = vld [vmem:[%s6335_s0 + $0x61] sm:$0xff] }
  0x93   :  { %3636 = vmatmul.mubr.msk.f32.gmra.mrb[18].mxu1 %vm131_vm3, %v107_v59 }
  0x94   :  { %3688 = vmatmul.mubr.msk.f32.gmra.mrb[2].mxu0 %vm131_vm3, %v708_v1  ;;  %335 = vmatprep.mubr.f32.mxu1 %v6347_v0  ;;  %v110_v1 = vld [vmem:[%s6335_s0 + $0x81] sm:$0xff] }
  0x95   :  { %894 = vmatprep.mubr.f32.mxu0 %v6347_v0  ;;  %4382 = vmatpush1.bf16.msk.msra.mxu0 %vm5044_vm2, %v4380_v2  ;;  %v1080_v2 = vld [vmem:[%s6335_s0 + $0x33] sm:$0xff] }
  0x96   :  { %4384 = vmatprep.subr.bf16.mxu0 %v4383_v3  ;;  %v111_v3 = vld [vmem:[%s6335_s0 + $0x89] sm:$0xff] }
  0x97   :  { %3637 = vmatmul.mubr.msk.f32.gmra.mrb[20].mxu1 %vm131_vm3, %v108_v61 }
  0x98   :  { %3689 = vmatmul.mubr.msk.f32.gmra.mrb[4].mxu0 %vm131_vm3, %v709_v4  ;;  %341 = vmatprep.mubr.f32.mxu1 %v6347_v0  ;;  %v1081_v4 = vld [vmem:[%s6335_s0 + $0x43] sm:$0xff] }
  0x99   :  { %900 = vmatprep.mubr.f32.mxu0 %v6347_v0 }
  0x9b   :  { %3638 = vmatmul.mubr.msk.f32.gmra.mrb[22].mxu1 %vm131_vm3, %v109_v9  ;;  %v1466_v9 = vld [vmem:[%s6335_s0 + $0xf4] sm:$0xff] }
  0x9c   :  { %3690 = vmatmul.mubr.msk.f32.gmra.mrb[6].mxu0 %vm131_vm3, %v710_v5  ;;  %347 = vmatprep.mubr.f32.mxu1 %v6347_v0  ;;  %v112_v5 = vld [vmem:[%s6335_s0 + $0x91] sm:$0xff] }
  0x9d   :  { %906 = vmatprep.mubr.f32.mxu0 %v6347_v0 }
  0x9f   :  { %3639 = vmatmul.mubr.msk.f32.gmra.mrb[24].mxu1 %vm131_vm3, %v110_v1 }
  0xa0   :  { %3691 = vmatmul.mubr.msk.f32.gmra.mrb[8].mxu0 %vm131_vm3, %v711_v6  ;;  %353 = vmatprep.mubr.f32.mxu1 %v6347_v0  ;;  %v1082_v6 = vld [vmem:[%s6335_s0 + $0x4b] sm:$0xff] }
  0xa1   :  { %912 = vmatprep.mubr.f32.mxu0 %v6347_v0 }
  0xa3   :  { %3640 = vmatmul.mubr.msk.f32.gmra.mrb[26].mxu1 %vm131_vm3, %v111_v3  ;;  %v2115_v3 = vld [vmem:[#allocation4 + $0x98] sm:$0xff] }
  0xa4   :  { %3692 = vmatmul.mubr.msk.f32.gmra.mrb[10].mxu0 %vm131_vm3, %v712_v7  ;;  %359 = vmatprep.mubr.f32.mxu1 %v6347_v0  ;;  %v113_v7 = vld [vmem:[%s6335_s0 + $0xa1] sm:$0xff] }
  0xa5   :  { %918 = vmatprep.mubr.f32.mxu0 %v6347_v0 }
  0xa7   :  { %3641 = vmatmul.mubr.msk.f32.gmra.mrb[28].mxu1 %vm131_vm3, %v112_v5 }
  0xa8   :  { %3693 = vmatmul.mubr.msk.f32.gmra.mrb[12].mxu0 %vm131_vm3, %v713_v8  ;;  %365 = vmatprep.mubr.f32.mxu1 %v6347_v0  ;;  %v1083_v8 = vld [vmem:[%s6335_s0 + $0x53] sm:$0xff] }
  0xa9   :  { %924 = vmatprep.mubr.f32.mxu0 %v6347_v0 }
  0xab   :  { %3642 = vmatmul.mubr.msk.f32.gmra.mrb[30].mxu1 %vm131_vm3, %v113_v7 }
  0xac   :  { %3694 = vmatmul.mubr.msk.f32.gmra.mrb[14].mxu0 %vm131_vm3, %v714_v10  ;;  %371 = vmatprep.mubr.f32.mxu1 %v6347_v0  ;;  %v114_v10 = vld [vmem:[%s6335_s0 + $0xa9] sm:$0xff] }
  0xad   :  { %930 = vmatprep.mubr.f32.mxu0 %v6347_v0 }
  0xaf   :  { %3643 = vmatmul.mubr.msk.f32.gmra.mrb[32].mxu1 %vm131_vm3, %v114_v10  ;;  %v2117_v10 = vld [vmem:[#allocation4 + $0xa8] sm:$0xff] }
  0xb0   :  { %3695 = vmatmul.mubr.msk.f32.gmra.mrb[16].mxu0 %vm131_vm3, %v715_v11  ;;  %377 = vmatprep.mubr.f32.mxu1 %v6347_v0  ;;  %v1084_v11 = vld [vmem:[%s6335_s0 + $0x63] sm:$0xff] }
  0xb1   :  { %936 = vmatprep.mubr.f32.mxu0 %v6347_v0 }
  0xb4   :  { %3696 = vmatmul.mubr.msk.f32.gmra.mrb[18].mxu0 %vm131_vm3, %v716_v12  ;;  %v115_v12 = vld [vmem:[%s6335_s0 + $0xb1] sm:$0xff] }
  0xb5   :  { %942 = vmatprep.mubr.f32.mxu0 %v6347_v0  ;;  %3644 = vmatmul.mubr.msk.f32.gmra.mrb[34].mxu1 %vm131_vm3, %v115_v12 }
  0xb6   :  { %383 = vmatprep.mubr.f32.mxu1 %v6347_v0 }
  0xb8   :  { %3697 = vmatmul.mubr.msk.f32.gmra.mrb[20].mxu0 %vm131_vm3, %v717_v13  ;;  %v1085_v13 = vld [vmem:[%s6335_s0 + $0x6b] sm:$0xff] }
  0xb9   :  { %948 = vmatprep.mubr.f32.mxu0 %v6347_v0 }
  0xbc   :  { %3698 = vmatmul.mubr.msk.f32.gmra.mrb[22].mxu0 %vm131_vm3, %v718_v14  ;;  %v116_v14 = vld [vmem:[%s6335_s0 + $0xc1] sm:$0xff] }
  0xbd   :  { %954 = vmatprep.mubr.f32.mxu0 %v6347_v0  ;;  %3645 = vmatmul.mubr.msk.f32.gmra.mrb[36].mxu1 %vm131_vm3, %v116_v14 }
  0xbe   :  { %389 = vmatprep.mubr.f32.mxu1 %v6347_v0 }
  0xc0   :  { %3699 = vmatmul.mubr.msk.f32.gmra.mrb[24].mxu0 %vm131_vm3, %v719_v15  ;;  %v1086_v15 = vld [vmem:[%s6335_s0 + $0x73] sm:$0xff] }
  0xc1   :  { %960 = vmatprep.mubr.f32.mxu0 %v6347_v0 }
  0xc4   :  { %3700 = vmatmul.mubr.msk.f32.gmra.mrb[26].mxu0 %vm131_vm3, %v720_v16  ;;  %v117_v16 = vld [vmem:[%s6335_s0 + $0xc9] sm:$0xff] }
  0xc5   :  { %966 = vmatprep.mubr.f32.mxu0 %v6347_v0  ;;  %3646 = vmatmul.mubr.msk.f32.gmra.mrb[38].mxu1 %vm131_vm3, %v117_v16  ;;  %v2119_v16 = vld [vmem:[#allocation4 + $0xb8] sm:$0xff] }
  0xc6   :  { %395 = vmatprep.mubr.f32.mxu1 %v6347_v0 }
  0xc8   :  { %3701 = vmatmul.mubr.msk.f32.gmra.mrb[28].mxu0 %vm131_vm3, %v721_v19  ;;  %v1088_v19 = vld [vmem:[%s6335_s0 + $0x8b] sm:$0xff] }
  0xc9   :  { %972 = vmatprep.mubr.f32.mxu0 %v6347_v0  ;;  %3647 = vmatmul.mubr.msk.f32.gmra.mrb[40].mxu1 %vm131_vm3, %v118_v18 }
  0xca   :  { %401 = vmatprep.mubr.f32.mxu1 %v6347_v0 }
  0xcc   :  { %3702 = vmatmul.mubr.msk.f32.gmra.mrb[30].mxu0 %vm131_vm3, %v722_v26  ;;  %v2113_v26 = vld [vmem:[#allocation4 + $0x88] sm:$0xff] }
  0xcd   :  { %978 = vmatprep.mubr.f32.mxu0 %v6347_v0  ;;  %3648 = vmatmul.mubr.msk.f32.gmra.mrb[42].mxu1 %vm131_vm3, %v119_v20  ;;  %v4393_v28 = vpack.c.bf16 %v2113_v26, %v2112_v25  ;;  %v2120_v20 = vld [vmem:[#allocation4 + $0xc0] sm:$0xff]  ;;  %v2122_v25 = vld [vmem:[#allocation4 + $0xd0] sm:$0xff]  ;;  %v2123_v26 = vld [vmem:[#allocation4 + $0xd8] sm:$0xff] }
  0xce   :  { %407 = vmatprep.mubr.f32.mxu1 %v6347_v0 }
  0xcf   :  { %4394 = vmatprep.subr.bf16.mxu1 %v4393_v28 }
  0xd0   :  { %3703 = vmatmul.mubr.msk.f32.gmra.mrb[32].mxu0 %vm131_vm3, %v723_v31  ;;  %4396 = vmatpush3.bf16.msra.mxu1 %v4393_v28  ;;  %v1094_v31 = vld [vmem:[%s6335_s0 + $0xcb] sm:$0xff] }
  0xd1   :  { %984 = vmatprep.mubr.f32.mxu0 %v6347_v0  ;;  %3649 = vmatmul.mubr.msk.f32.gmra.mrb[44].mxu1 %vm131_vm3, %v120_v22 }
  0xd2   :  { %413 = vmatprep.mubr.f32.mxu1 %v6347_v0 }
  0xd4   :  { %3704 = vmatmul.mubr.msk.f32.gmra.mrb[34].mxu0 %vm131_vm3, %v724_v33  ;;  %v1096_v33 = vld [vmem:[%s6335_s0 + $0xe3] sm:$0xff] }
  0xd5   :  { %990 = vmatprep.mubr.f32.mxu0 %v6347_v0  ;;  %3650 = vmatmul.mubr.msk.f32.gmra.mrb[46].mxu1 %vm131_vm3, %v121_v24 }
  0xd8   :  { %3705 = vmatmul.mubr.msk.f32.gmra.mrb[36].mxu0 %vm131_vm3, %v725_v35  ;;  %v1098_v35 = vld [vmem:[%s6335_s0 + $0xf3] sm:$0xff] }
  0xd9   :  { %996 = vmatprep.mubr.f32.mxu0 %v6347_v0 }
  0xdc   :  { %3706 = vmatmul.mubr.msk.f32.gmra.mrb[38].mxu0 %vm131_vm3, %v726_v37  ;;  %v1444_v37 = vld [vmem:[%s6335_s0 + $0xc] sm:$0xff] }
  0xdd   :  { %1002 = vmatprep.mubr.f32.mxu0 %v6347_v0 }
  0xe0   :  { %3707 = vmatmul.mubr.msk.f32.gmra.mrb[40].mxu0 %vm131_vm3, %v727_v39  ;;  %v1446_v39 = vld [vmem:[%s6335_s0 + $0x24] sm:$0xff] }
  0xe1   :  { %1008 = vmatprep.mubr.f32.mxu0 %v6347_v0 }
  0xe4   :  { %3708 = vmatmul.mubr.msk.f32.gmra.mrb[42].mxu0 %vm131_vm3, %v728_v41  ;;  %v1448_v41 = vld [vmem:[%s6335_s0 + $0x34] sm:$0xff] }
  0xe5   :  { %1014 = vmatprep.mubr.f32.mxu0 %v6347_v0 }
  0xe8   :  { %3709 = vmatmul.mubr.msk.f32.gmra.mrb[44].mxu0 %vm131_vm3, %v729_v43  ;;  %v1450_v43 = vld [vmem:[%s6335_s0 + $0x4c] sm:$0xff] }
  0xe9   :  { %1020 = vmatprep.mubr.f32.mxu0 %v6347_v0 }
  0xec   :  { %3710 = vmatmul.mubr.msk.f32.gmra.mrb[46].mxu0 %vm131_vm3, %v730_v45  ;;  %v1452_v45 = vld [vmem:[%s6335_s0 + $0x64] sm:$0xff] }
  0xed   :  { %1250 = vmatprep.mubr.f32.mxu0 %v6347_v0 }
  0xf0   :  { %3721 = vmatmul.mubr.msk.f32.vlgmr.msra.gmra.mrb[0].mxu0 %vm131_vm3, %v1075_v51  ;;  %v1458_v51 = vld [vmem:[%s6335_s0 + $0xa4] sm:$0xff] }
  0xf1   :  { %4386 = vmatpush1.bf16.msra.mxu0 %v4385_v52  ;;  %1256 = vmatprep.mubr.f32.mxu0 %v6347_v0  ;;  %v1459_v52 = vld [vmem:[%s6335_s0 + $0xac] sm:$0xff] }
  0xf2   :  { %4389 = vmatprep.subr.msk.bf16.mxu0 %vm5044_vm2, %v4387_v54  ;;  %v1461_v54 = vld [vmem:[%s6335_s0 + $0xc4] sm:$0xff] }
  0xf4   :  { %3722 = vmatmul.mubr.msk.f32.gmra.mrb[2].mxu0 %vm131_vm3, %v1076_v57  ;;  %v1464_v57 = vld [vmem:[%s6335_s0 + $0xe4] sm:$0xff] }
  0xf5   :  { %1262 = vmatprep.mubr.f32.mxu0 %v6347_v0  ;;  %4392 = vmatpush1.bf16.msk.msra.mxu0 %vm5044_vm2, %v4390_v58 }
  0xf8   :  { %3723 = vmatmul.mubr.msk.f32.gmra.mrb[4].mxu0 %vm131_vm3, %v1077_v60  ;;  %v1465_v60 = vld [vmem:[%s6335_s0 + $0xec] sm:$0xff] }
  0xf9   :  { %1268 = vmatprep.mubr.f32.mxu0 %v6347_v0 }
  0xfc   :  { %3724 = vmatmul.mubr.msk.f32.gmra.mrb[6].mxu0 %vm131_vm3, %v1078_v62 }
  0xfd   :  { %1274 = vmatprep.mubr.f32.mxu0 %v6347_v0 }
 0x100   :  { %3725 = vmatmul.mubr.msk.f32.gmra.mrb[8].mxu0 %vm131_vm3, %v1079_v63 }
 0x101   :  { %1280 = vmatprep.mubr.f32.mxu0 %v6347_v0 }
 0x104   :  { %3726 = vmatmul.mubr.msk.f32.gmra.mrb[10].mxu0 %vm131_vm3, %v1080_v2  ;;  %v2114_v2 = vld [vmem:[#allocation4 + $0x90] sm:$0xff] }
 0x105   :  { %1286 = vmatprep.mubr.f32.mxu0 %v6347_v0 }
 0x108   :  { %3727 = vmatmul.mubr.msk.f32.gmra.mrb[12].mxu0 %vm131_vm3, %v1081_v4  ;;  %v4397_v4 = vpack.c.bf16 %v2115_v3, %v2114_v2  ;;  %v2046_v3 = vld [vmem:[#allocation4] sm:$0xff] }
 0x109   :  { %1292 = vmatprep.mubr.f32.mxu0 %v6347_v0 }
 0x10a   :  { %4398 = vmatprep.subr.bf16.mxu1 %v4397_v4 }
 0x10b   :  { %4400 = vmatpush3.bf16.msra.mxu1 %v4397_v4  ;;  %v2047_v4 = vld [vmem:[#allocation4 + $0x8] sm:$0xff] }
 0x10c   :  { %3728 = vmatmul.mubr.msk.f32.gmra.mrb[14].mxu0 %vm131_vm3, %v1082_v6 }
 0x10d   :  { %1298 = vmatprep.mubr.f32.mxu0 %v6347_v0 }
 0x110   :  { %3729 = vmatmul.mubr.msk.f32.gmra.mrb[16].mxu0 %vm131_vm3, %v1083_v8  ;;  %v2116_v8 = vld [vmem:[#allocation4 + $0xa0] sm:$0xff] }
 0x111   :  { %1304 = vmatprep.mubr.f32.mxu0 %v6347_v0  ;;  %v4401_v12 = vpack.c.bf16 %v2117_v10, %v2116_v8  ;;  %v5856_v10 = vpack.c.bf16 %v2047_v4, %v2046_v3 }
 0x113   :  { %4402 = vmatprep.subr.bf16.mxu1 %v4401_v12 }
 0x114   :  { %3730 = vmatmul.mubr.msk.f32.gmra.mrb[18].mxu0 %vm131_vm3, %v1084_v11  ;;  %4404 = vmatpush3.bf16.msra.mxu1 %v4401_v12 }
 0x115   :  { %1310 = vmatprep.mubr.f32.mxu0 %v6347_v0 }
 0x118   :  { %3731 = vmatmul.mubr.msk.f32.gmra.mrb[20].mxu0 %vm131_vm3, %v1085_v13 }
 0x119   :  { %1316 = vmatprep.mubr.f32.mxu0 %v6347_v0 }
 0x11a   :  { %v5757_v58 = vpop.f32.mrb[0].mxu1 }
 0x11b   :  { %v5759_v59 = vpop.f32.mrb[1].mxu1 }
 0x11c   :  { %3732 = vmatmul.mubr.msk.f32.gmra.mrb[22].mxu0 %vm131_vm3, %v1086_v15  ;;  %v2118_v15 = vld [vmem:[#allocation4 + $0xb0] sm:$0xff] }
 0x11d   :  { %1322 = vmatprep.mubr.f32.mxu0 %v6347_v0 }
 0x11e   :  { %v5766_v61 = vpop.f32.mrb[2].mxu1 }
 0x11f   :  { %v5768_v62 = vpop.f32.mrb[3].mxu1 }
 0x120   :  { %3733 = vmatmul.mubr.msk.f32.gmra.mrb[24].mxu0 %vm131_vm3, %v1087_v17  ;;  %v4405_v17 = vpack.c.bf16 %v2119_v16, %v2118_v15 }
 0x121   :  { %1328 = vmatprep.mubr.f32.mxu0 %v6347_v0 }
 0x122   :  { %v5775_v63 = vpop.f32.mrb[4].mxu1  ;;  %4406 = vmatprep.subr.bf16.mxu1 %v4405_v17 }
 0x123   :  { %v5777_v1 = vpop.f32.mrb[5].mxu1  ;;  %4408 = vmatpush3.bf16.msra.mxu1 %v4405_v17 }
 0x124   :  { %3734 = vmatmul.mubr.msk.f32.gmra.mrb[26].mxu0 %vm131_vm3, %v1088_v19 }
 0x125   :  { %1334 = vmatprep.mubr.f32.mxu0 %v6347_v0 }
 0x128   :  { %3735 = vmatmul.mubr.msk.f32.gmra.mrb[28].mxu0 %vm131_vm3, %v1089_v21  ;;  %v5780_v5 = vpop.f32.mrb[6].mxu1  ;;  %v2121_v21 = vld [vmem:[#allocation4 + $0xc8] sm:$0xff] }
 0x129   :  { %1340 = vmatprep.mubr.f32.mxu0 %v6347_v0  ;;  %v5782_v6 = vpop.f32.mrb[7].mxu1  ;;  %v4409_v22 = vpack.c.bf16 %v2121_v21, %v2120_v20  ;;  %v1813_v20 = vlaneseq }
 0x12b   :  { %4410 = vmatprep.subr.bf16.mxu1 %v4409_v22  ;;  %v1814_v21 = vshrl.u32 %v1813_v20, 7 }
 0x12c   :  { %3736 = vmatmul.mubr.msk.f32.gmra.mrb[30].mxu0 %vm131_vm3, %v1090_v23  ;;  %4412 = vmatpush3.bf16.msra.mxu1 %v4409_v22 }
 0x12d   :  { %1346 = vmatprep.mubr.f32.mxu0 %v6347_v0  ;;  %v1815_v22 = vsub.s32 0, %v1814_v21 }
 0x130   :  { %3737 = vmatmul.mubr.msk.f32.gmra.mrb[32].mxu0 %vm131_vm3, %v1091_v27  ;;  %v5784_v7 = vpop.f32.mrb[8].mxu1  ;;  %v4413_v27 = vpack.c.bf16 %v2123_v26, %v2122_v25  ;;  %v1811_v25 = vld [vmem:[%s6337_s2] sm:$0x3]  ;;  %v1819_v26 = vsub.s32 1, %v1814_v21 }
 0x131   :  { %1352 = vmatprep.mubr.f32.mxu0 %v6347_v0  ;;  %v5786_v11 = vpop.f32.mrb[9].mxu1 }
 0x132   :  { %4414 = vmatprep.subr.bf16.mxu1 %v4413_v27 }
 0x133   :  { %4416 = vmatpush3.bf16.msra.mxu1 %v4413_v27  ;;  %v5870_v27 = vrot.slane %v1811_v25, %v1815_v22 }
 0x134   :  { %3738 = vmatmul.mubr.msk.f32.gmra.mrb[34].mxu0 %vm131_vm3, %v1092_v29 }
 0x135   :  { %1358 = vmatprep.mubr.f32.mxu0 %v6347_v0 }
 0x138   :  { %3739 = vmatmul.mubr.msk.f32.gmra.mrb[36].mxu0 %vm131_vm3, %v1093_v30  ;;  %v5788_v13 = vpop.f32.mrb[10].mxu1  ;;  %v2124_v30 = vld [vmem:[#allocation4 + $0xe0] sm:$0xff] }
 0x139   :  { %1364 = vmatprep.mubr.f32.mxu0 %v6347_v0  ;;  %v5790_v14 = vpop.f32.mrb[11].mxu1 }
 0x13c   :  { %3740 = vmatmul.mubr.msk.f32.gmra.mrb[38].mxu0 %vm131_vm3, %v1094_v31  ;;  %v2125_v31 = vld [vmem:[#allocation4 + $0xe8] sm:$0xff] }
 0x13d   :  { %1370 = vmatprep.mubr.f32.mxu0 %v6347_v0 }
 0x140   :  { %3741 = vmatmul.mubr.msk.f32.gmra.mrb[40].mxu0 %vm131_vm3, %v1095_v32  ;;  %v5792_v18 = vpop.f32.mrb[12].mxu1  ;;  %v4417_v32 = vpack.c.bf16 %v2125_v31, %v2124_v30  ;;  %v5872_v31 = vrot.slane %v1811_v25, %v1819_v26 }
 0x141   :  { %1376 = vmatprep.mubr.f32.mxu0 %v6347_v0  ;;  %v5794_v19 = vpop.f32.mrb[13].mxu1 }
 0x142   :  { %4418 = vmatprep.subr.bf16.mxu1 %v4417_v32 }
 0x143   :  { %4420 = vmatpush3.bf16.msra.mxu1 %v4417_v32 }
 0x144   :  { %3742 = vmatmul.mubr.msk.f32.gmra.mrb[42].mxu0 %vm131_vm3, %v1096_v33 }
 0x145   :  { %1382 = vmatprep.mubr.f32.mxu0 %v6347_v0 }
 0x148   :  { %3743 = vmatmul.mubr.msk.f32.gmra.mrb[44].mxu0 %vm131_vm3, %v1097_v34  ;;  %v5796_v23 = vpop.f32.mrb[14].mxu1 }
 0x149   :  { %1388 = vmatprep.mubr.f32.mxu0 %v6347_v0  ;;  %v5798_v24 = vpop.f32.mrb[15].mxu1 }
 0x14c   :  { %3744 = vmatmul.mubr.msk.f32.gmra.mrb[46].mxu0 %vm131_vm3, %v1098_v35  ;;  %v5800_v28 = vpop.f32.mrb[16].mxu1  ;;  %v2126_v35 = vld [vmem:[#allocation4 + $0xf0] sm:$0xff] }
 0x14d   :  { %1618 = vmatprep.mubr.f32.mxu0 %v6347_v0  ;;  %v5802_v29 = vpop.f32.mrb[17].mxu1 }
 0x150   :  { %3755 = vmatmul.mubr.msk.f32.vlgmr.msra.gmra.mrb[0].mxu0 %vm131_vm3, %v1443_v36  ;;  %v2127_v36 = vld [vmem:[#allocation4 + $0xf8] sm:$0xff] }
 0x151   :  { %1624 = vmatprep.mubr.f32.mxu0 %v6347_v0 }
 0x154   :  { %3756 = vmatmul.mubr.msk.f32.gmra.mrb[2].mxu0 %vm131_vm3, %v1444_v37  ;;  %v4421_v37 = vpack.c.bf16 %v2127_v36, %v2126_v35 }
 0x155   :  { %1630 = vmatprep.mubr.f32.mxu0 %v6347_v0 }
 0x156   :  { %4422 = vmatprep.subr.bf16.mxu1 %v4421_v37 }
 0x157   :  { %4424 = vmatpush3.bf16.msra.mxu1 %v4421_v37 }
 0x158   :  { %3757 = vmatmul.mubr.msk.f32.gmra.mrb[4].mxu0 %vm131_vm3, %v1445_v38  ;;  %4426 = vmatprep.subr.bf16.mxu1 %v5856_v10 }
 0x159   :  { %1636 = vmatprep.mubr.f32.mxu0 %v6347_v0 }
 0x15c   :  { %3758 = vmatmul.mubr.msk.f32.gmra.mrb[6].mxu0 %vm131_vm3, %v1446_v39 }
 0x15d   :  { %1642 = vmatprep.mubr.f32.mxu0 %v6347_v0 }
 0x160   :  { %3759 = vmatmul.mubr.msk.f32.gmra.mrb[8].mxu0 %vm131_vm3, %v1447_v40 }
 0x161   :  { %1648 = vmatprep.mubr.f32.mxu0 %v6347_v0 }
 0x164   :  { %3760 = vmatmul.mubr.msk.f32.gmra.mrb[10].mxu0 %vm131_vm3, %v1448_v41 }
 0x165   :  { %1654 = vmatprep.mubr.f32.mxu0 %v6347_v0 }
 0x166   :  { %v5804_v33 = vpop.f32.mrb[18].mxu1 }
 0x167   :  { %v5806_v34 = vpop.f32.mrb[19].mxu1 }
 0x168   :  { %3761 = vmatmul.mubr.msk.f32.gmra.mrb[12].mxu0 %vm131_vm3, %v1449_v42 }
 0x169   :  { %1660 = vmatprep.mubr.f32.mxu0 %v6347_v0 }
 0x16a   :  { %v5808_v38 = vpop.f32.mrb[20].mxu1 }
 0x16b   :  { %v5810_v39 = vpop.f32.mrb[21].mxu1 }
 0x16c   :  { %3762 = vmatmul.mubr.msk.f32.gmra.mrb[14].mxu0 %vm131_vm3, %v1450_v43 }
 0x16d   :  { %1666 = vmatprep.mubr.f32.mxu0 %v6347_v0 }
 0x16e   :  { %v5812_v40 = vpop.f32.mrb[22].mxu1 }
 0x16f   :  { %v5814_v41 = vpop.f32.mrb[23].mxu1 }
 0x170   :  { %3763 = vmatmul.mubr.msk.f32.gmra.mrb[16].mxu0 %vm131_vm3, %v1451_v44 }
 0x171   :  { %1672 = vmatprep.mubr.f32.mxu0 %v6347_v0 }
 0x172   :  { %v5816_v42 = vpop.f32.mrb[24].mxu1 }
 0x173   :  { %v5818_v43 = vpop.f32.mrb[25].mxu1 }
 0x174   :  { %3764 = vmatmul.mubr.msk.f32.gmra.mrb[18].mxu0 %vm131_vm3, %v1452_v45 }
 0x175   :  { %1678 = vmatprep.mubr.f32.mxu0 %v6347_v0 }
 0x176   :  { %v5820_v44 = vpop.f32.mrb[26].mxu1 }
 0x177   :  { %v5822_v45 = vpop.f32.mrb[27].mxu1 }
 0x178   :  { %3765 = vmatmul.mubr.msk.f32.gmra.mrb[20].mxu0 %vm131_vm3, %v1453_v46 }
 0x179   :  { %1684 = vmatprep.mubr.f32.mxu0 %v6347_v0 }
 0x17a   :  { %v5824_v46 = vpop.f32.mrb[28].mxu1 }
 0x17c   :  { %3766 = vmatmul.mubr.msk.f32.gmra.mrb[22].mxu0 %vm131_vm3, %v1454_v47  ;;  %v5826_v47 = vpop.f32.mrb[29].mxu1 }
 0x17d   :  { %1690 = vmatprep.mubr.f32.mxu0 %v6347_v0 }
 0x180   :  { %3767 = vmatmul.mubr.msk.f32.gmra.mrb[24].mxu0 %vm131_vm3, %v1455_v48  ;;  %v5828_v48 = vpop.f32.mrb[30].mxu1 }
 0x181   :  { %1696 = vmatprep.mubr.f32.mxu0 %v6347_v0 }
 0x184   :  { %3768 = vmatmul.mubr.msk.f32.gmra.mrb[26].mxu0 %vm131_vm3, %v1456_v49  ;;  %v5830_v49 = vpop.f32.mrb[31].mxu1 }
 0x185   :  { %1702 = vmatprep.mubr.f32.mxu0 %v6347_v0 }
 0x188   :  { %3769 = vmatmul.mubr.msk.f32.gmra.mrb[28].mxu0 %vm131_vm3, %v1457_v50  ;;  %v5832_v50 = vpop.f32.mrb[32].mxu1 }
 0x189   :  { %1708 = vmatprep.mubr.f32.mxu0 %v6347_v0 }
 0x18c   :  { %3770 = vmatmul.mubr.msk.f32.gmra.mrb[30].mxu0 %vm131_vm3, %v1458_v51  ;;  %v5834_v51 = vpop.f32.mrb[33].mxu1 }
 0x18d   :  { %1714 = vmatprep.mubr.f32.mxu0 %v6347_v0 }
 0x190   :  { %3771 = vmatmul.mubr.msk.f32.gmra.mrb[32].mxu0 %vm131_vm3, %v1459_v52  ;;  %v5836_v52 = vpop.f32.mrb[34].mxu1 }
 0x191   :  { %1720 = vmatprep.mubr.f32.mxu0 %v6347_v0 }
 0x194   :  { %3772 = vmatmul.mubr.msk.f32.gmra.mrb[34].mxu0 %vm131_vm3, %v1460_v53  ;;  %v5838_v53 = vpop.f32.mrb[35].mxu1 }
 0x195   :  { %1726 = vmatprep.mubr.f32.mxu0 %v6347_v0 }
 0x198   :  { %3773 = vmatmul.mubr.msk.f32.gmra.mrb[36].mxu0 %vm131_vm3, %v1461_v54  ;;  %v5840_v54 = vpop.f32.mrb[36].mxu1 }
 0x199   :  { %1732 = vmatprep.mubr.f32.mxu0 %v6347_v0 }
 0x19c   :  { %3774 = vmatmul.mubr.msk.f32.gmra.mrb[38].mxu0 %vm131_vm3, %v1462_v55  ;;  %v5842_v55 = vpop.f32.mrb[37].mxu1 }
 0x19d   :  { %1738 = vmatprep.mubr.f32.mxu0 %v6347_v0 }
 0x1a0   :  { %3775 = vmatmul.mubr.msk.f32.gmra.mrb[40].mxu0 %vm131_vm3, %v1463_v56  ;;  %v5844_v56 = vpop.f32.mrb[38].mxu1 }
 0x1a1   :  { %1744 = vmatprep.mubr.f32.mxu0 %v6347_v0 }
 0x1a4   :  { %3776 = vmatmul.mubr.msk.f32.gmra.mrb[42].mxu0 %vm131_vm3, %v1464_v57  ;;  %v5846_v57 = vpop.f32.mrb[39].mxu1 }
 0x1a5   :  { %1750 = vmatprep.mubr.f32.mxu0 %v6347_v0 }
 0x1a8   :  { %3777 = vmatmul.mubr.msk.f32.gmra.mrb[44].mxu0 %vm131_vm3, %v1465_v60  ;;  %v5848_v60 = vpop.f32.mrb[40].mxu1 }
 0x1a9   :  { %1756 = vmatprep.mubr.f32.mxu0 %v6347_v0 }
 0x1ac   :  { %3778 = vmatmul.mubr.msk.f32.gmra.mrb[46].mxu0 %vm131_vm3, %v1466_v9  ;;  %v5850_v9 = vpop.f32.mrb[41].mxu1 }
 0x1ad   :  { %v5852_v2 = vpop.f32.mrb[42].mxu1 }
 0x1ae   :  { %v5854_v8 = vpop.f32.mrb[43].mxu1 }
 0x1af   :  { %v5859_v12 = vpop.f32.mrb[44].mxu1 }
 0x1b0   :  { %v5861_v15 = vpop.f32.mrb[45].mxu1 }
 0x1b1   :  { %v5863_v16 = vpop.f32.mrb[46].mxu1 }
 0x1b2   :  { %6351 = vst [vmem:[#allocation10_spill] sm:$0xff] %v5863_v16  ;;  %v5865_v17 = vpop.f32.mrb[47].mxu1 }
 0x1b3   :  { %6352 = vst [vmem:[#allocation11_spill] sm:$0xff] %v5865_v17 }
 0x223   :  { %v1620_v30 = vpop.f32.mrb[0].mxu0 }
 0x224   :  { %v4649_v32 = vadd.f32 %v1620_v30, %v5757_v58  ;;  %v1622_v35 = vpop.f32.mrb[1].mxu0 }
 0x225   :  { %v4650_v36 = vadd.f32 %v1622_v35, %v5759_v59 }
 0x226   :  { %v1823_v37 = vadd.f32 %v4649_v32, %v5870_v27 }
 0x227   :  { %v1824_v3 = vadd.f32 %v4650_v36, %v5872_v31  ;;  %v1626_v4 = vpop.f32.mrb[2].mxu0 }
 0x228   :  { %v1871_v20 = vmax.f32 %v1823_v37, 0.0  ;;  %v4651_v0 = vadd.f32 %v1626_v4, %v5766_v61  ;;  %v1628_v17 = vpop.f32.mrb[3].mxu0 }
 0x229   :  { %v1872_v21 = vmax.f32 %v1824_v3, 0.0  ;;  %v4652_v22 = vadd.f32 %v1628_v17, %v5768_v62 }
 0x22a   :  { %v1825_v25 = vadd.f32 %v4651_v0, %v5870_v27 }
 0x22b   :  { %v1919_v26 = vmax.f32 %v1871_v20, %v1872_v21  ;;  %v1826_v58 = vadd.f32 %v4652_v22, %v5872_v31  ;;  %v1632_v30 = vpop.f32.mrb[4].mxu0 }
 0x22c   :  { %v1873_v16 = vmax.f32 %v1825_v25, 0.0  ;;  %v4653_v59 = vadd.f32 %v1632_v30, %v5775_v63  ;;  %v1634_v32 = vpop.f32.mrb[5].mxu0 }
 0x22d   :  { %1943 = vst [vmem:[#allocation2] sm:$0xff] %v1919_v26  ;;  %v1874_v35 = vmax.f32 %v1826_v58, 0.0  ;;  %v4654_v36 = vadd.f32 %v1634_v32, %v5777_v1 }
 0x22e   :  { %v1827_v61 = vadd.f32 %v4653_v59, %v5870_v27 }
 0x22f   :  { %v1920_v37 = vmax.f32 %v1873_v16, %v1874_v35  ;;  %v1828_v3 = vadd.f32 %v4654_v36, %v5872_v31  ;;  %v1638_v62 = vpop.f32.mrb[6].mxu0 }
 0x230   :  { %v1875_v17 = vmax.f32 %v1827_v61, 0.0  ;;  %v4655_v0 = vadd.f32 %v1638_v62, %v5780_v5  ;;  %v1640_v4 = vpop.f32.mrb[7].mxu0 }
 0x231   :  { %1944 = vst [vmem:[#allocation2 + $0x8] sm:$0xff] %v1920_v37  ;;  %v1876_v20 = vmax.f32 %v1828_v3, 0.0  ;;  %v4656_v21 = vadd.f32 %v1640_v4, %v5782_v6 }
 0x232   :  { %v1829_v63 = vadd.f32 %v4655_v0, %v5870_v27 }
 0x233   :  { %v1921_v22 = vmax.f32 %v1875_v17, %v1876_v20  ;;  %v1830_v25 = vadd.f32 %v4656_v21, %v5872_v31  ;;  %v1644_v1 = vpop.f32.mrb[8].mxu0 }
 0x234   :  { %v1877_v26 = vmax.f32 %v1829_v63, 0.0  ;;  %v4657_v16 = vadd.f32 %v1644_v1, %v5784_v7  ;;  %v1646_v58 = vpop.f32.mrb[9].mxu0 }
 0x235   :  { %1945 = vst [vmem:[#allocation2 + $0x10] sm:$0xff] %v1921_v22  ;;  %v1878_v30 = vmax.f32 %v1830_v25, 0.0  ;;  %v4658_v59 = vadd.f32 %v1646_v58, %v5786_v11 }
 0x236   :  { %v1831_v5 = vadd.f32 %v4657_v16, %v5870_v27 }
 0x237   :  { %v1922_v32 = vmax.f32 %v1877_v26, %v1878_v30  ;;  %v1832_v35 = vadd.f32 %v4658_v59, %v5872_v31  ;;  %v1650_v6 = vpop.f32.mrb[10].mxu0 }
 0x238   :  { %v1879_v36 = vmax.f32 %v1831_v5, 0.0  ;;  %v4659_v61 = vadd.f32 %v1650_v6, %v5788_v13  ;;  %v1652_v37 = vpop.f32.mrb[11].mxu0  ;;  %v1967_v7 = vld [vmem:[#allocation2] ss:$2 sm:$0xff]  ;;  %v1999_v17 = vld [vmem:[#allocation2 + $0x1] ss:$2 sm:$0xff] }
 0x239   :  { %1946 = vst [vmem:[#allocation2 + $0x18] sm:$0xff] %v1922_v32  ;;  %v1880_v3 = vmax.f32 %v1832_v35, 0.0  ;;  %v4660_v62 = vadd.f32 %v1652_v37, %v5790_v14  ;;  %v5899_v1 = vmax.f32 %v1967_v7, %v1999_v17 }
 0x23a   :  { %v1833_v0 = vadd.f32 %v4659_v61, %v5870_v27 }
 0x23b   :  { %v1923_v4 = vmax.f32 %v1879_v36, %v1880_v3  ;;  %v1834_v11 = vadd.f32 %v4660_v62, %v5872_v31  ;;  %v1656_v20 = vpop.f32.mrb[12].mxu0  ;;  %v2079_v6 = vrot.slane %v5899_v1, 1 }
 0x23c   :  { %v1881_v21 = vmax.f32 %v1833_v0, 0.0  ;;  %v4661_v63 = vadd.f32 %v1656_v20, %v5792_v18  ;;  %v1658_v22 = vpop.f32.mrb[13].mxu0  ;;  %v1969_v25 = vld [vmem:[#allocation2 + $0x10] ss:$2 sm:$0xf] }
 0x23d   :  { %1947 = vst [vmem:[#allocation2 + $0x20] sm:$0xff] %v1923_v4  ;;  %v1882_v13 = vmax.f32 %v1834_v11, 0.0  ;;  %v4662_v26 = vadd.f32 %v1658_v22, %v5794_v19  ;;  %v2001_v14 = vld [vmem:[#allocation2 + $0x11] ss:$2 sm:$0xf] }
 0x23e   :  { %v1835_v16 = vadd.f32 %v4661_v63, %v5870_v27  ;;  %v5903_v58 = vmax.f32 %v1969_v25, %v2001_v14 }
 0x23f   :  { %v1924_v30 = vmax.f32 %v1881_v21, %v1882_v13  ;;  %v1836_v59 = vadd.f32 %v4662_v26, %v5872_v31  ;;  %v1662_v5 = vpop.f32.mrb[14].mxu0 }
 0x240   :  { %v1883_v32 = vmax.f32 %v1835_v16, 0.0  ;;  %v4663_v18 = vadd.f32 %v1662_v5, %v5796_v23  ;;  %v1664_v35 = vpop.f32.mrb[15].mxu0  ;;  %v2080_v36 = vrot.slane %v5903_v58, 1 }
 0x241   :  { %1948 = vst [vmem:[#allocation2 + $0x28] sm:$0xff] %v1924_v30  ;;  %v1884_v19 = vmax.f32 %v1836_v59, 0.0  ;;  %v4664_v61 = vadd.f32 %v1664_v35, %v5798_v24  ;;  %v2048_v35 = vld [vmem:[#allocation4 + $0x10] sm:$0xff] }
 0x242   :  { %v1837_v37 = vadd.f32 %v4663_v18, %v5870_v27  ;;  %v2081_v3 = vsel %vm2078_vm4, %v2079_v6, %v2080_v36  ;;  %v2049_v6 = vld [vmem:[#allocation4 + $0x18] sm:$0xff] }
 0x243   :  { %v1925_v62 = vmax.f32 %v1883_v32, %v1884_v19  ;;  %v1838_v7 = vadd.f32 %v4664_v61, %v5872_v31  ;;  %4009 = vmatprep.mubr.f32.mxu1 %v2081_v3  ;;  %v1668_v17 = vpop.f32.mrb[16].mxu0 }
 0x244   :  { %v1885_v0 = vmax.f32 %v1837_v37, 0.0  ;;  %v4665_v23 = vadd.f32 %v1668_v17, %v5800_v28  ;;  %v1670_v4 = vpop.f32.mrb[17].mxu0  ;;  %v1971_v21 = vld [vmem:[#allocation2 + $0x18] ss:$2 sm:$0xff]  ;;  %v2003_v63 = vld [vmem:[#allocation2 + $0x19] ss:$2 sm:$0xff] }
 0x245   :  { %1949 = vst [vmem:[#allocation2 + $0x30] sm:$0xff] %v1925_v62  ;;  %v1886_v11 = vmax.f32 %v1838_v7, 0.0  ;;  %v4666_v20 = vadd.f32 %v1670_v4, %v5802_v29  ;;  %v5918_v59 = vmax.f32 %v1971_v21, %v2003_v63 }
 0x246   :  { %v1839_v24 = vadd.f32 %v4665_v23, %v5870_v27 }
 0x247   :  { %v1926_v22 = vmax.f32 %v1885_v0, %v1886_v11  ;;  %v1840_v25 = vadd.f32 %v4666_v20, %v5872_v31  ;;  %v1674_v13 = vpop.f32.mrb[18].mxu0  ;;  %v2082_v62 = vrot.slane %v5918_v59, 1  ;;  %v4429_v0 = vpack.c.bf16 %v2049_v6, %v2048_v35  ;;  %v2050_v11 = vld [vmem:[#allocation4 + $0x20] sm:$0xff]  ;;  %v2051_v20 = vld [vmem:[#allocation4 + $0x28] sm:$0xff] }
 0x248   :  { %v1887_v26 = vmax.f32 %v1839_v24, 0.0  ;;  %v4667_v14 = vadd.f32 %v1674_v13, %v5804_v33  ;;  %v1676_v16 = vpop.f32.mrb[19].mxu0  ;;  %v1973_v30 = vld [vmem:[#allocation2 + $0x28] ss:$2 sm:$0xf] }
 0x249   :  { %1950 = vst [vmem:[#allocation2 + $0x38] sm:$0xff] %v1926_v22  ;;  %v1888_v28 = vmax.f32 %v1840_v25, 0.0  ;;  %v4668_v5 = vadd.f32 %v1676_v16, %v5806_v34  ;;  %v2005_v29 = vld [vmem:[#allocation2 + $0x29] ss:$2 sm:$0xf]  ;;  %v4433_v16 = vpack.c.bf16 %v2051_v20, %v2050_v11 }
 0x24a   :  { %v1841_v32 = vadd.f32 %v4667_v14, %v5870_v27  ;;  %v5922_v18 = vmax.f32 %v1973_v30, %v2005_v29 }
 0x24b   :  { %v1927_v36 = vmax.f32 %v1887_v26, %v1888_v28  ;;  %v1842_v19 = vadd.f32 %v4668_v5, %v5872_v31  ;;  %v1680_v61 = vpop.f32.mrb[20].mxu0  ;;  %v2052_v28 = vld [vmem:[#allocation4 + $0x30] sm:$0xff]  ;;  %v2053_v5 = vld [vmem:[#allocation4 + $0x38] sm:$0xff] }
 0x24c   :  { %v1889_v33 = vmax.f32 %v1841_v32, 0.0  ;;  %v4669_v37 = vadd.f32 %v1680_v61, %v5808_v38  ;;  %v1682_v3 = vpop.f32.mrb[21].mxu0  ;;  %v2083_v7 = vrot.slane %v5922_v18, 1 }
 0x24d   :  { %1951 = vst [vmem:[#allocation2 + $0x40] sm:$0xff] %v1927_v36  ;;  %v1890_v34 = vmax.f32 %v1842_v19, 0.0  ;;  %v4670_v17 = vadd.f32 %v1682_v3, %v5810_v39 }
 0x24e   :  { %v1843_v23 = vadd.f32 %v4669_v37, %v5870_v27  ;;  %v2084_v4 = vsel %vm2078_vm4, %v2082_v62, %v2083_v7  ;;  %v4437_v37 = vpack.c.bf16 %v2053_v5, %v2052_v28  ;;  %v2054_v7 = vld [vmem:[#allocation4 + $0x40] sm:$0xff] }
 0x24f   :  { %v1928_v21 = vmax.f32 %v1889_v33, %v1890_v34  ;;  %v1844_v63 = vadd.f32 %v4670_v17, %v5872_v31  ;;  %4010 = vmatmul.mubr.f32.vlgmr.msra.gmra.mrb[48].mxu1 %v2084_v4  ;;  %v1686_v38 = vpop.f32.mrb[22].mxu0  ;;  %v2055_v34 = vld [vmem:[#allocation4 + $0x48] sm:$0xff] }
 0x250   :  { %v1891_v24 = vmax.f32 %v1843_v23, 0.0  ;;  %v4671_v22 = vadd.f32 %v1686_v38, %v5812_v40  ;;  %v1688_v25 = vpop.f32.mrb[23].mxu0  ;;  %4428 = vmatpush3.bf16.msra.mxu1 %v5856_v10  ;;  %v1975_v26 = vld [vmem:[#allocation2 + $0x30] ss:$2 sm:$0xff]  ;;  %v2007_v14 = vld [vmem:[#allocation2 + $0x31] ss:$2 sm:$0xff]  ;;  %v4441_v38 = vpack.c.bf16 %v2055_v34, %v2054_v7 }
 0x251   :  { %1952 = vst [vmem:[#allocation2 + $0x48] sm:$0xff] %v1928_v21  ;;  %v1892_v39 = vmax.f32 %v1844_v63, 0.0  ;;  %v4672_v13 = vadd.f32 %v1688_v25, %v5814_v41  ;;  %4430 = vmatprep.subr.bf16.mxu1 %v4429_v0  ;;  %v5938_v19 = vmax.f32 %v1975_v26, %v2007_v14  ;;  %v2056_v25 = vld [vmem:[#allocation4 + $0x50] sm:$0xff] }
 0x252   :  { %v1845_v30 = vadd.f32 %v4671_v22, %v5870_v27 }
 0x253   :  { %v1929_v29 = vmax.f32 %v1891_v24, %v1892_v39  ;;  %v1846_v32 = vadd.f32 %v4672_v13, %v5872_v31  ;;  %v1692_v35 = vpop.f32.mrb[24].mxu0  ;;  %v2085_v20 = vrot.slane %v5938_v19, 1  ;;  %v2057_v39 = vld [vmem:[#allocation4 + $0x58] sm:$0xff] }
 0x254   :  { %v1893_v40 = vmax.f32 %v1845_v30, 0.0  ;;  %v4673_v6 = vadd.f32 %v1692_v35, %v5816_v42  ;;  %v1694_v10 = vpop.f32.mrb[25].mxu0  ;;  %v1977_v36 = vld [vmem:[#allocation2 + $0x40] ss:$2 sm:$0xf]  ;;  %4432 = vmatpush3.bf16.msra.mxu1 %v4429_v0 }
 0x255   :  { %1953 = vst [vmem:[#allocation2 + $0x50] sm:$0xff] %v1929_v29  ;;  %v1894_v41 = vmax.f32 %v1846_v32, 0.0  ;;  %v4674_v61 = vadd.f32 %v1694_v10, %v5818_v43  ;;  %v2009_v33 = vld [vmem:[#allocation2 + $0x41] ss:$2 sm:$0xf]  ;;  %4434 = vmatprep.subr.bf16.mxu1 %v4433_v16  ;;  %v4445_v32 = vpack.c.bf16 %v2057_v39, %v2056_v25  ;;  %v2059_v10 = vld [vmem:[#allocation4 + $0x68] sm:$0xff] }
 0x256   :  { %v1847_v3 = vadd.f32 %v4673_v6, %v5870_v27  ;;  %v5942_v62 = vmax.f32 %v1977_v36, %v2009_v33  ;;  %v2058_v6 = vld [vmem:[#allocation4 + $0x60] sm:$0xff]  ;;  %v2061_v33 = vld [vmem:[#allocation4 + $0x78] sm:$0xff] }
 0x257   :  { %v1930_v17 = vmax.f32 %v1893_v40, %v1894_v41  ;;  %v1848_v42 = vadd.f32 %v4674_v61, %v5872_v31  ;;  %v1698_v23 = vpop.f32.mrb[26].mxu0  ;;  %v2060_v61 = vld [vmem:[#allocation4 + $0x70] sm:$0xff] }
 0x258   :  { %v1895_v4 = vmax.f32 %v1847_v3, 0.0  ;;  %v4675_v0 = vadd.f32 %v1698_v23, %v5820_v44  ;;  %v1700_v11 = vpop.f32.mrb[27].mxu0  ;;  %v2086_v43 = vrot.slane %v5942_v62, 1  ;;  %4436 = vmatpush3.bf16.msra.mxu1 %v4433_v16  ;;  %v4449_v23 = vpack.c.bf16 %v2059_v10, %v2058_v6 }
 0x259   :  { %1954 = vst [vmem:[#allocation2 + $0x58] sm:$0xff] %v1930_v17  ;;  %v1896_v21 = vmax.f32 %v1848_v42, 0.0  ;;  %v4676_v63 = vadd.f32 %v1700_v11, %v5822_v45  ;;  %4438 = vmatprep.subr.bf16.mxu1 %v4437_v37 }
 0x25a   :  { %v1849_v24 = vadd.f32 %v4675_v0, %v5870_v27  ;;  %v2087_v22 = vsel %vm2078_vm4, %v2085_v20, %v2086_v43  ;;  %v4453_v20 = vpack.c.bf16 %v2061_v33, %v2060_v61 }
 0x25b   :  { %v1931_v13 = vmax.f32 %v1895_v4, %v1896_v21  ;;  %v1850_v44 = vadd.f32 %v4676_v63, %v5872_v31  ;;  %4012 = vmatprep.mubr.f32.mxu1 %v2087_v22  ;;  %v1704_v26 = vpop.f32.mrb[28].mxu0 }
 0x25c   :  { %v1897_v14 = vmax.f32 %v1849_v24, 0.0  ;;  %v4677_v16 = vadd.f32 %v1704_v26, %v5824_v46  ;;  %v1706_v30 = vpop.f32.mrb[29].mxu0  ;;  %v1979_v28 = vld [vmem:[#allocation2 + $0x48] ss:$2 sm:$0xff]  ;;  %v2011_v5 = vld [vmem:[#allocation2 + $0x49] ss:$2 sm:$0xff]  ;;  %4440 = vmatpush3.bf16.msra.mxu1 %v4437_v37 }
 0x25d   :  { %1955 = vst [vmem:[#allocation2 + $0x60] sm:$0xff] %v1931_v13  ;;  %v1898_v45 = vmax.f32 %v1850_v44, 0.0  ;;  %v4678_v29 = vadd.f32 %v1706_v30, %v5826_v47  ;;  %4442 = vmatprep.subr.bf16.mxu1 %v4441_v38  ;;  %v5955_v40 = vmax.f32 %v1979_v28, %v2011_v5  ;;  %v2372_v28 = vld [vmem:[#allocation4 + $0x100] sm:$0xff]  ;;  %v2373_v5 = vld [vmem:[#allocation4 + $0x108] sm:$0xff] }
 0x25e   :  { %v1851_v35 = vadd.f32 %v4677_v16, %v5870_v27 }
 0x25f   :  { %v1932_v36 = vmax.f32 %v1897_v14, %v1898_v45  ;;  %v1852_v41 = vadd.f32 %v4678_v29, %v5872_v31  ;;  %v1710_v46 = vpop.f32.mrb[30].mxu0  ;;  %v2088_v11 = vrot.slane %v5955_v40, 1  ;;  %v2348_v63 = vrot.slane %v5955_v40, 2 }
 0x260   :  { %v1899_v3 = vmax.f32 %v1851_v35, 0.0  ;;  %v4679_v37 = vadd.f32 %v1710_v46, %v5828_v48  ;;  %v1712_v7 = vpop.f32.mrb[31].mxu0  ;;  %v1981_v34 = vld [vmem:[#allocation2 + $0x58] ss:$2 sm:$0xf]  ;;  %4444 = vmatpush3.bf16.msra.mxu1 %v4441_v38  ;;  %v2511_v38 = vrot.slane %v5955_v40, 3 }
 0x261   :  { %1956 = vst [vmem:[#allocation2 + $0x68] sm:$0xff] %v1932_v36  ;;  %v1900_v47 = vmax.f32 %v1852_v41, 0.0  ;;  %v4680_v17 = vadd.f32 %v1712_v7, %v5830_v49  ;;  %v2013_v42 = vld [vmem:[#allocation2 + $0x59] ss:$2 sm:$0xf]  ;;  %4446 = vmatprep.subr.bf16.mxu1 %v4445_v32  ;;  %v2673_v14 = vrot.slane %v5955_v40, 4 }
 0x262   :  { %v1853_v4 = vadd.f32 %v4679_v37, %v5870_v27  ;;  %v2037_v0 = vmax.f32 %v1981_v34, %v2013_v42  ;;  %v5982_v37 = vpack.c.bf16 %v2373_v5, %v2372_v28 }
 0x263   :  { %v1933_v43 = vmax.f32 %v1899_v3, %v1900_v47  ;;  %v1854_v48 = vadd.f32 %v4680_v17, %v5872_v31  ;;  %v1716_v21 = vpop.f32.mrb[32].mxu0 }
 0x264   :  { %v1901_v24 = vmax.f32 %v1853_v4, 0.0  ;;  %v4681_v49 = vadd.f32 %v1716_v21, %v5832_v50  ;;  %v1718_v22 = vpop.f32.mrb[33].mxu0  ;;  %v2089_v25 = vrot.slane %v2037_v0, 1  ;;  %4448 = vmatpush3.bf16.msra.mxu1 %v4445_v32  ;;  %v2349_v39 = vrot.slane %v2037_v0, 2 }
 0x265   :  { %1957 = vst [vmem:[#allocation2 + $0x70] sm:$0xff] %v1933_v43  ;;  %v1902_v13 = vmax.f32 %v1854_v48, 0.0  ;;  %v4682_v44 = vadd.f32 %v1718_v22, %v5834_v51  ;;  %4450 = vmatprep.subr.bf16.mxu1 %v4449_v23  ;;  %v2512_v26 = vrot.slane %v2037_v0, 3  ;;  %v2674_v45 = vrot.slane %v2037_v0, 4 }
 0x266   :  { %v1855_v16 = vadd.f32 %v4681_v49, %v5870_v27  ;;  %v2090_v30 = vsel %vm2078_vm4, %v2088_v11, %v2089_v25  ;;  %v5971_v50 = vsel %vm2338_vm5, %v2348_v63, %v2349_v39 }
 0x267   :  { %v1934_v29 = vmax.f32 %v1901_v24, %v1902_v13  ;;  %v1856_v32 = vadd.f32 %v4682_v44, %v5872_v31  ;;  %4013 = vmatmul.mubr.f32.gmra.mrb[50].mxu1 %v2090_v30  ;;  %v1722_v35 = vpop.f32.mrb[34].mxu0  ;;  %v5975_v51 = vsel %vm2501_vm6, %v2511_v38, %v2512_v26  ;;  %v5979_v61 = vsel %vm204_vm0, %v2673_v14, %v2674_v45 }
 0x268   :  { %v1903_v6 = vmax.f32 %v1855_v16, 0.0  ;;  %v4683_v10 = vadd.f32 %v1722_v35, %v5836_v52  ;;  %v1724_v36 = vpop.f32.mrb[35].mxu0  ;;  %v1983_v41 = vld [vmem:[#allocation2 + $0x60] ss:$2 sm:$0xff]  ;;  %v2015_v46 = vld [vmem:[#allocation2 + $0x61] ss:$2 sm:$0xff]  ;;  %4452 = vmatpush3.bf16.msra.mxu1 %v4449_v23 }
 0x269   :  { %1958 = vst [vmem:[#allocation2 + $0x78] sm:$0xff] %v1934_v29  ;;  %v1904_v33 = vmax.f32 %v1856_v32, 0.0  ;;  %v4684_v3 = vadd.f32 %v1724_v36, %v5838_v53  ;;  %4454 = vmatprep.subr.bf16.mxu1 %v4453_v20  ;;  %v5985_v34 = vmax.f32 %v1983_v41, %v2015_v46 }
 0x26a   :  { %v1857_v7 = vadd.f32 %v4683_v10, %v5870_v27 }
 0x26b   :  { %v1935_v47 = vmax.f32 %v1903_v6, %v1904_v33  ;;  %v1858_v52 = vadd.f32 %v4684_v3, %v5872_v31  ;;  %v1728_v17 = vpop.f32.mrb[36].mxu0  ;;  %v2091_v63 = vrot.slane %v5985_v34, 1  ;;  %v2676_v16 = vrot.slane %v5985_v34, 4 }
 0x26c   :  { %v1905_v42 = vmax.f32 %v1857_v7, 0.0  ;;  %v4685_v23 = vadd.f32 %v1728_v17, %v5840_v54  ;;  %v1730_v4 = vpop.f32.mrb[37].mxu0  ;;  %v1985_v0 = vld [vmem:[#allocation2 + $0x70] ss:$2 sm:$0xf]  ;;  %4456 = vmatpush3.bf16.msra.mxu1 %v4453_v20  ;;  %v2351_v54 = vrot.slane %v5985_v34, 2 }
 0x26d   :  { %1959 = vst [vmem:[#allocation2 + $0x80] sm:$0xff] %v1935_v47  ;;  %v1906_v11 = vmax.f32 %v1858_v52, 0.0  ;;  %v4686_v53 = vadd.f32 %v1730_v4, %v5842_v55  ;;  %v2017_v43 = vld [vmem:[#allocation2 + $0x71] ss:$2 sm:$0xf]  ;;  %4458 = vmatprep.subr.bf16.mxu1 %v5982_v37  ;;  %v2514_v20 = vrot.slane %v5985_v34, 3 }
 0x26e   :  { %v1859_v48 = vadd.f32 %v4685_v23, %v5870_v27  ;;  %v2039_v21 = vmax.f32 %v1985_v0, %v2017_v43 }
 0x26f   :  { %v1936_v38 = vmax.f32 %v1905_v42, %v1906_v11  ;;  %v1860_v24 = vadd.f32 %v4686_v53, %v5872_v31  ;;  %v1734_v49 = vpop.f32.mrb[38].mxu0 }
 0x270   :  { %v1907_v22 = vmax.f32 %v1859_v48, 0.0  ;;  %v4687_v25 = vadd.f32 %v1734_v49, %v5844_v56  ;;  %v1736_v55 = vpop.f32.mrb[39].mxu0  ;;  %v2092_v39 = vrot.slane %v2039_v21, 1  ;;  %v2352_v13 = vrot.slane %v2039_v21, 2 }
 0x271   :  { %1960 = vst [vmem:[#allocation2 + $0x88] sm:$0xff] %v1936_v38  ;;  %v1908_v44 = vmax.f32 %v1860_v24, 0.0  ;;  %v4688_v26 = vadd.f32 %v1736_v55, %v5846_v57  ;;  %v2515_v14 = vrot.slane %v2039_v21, 3  ;;  %v2677_v45 = vrot.slane %v2039_v21, 4 }
 0x272   :  { %v1861_v30 = vadd.f32 %v4687_v25, %v5870_v27  ;;  %v2093_v28 = vsel %vm2078_vm4, %v2091_v63, %v2092_v39  ;;  %v6002_v5 = vsel %vm2338_vm5, %v2351_v54, %v2352_v13 }
 0x273   :  { %v1937_v29 = vmax.f32 %v1907_v22, %v1908_v44  ;;  %v1862_v56 = vadd.f32 %v4688_v26, %v5872_v31  ;;  %4015 = vmatprep.mubr.f32.mxu1 %v2093_v28  ;;  %v1740_v32 = vpop.f32.mrb[40].mxu0  ;;  %v6006_v35 = vsel %vm2501_vm6, %v2514_v20, %v2515_v14  ;;  %v6010_v46 = vsel %vm204_vm0, %v2676_v16, %v2677_v45 }
 0x274   :  { %v1909_v57 = vmax.f32 %v1861_v30, 0.0  ;;  %v4689_v6 = vadd.f32 %v1740_v32, %v5848_v60  ;;  %v1742_v10 = vpop.f32.mrb[41].mxu0  ;;  %v1987_v36 = vld [vmem:[#allocation2 + $0x78] ss:$2 sm:$0xff]  ;;  %v2019_v41 = vld [vmem:[#allocation2 + $0x79] ss:$2 sm:$0xff] }
 0x275   :  { %1961 = vst [vmem:[#allocation2 + $0x90] sm:$0xff] %v1937_v29  ;;  %v1910_v33 = vmax.f32 %v1862_v56, 0.0  ;;  %v4690_v3 = vadd.f32 %v1742_v10, %v5850_v9  ;;  %v6014_v47 = vmax.f32 %v1987_v36, %v2019_v41  ;;  %v6353_v32 = vld [vmem:[#allocation10_spill] sm:$0xff] }
 0x276   :  { %v1863_v7 = vadd.f32 %v4689_v6, %v5870_v27 }
 0x277   :  { %v1938_v52 = vmax.f32 %v1909_v57, %v1910_v33  ;;  %v1864_v17 = vadd.f32 %v4690_v3, %v5872_v31  ;;  %v1746_v42 = vpop.f32.mrb[42].mxu0  ;;  %v2094_v21 = vrot.slane %v6014_v47, 1  ;;  %v2354_v63 = vrot.slane %v6014_v47, 2  ;;  %v6354_v33 = vld [vmem:[#allocation11_spill] sm:$0xff] }
 0x278   :  { %v1911_v23 = vmax.f32 %v1863_v7, 0.0  ;;  %v4691_v60 = vadd.f32 %v1746_v42, %v5852_v2  ;;  %v1748_v4 = vpop.f32.mrb[43].mxu0  ;;  %v1989_v0 = vld [vmem:[#allocation2 + $0x88] ss:$2 sm:$0xf]  ;;  %v2517_v2 = vrot.slane %v6014_v47, 3 }
 0x279   :  { %1962 = vst [vmem:[#allocation2 + $0x98] sm:$0xff] %v1938_v52  ;;  %v1912_v11 = vmax.f32 %v1864_v17, 0.0  ;;  %v4692_v53 = vadd.f32 %v1748_v4, %v5854_v8  ;;  %v2021_v43 = vld [vmem:[#allocation2 + $0x89] ss:$2 sm:$0xf]  ;;  %v2679_v54 = vrot.slane %v6014_v47, 4 }
 0x27a   :  { %v1865_v9 = vadd.f32 %v4691_v60, %v5870_v27  ;;  %v2041_v48 = vmax.f32 %v1989_v0, %v2021_v43 }
 0x27b   :  { %v1939_v38 = vmax.f32 %v1911_v23, %v1912_v11  ;;  %v1866_v24 = vadd.f32 %v4692_v53, %v5872_v31  ;;  %v1752_v49 = vpop.f32.mrb[44].mxu0 }
 0x27c   :  { %v1913_v20 = vmax.f32 %v1865_v9, 0.0  ;;  %v4693_v22 = vadd.f32 %v1752_v49, %v5859_v12  ;;  %v1754_v8 = vpop.f32.mrb[45].mxu0  ;;  %v2095_v25 = vrot.slane %v2041_v48, 1  ;;  %v2355_v55 = vrot.slane %v2041_v48, 2 }
 0x27d   :  { %1963 = vst [vmem:[#allocation2 + $0xa0] sm:$0xff] %v1939_v38  ;;  %v1914_v39 = vmax.f32 %v1866_v24, 0.0  ;;  %v4694_v13 = vadd.f32 %v1754_v8, %v5861_v15  ;;  %v2518_v44 = vrot.slane %v2041_v48, 3  ;;  %v2680_v26 = vrot.slane %v2041_v48, 4 }
 0x27e   :  { %v1867_v14 = vadd.f32 %v4693_v22, %v5870_v27  ;;  %v2096_v16 = vsel %vm2078_vm4, %v2094_v21, %v2095_v25  ;;  %v6030_v30 = vsel %vm2338_vm5, %v2354_v63, %v2355_v55 }
 0x27f   :  { %v1940_v28 = vmax.f32 %v1913_v20, %v1914_v39  ;;  %v1868_v45 = vadd.f32 %v4694_v13, %v5872_v31  ;;  %4016 = vmatmul.mubr.f32.gmra.mrb[52].mxu1 %v2096_v16  ;;  %v1758_v12 = vpop.f32.mrb[46].mxu0  ;;  %v6034_v29 = vsel %vm2501_vm6, %v2517_v2, %v2518_v44  ;;  %v6037_v56 = vsel %vm204_vm0, %v2679_v54, %v2680_v26  ;;  %v2374_v16 = vld [vmem:[#allocation4 + $0x110] sm:$0xff] }
 0x280   :  { %v1915_v15 = vmax.f32 %v1867_v14, 0.0  ;;  %v4695_v57 = vadd.f32 %v1758_v12, %v6353_v32  ;;  %v1760_v6 = vpop.f32.mrb[47].mxu0  ;;  %v1991_v10 = vld [vmem:[#allocation2 + $0x90] ss:$2 sm:$0xff]  ;;  %v2023_v36 = vld [vmem:[#allocation2 + $0x91] ss:$2 sm:$0xff] }
 0x281   :  { %1964 = vst [vmem:[#allocation2 + $0xa8] sm:$0xff] %v1940_v28  ;;  %v1916_v41 = vmax.f32 %v1868_v45, 0.0  ;;  %v4696_v3 = vadd.f32 %v1760_v6, %v6354_v33  ;;  %v6043_v42 = vmax.f32 %v1991_v10, %v2023_v36  ;;  %v2375_v28 = vld [vmem:[#allocation4 + $0x118] sm:$0xff]  ;;  %v2376_v32 = vld [vmem:[#allocation4 + $0x120] sm:$0xff]  ;;  %v2378_v10 = vld [vmem:[#allocation4 + $0x130] sm:$0xff] }
 0x282   :  { %v1869_v7 = vadd.f32 %v4695_v57, %v5870_v27  ;;  %v2377_v57 = vld [vmem:[#allocation4 + $0x128] sm:$0xff]  ;;  %v2379_v36 = vld [vmem:[#allocation4 + $0x138] sm:$0xff]  ;;  %v2380_v33 = vld [vmem:[#allocation4 + $0x140] sm:$0xff] }
 0x283   :  { %v1941_v52 = vmax.f32 %v1915_v15, %v1916_v41  ;;  %v1870_v17 = vadd.f32 %v4696_v3, %v5872_v31  ;;  %v2097_v43 = vrot.slane %v6043_v42, 1  ;;  %v2520_v9 = vrot.slane %v6043_v42, 3  ;;  %v2381_v3 = vld [vmem:[#allocation4 + $0x148] sm:$0xff] }
 0x284   :  { %v1917_v23 = vmax.f32 %v1869_v7, 0.0  ;;  %v1993_v60 = vld [vmem:[#allocation2 + $0xa0] ss:$2 sm:$0xf]  ;;  %v2682_v31 = vrot.slane %v6043_v42, 4  ;;  %v4461_v15 = vpack.c.bf16 %v2375_v28, %v2374_v16  ;;  %v4465_v6 = vpack.c.bf16 %v2377_v57, %v2376_v32 }
 0x285   :  { %1965 = vst [vmem:[#allocation2 + $0xb0] sm:$0xff] %v1941_v52  ;;  %v1918_v4 = vmax.f32 %v1870_v17, 0.0  ;;  %v2025_v0 = vld [vmem:[#allocation2 + $0xa1] ss:$2 sm:$0xf]  ;;  %v4469_v41 = vpack.c.bf16 %v2379_v36, %v2378_v10  ;;  %v2340_v7 = vrot.slane %v5903_v58, 2  ;;  %v4473_v52 = vpack.c.bf16 %v2381_v3, %v2380_v33 }
 0x286   :  { %v6045_v11 = vmax.f32 %v1993_v60, %v2025_v0  ;;  %v2382_v17 = vld [vmem:[#allocation4 + $0x150] sm:$0xff]  ;;  %v2385_v60 = vld [vmem:[#allocation4 + $0x168] sm:$0xff]  ;;  %v2357_v28 = vrot.slane %v6043_v42, 2  ;;  %v2543_v57 = vld [vmem:[#allocation4 + $0x1c0] sm:$0xff]  ;;  %v2503_v36 = vrot.slane %v5903_v58, 3 }
 0x287   :  { %v1942_v53 = vmax.f32 %v1917_v23, %v1918_v4  ;;  %v2386_v0 = vld [vmem:[#allocation4 + $0x170] sm:$0xff]  ;;  %v2547_v3 = vld [vmem:[#allocation4 + $0x1e0] sm:$0xff] }
 0x288   :  { %v2098_v48 = vrot.slane %v6045_v11, 1  ;;  %v2521_v27 = vrot.slane %v6045_v11, 3  ;;  %v2683_v21 = vrot.slane %v6045_v11, 4  ;;  %v2358_v16 = vrot.slane %v6045_v11, 2 }
 0x289   :  { %1966 = vst [vmem:[#allocation2 + $0xb8] sm:$0xff] %v1942_v53  ;;  %v2387_v53 = vld [vmem:[#allocation4 + $0x178] sm:$0xff] }
 0x28a   :  { %v2099_v63 = vsel %vm2078_vm4, %v2097_v43, %v2098_v48  ;;  %v6055_v38 = vsel %vm2501_vm6, %v2520_v9, %v2521_v27  ;;  %v6058_v24 = vsel %vm204_vm0, %v2682_v31, %v2683_v21  ;;  %v4485_v43 = vpack.c.bf16 %v2387_v53, %v2386_v0  ;;  %v2535_v9 = vld [vmem:[#allocation4 + $0x180] sm:$0xff]  ;;  %v2536_v48 = vld [vmem:[#allocation4 + $0x188] sm:$0xff]  ;;  %v2537_v21 = vld [vmem:[#allocation4 + $0x190] sm:$0xff] }
 0x28b   :  { %4018 = vmatprep.mubr.f32.mxu1 %v2099_v63  ;;  %v4489_v27 = vpack.c.bf16 %v2536_v48, %v2535_v9  ;;  %v2343_v31 = vrot.slane %v5922_v18, 2  ;;  %v2538_v63 = vld [vmem:[#allocation4 + $0x198] sm:$0xff]  ;;  %v2359_v10 = vsel %vm2338_vm5, %v2357_v28, %v2358_v16  ;;  %v2509_v0 = vrot.slane %v5942_v62, 3 }
 0x28c   :  { %v1995_v49 = vld [vmem:[#allocation2 + $0xa8] ss:$2 sm:$0xff]  ;;  %v2027_v2 = vld [vmem:[#allocation2 + $0xa9] ss:$2 sm:$0xff]  ;;  %v2505_v53 = vrot.slane %v5918_v59, 3  ;;  %v2712_v16 = vld [vmem:[#allocation4 + $0x278] sm:$0xff] }
 0x28d   :  { %v6060_v54 = vmax.f32 %v1995_v49, %v2027_v2  ;;  %v2346_v49 = vrot.slane %v5942_v62, 2  ;;  %v2342_v2 = vrot.slane %v5918_v59, 2  ;;  %v2671_v28 = vrot.slane %v5942_v62, 4 }
 0x28f   :  { %v2100_v25 = vrot.slane %v6060_v54, 1  ;;  %v2523_v55 = vrot.slane %v6060_v54, 3  ;;  %v2685_v44 = vrot.slane %v6060_v54, 4 }
 0x290   :  { %v1997_v20 = vld [vmem:[#allocation2 + $0xb8] ss:$2 sm:$0xf]  ;;  %v2029_v22 = vld [vmem:[#allocation2 + $0xb9] ss:$2 sm:$0xf] }
 0x291   :  { %v6062_v8 = vmax.f32 %v1997_v20, %v2029_v22  ;;  %v2345_v20 = vrot.slane %v5938_v19, 2  ;;  %v4493_v22 = vpack.c.bf16 %v2538_v63, %v2537_v21 }
 0x293   :  { %v2101_v39 = vrot.slane %v6062_v8, 1  ;;  %v2524_v13 = vrot.slane %v6062_v8, 3  ;;  %v2686_v26 = vrot.slane %v6062_v8, 4  ;;  %v2361_v32 = vrot.slane %v6062_v8, 2  ;;  %v2546_v8 = vld [vmem:[#allocation4 + $0x1d8] sm:$0xff] }
 0x295   :  { %v2102_v14 = vsel %vm2078_vm4, %v2100_v25, %v2101_v39  ;;  %v6072_v45 = vsel %vm2501_vm6, %v2523_v55, %v2524_v13  ;;  %v6075_v12 = vsel %vm204_vm0, %v2685_v44, %v2686_v26  ;;  %v2344_v25 = vsel %vm2338_vm5, %v2342_v2, %v2343_v31  ;;  %v2539_v55 = vld [vmem:[#allocation4 + $0x1a0] sm:$0xff]  ;;  %v2540_v39 = vld [vmem:[#allocation4 + $0x1a8] sm:$0xff]  ;;  %v2541_v26 = vld [vmem:[#allocation4 + $0x1b0] sm:$0xff] }
 0x296   :  { %4019 = vmatmul.mubr.f32.gmra.mrb[54].mxu1 %v2102_v14  ;;  %v2347_v13 = vsel %vm2338_vm5, %v2345_v20, %v2346_v49  ;;  %v4497_v44 = vpack.c.bf16 %v2540_v39, %v2539_v55  ;;  %v2542_v14 = vld [vmem:[#allocation4 + $0x1b8] sm:$0xff]  ;;  %v2702_v31 = vld [vmem:[#allocation4 + $0x228] sm:$0xff]  ;;  %v2703_v49 = vld [vmem:[#allocation4 + $0x230] sm:$0xff]  ;;  %v2665_v55 = vrot.slane %v5903_v58, 4  ;;  %v2664_v39 = vrot.slane %v5899_v1, 4 }
 0x297   :  { %4053 = vmatprep.mubr.f32.mxu1 %v5899_v1  ;;  %v2704_v2 = vld [vmem:[#allocation4 + $0x238] sm:$0xff] }
 0x298   :  { %v4533_v20 = vpack.c.bf16 %v2704_v2, %v2703_v49 }
 0x29a   :  { %4054 = vmatmul.mubr.f32.vlgmr.msra.gmra.mrb[48].mxu1 %v5918_v59 }
 0x29b   :  { %4460 = vmatpush3.bf16.msra.mxu1 %v5982_v37  ;;  %4056 = vmatprep.mubr.f32.mxu1 %v5938_v19  ;;  %v2339_v37 = vrot.slane %v5899_v1, 2 }
 0x29c   :  { %4462 = vmatprep.subr.bf16.mxu1 %v4461_v15 }
 0x29e   :  { %4057 = vmatmul.mubr.f32.gmra.mrb[50].mxu1 %v5955_v40  ;;  %v2383_v40 = vld [vmem:[#allocation4 + $0x158] sm:$0xff] }
 0x29f   :  { %4464 = vmatpush3.bf16.msra.mxu1 %v4461_v15  ;;  %4059 = vmatprep.mubr.f32.mxu1 %v5985_v34  ;;  %v2341_v34 = vsel %vm2338_vm5, %v2339_v37, %v2340_v7  ;;  %v4477_v23 = vpack.c.bf16 %v2383_v40, %v2382_v17  ;;  %v4501_v15 = vpack.c.bf16 %v2542_v14, %v2541_v26  ;;  %v2548_v7 = vld [vmem:[#allocation4 + $0x1e8] sm:$0xff]  ;;  %v2549_v37 = vld [vmem:[#allocation4 + $0x1f0] sm:$0xff]  ;;  %v2697_v40 = vld [vmem:[#allocation4 + $0x200] sm:$0xff] }
 0x2a0   :  { %4466 = vmatprep.subr.bf16.mxu1 %v4465_v6  ;;  %v2710_v14 = vld [vmem:[#allocation4 + $0x268] sm:$0xff] }
 0x2a2   :  { %4060 = vmatmul.mubr.f32.gmra.mrb[52].mxu1 %v6014_v47  ;;  %v2384_v47 = vld [vmem:[#allocation4 + $0x160] sm:$0xff] }
 0x2a3   :  { %4468 = vmatpush3.bf16.msra.mxu1 %v4465_v6  ;;  %4062 = vmatprep.mubr.f32.mxu1 %v6043_v42  ;;  %v4481_v4 = vpack.c.bf16 %v2385_v60, %v2384_v47  ;;  %v2544_v6 = vld [vmem:[#allocation4 + $0x1c8] sm:$0xff]  ;;  %v2506_v47 = vrot.slane %v5922_v18, 3  ;;  %v2699_v60 = vld [vmem:[#allocation4 + $0x210] sm:$0xff] }
 0x2a4   :  { %4470 = vmatprep.subr.bf16.mxu1 %v4469_v41  ;;  %v4505_v11 = vpack.c.bf16 %v2544_v6, %v2543_v57 }
 0x2a5   :  { %v2507_v48 = vsel %vm2501_vm6, %v2505_v53, %v2506_v47  ;;  %v2962_v53 = vld [vmem:[#allocation6 + $0x78] sm:$0xff] }
 0x2a6   :  { %4063 = vmatmul.mubr.f32.gmra.mrb[54].mxu1 %v6060_v54 }
 0x2a7   :  { %4472 = vmatpush3.bf16.msra.mxu1 %v4469_v41  ;;  %4097 = vmatprep.mubr.f32.mxu1 %v2341_v34  ;;  %v2545_v41 = vld [vmem:[#allocation4 + $0x1d0] sm:$0xff]  ;;  %v2698_v34 = vld [vmem:[#allocation4 + $0x208] sm:$0xff] }
 0x2a8   :  { %4474 = vmatprep.subr.bf16.mxu1 %v4473_v52 }
 0x2ab   :  { %4476 = vmatpush3.bf16.msra.mxu1 %v4473_v52  ;;  %v2550_v52 = vld [vmem:[#allocation4 + $0x1f8] sm:$0xff] }
 0x2ac   :  { %4478 = vmatprep.subr.bf16.mxu1 %v4477_v23  ;;  %v4517_v17 = vpack.c.bf16 %v2550_v52, %v2549_v37  ;;  %v2960_v37 = vld [vmem:[#allocation6 + $0x68] sm:$0xff]  ;;  %v6355_v52 = vmov 0.0  }
 0x2af   :  { %4480 = vmatpush3.bf16.msra.mxu1 %v4477_v23  ;;  %v4521_v23 = vpack.c.bf16 %v2698_v34, %v2697_v40 }
 0x2b0   :  { %4482 = vmatprep.subr.bf16.mxu1 %v4481_v4 }
 0x2b3   :  { %4484 = vmatpush3.bf16.msra.mxu1 %v4481_v4  ;;  %v2700_v4 = vld [vmem:[#allocation4 + $0x218] sm:$0xff] }
 0x2b4   :  { %4486 = vmatprep.subr.bf16.mxu1 %v4485_v43  ;;  %v4525_v9 = vpack.c.bf16 %v2700_v4, %v2699_v60 }
 0x2b7   :  { %4488 = vmatpush3.bf16.msra.mxu1 %v4485_v43  ;;  %v2508_v43 = vrot.slane %v5938_v19, 3 }
 0x2b8   :  { %4490 = vmatprep.subr.bf16.mxu1 %v4489_v27 }
 0x2b9   :  { %v2510_v21 = vsel %vm2501_vm6, %v2508_v43, %v2509_v0  ;;  %v2961_v0 = vld [vmem:[#allocation6 + $0x70] sm:$0xff] }
 0x2ba   :  { %4098 = vmatmul.mubr.f32.vlgmr.msra.gmra.mrb[48].mxu1 %v2344_v25  ;;  %v2706_v25 = vld [vmem:[#allocation4 + $0x248] sm:$0xff] }
 0x2bb   :  { %4100 = vmatprep.mubr.f32.mxu1 %v2347_v13  ;;  %4492 = vmatpush3.bf16.msra.mxu1 %v4489_v27  ;;  %v2701_v27 = vld [vmem:[#allocation4 + $0x220] sm:$0xff] }
 0x2bc   :  { %4494 = vmatprep.subr.bf16.mxu1 %v4493_v22  ;;  %v4529_v63 = vpack.c.bf16 %v2702_v31, %v2701_v27  ;;  %v4563_v31 = vpack.c.bf16 %v2962_v53, %v2961_v0 }
 0x2be   :  { %4101 = vmatmul.mubr.f32.gmra.mrb[50].mxu1 %v5971_v50  ;;  %v2360_v50 = vrot.slane %v6060_v54, 2  ;;  %v4513_v54 = vpack.c.bf16 %v2548_v7, %v2547_v3 }
 0x2bf   :  { %4103 = vmatprep.mubr.f32.mxu1 %v6002_v5  ;;  %4496 = vmatpush3.bf16.msra.mxu1 %v4493_v22  ;;  %v2502_v5 = vrot.slane %v5899_v1, 3  ;;  %v2705_v22 = vld [vmem:[#allocation4 + $0x240] sm:$0xff] }
 0x2c0   :  { %4498 = vmatprep.subr.bf16.mxu1 %v4497_v44  ;;  %v2362_v42 = vsel %vm2338_vm5, %v2360_v50, %v2361_v32  ;;  %v4537_v13 = vpack.c.bf16 %v2706_v25, %v2705_v22  ;;  %v2670_v32 = vrot.slane %v5938_v19, 4 }
 0x2c1   :  { %v2504_v33 = vsel %vm2501_vm6, %v2502_v5, %v2503_v36 }
 0x2c2   :  { %4104 = vmatmul.mubr.f32.gmra.mrb[52].mxu1 %v6030_v30  ;;  %v4509_v30 = vpack.c.bf16 %v2546_v8, %v2545_v41  ;;  %v2672_v6 = vsel %vm204_vm0, %v2670_v32, %v2671_v28  ;;  %v2957_v8 = vld [vmem:[#allocation6 + $0x50] sm:$0xff] }
 0x2c3   :  { %4106 = vmatprep.mubr.f32.mxu1 %v2359_v10  ;;  %4500 = vmatpush3.bf16.msra.mxu1 %v4497_v44  ;;  %v2707_v44 = vld [vmem:[#allocation4 + $0x250] sm:$0xff] }
 0x2c4   :  { %4502 = vmatprep.subr.bf16.mxu1 %v4501_v15 }
 0x2c6   :  { %4107 = vmatmul.mubr.f32.gmra.mrb[54].mxu1 %v2362_v42 }
 0x2c7   :  { %4504 = vmatpush3.bf16.msra.mxu1 %v4501_v15  ;;  %4141 = vmatprep.mubr.f32.mxu1 %v2504_v33  ;;  %v2667_v15 = vrot.slane %v5918_v59, 4  ;;  %v3779_v59 = vld [vmem:[%s6339_s4] ss:$0 sm:$0xff]  ;;  %v2958_v33 = vld [vmem:[#allocation6 + $0x58] sm:$0xff] }
 0x2c8   :  { %4506 = vmatprep.subr.bf16.mxu1 %v4505_v11  ;;  %v4557_v7 = vpack.c.bf16 %v2958_v33, %v2957_v8 }
 0x2cb   :  { %4508 = vmatpush3.bf16.msra.mxu1 %v4505_v11 }
 0x2cc   :  { %4510 = vmatprep.subr.bf16.mxu1 %v4509_v30 }
 0x2cf   :  { %4512 = vmatpush3.bf16.msra.mxu1 %v4509_v30 }
 0x2d0   :  { %4514 = vmatprep.subr.bf16.mxu1 %v4513_v54 }
 0x2d3   :  { %4516 = vmatpush3.bf16.msra.mxu1 %v4513_v54  ;;  %v2959_v54 = vld [vmem:[#allocation6 + $0x60] sm:$0xff] }
 0x2d4   :  { %4518 = vmatprep.subr.bf16.mxu1 %v4517_v17  ;;  %v4560_v47 = vpack.c.bf16 %v2960_v37, %v2959_v54 }
 0x2d7   :  { %4520 = vmatpush3.bf16.msra.mxu1 %v4517_v17 }
 0x2d8   :  { %4522 = vmatprep.subr.bf16.mxu1 %v4521_v23 }
 0x2da   :  { %4142 = vmatmul.mubr.f32.vlgmr.msra.gmra.mrb[48].mxu1 %v2507_v48 }
 0x2db   :  { %4144 = vmatprep.mubr.f32.mxu1 %v2510_v21  ;;  %4524 = vmatpush3.bf16.msra.mxu1 %v4521_v23 }
 0x2dc   :  { %4526 = vmatprep.subr.bf16.mxu1 %v4525_v9 }
 0x2de   :  { %4145 = vmatmul.mubr.f32.gmra.mrb[50].mxu1 %v5975_v51  ;;  %v2708_v51 = vld [vmem:[#allocation4 + $0x258] sm:$0xff] }
 0x2df   :  { %4147 = vmatprep.mubr.f32.mxu1 %v6006_v35  ;;  %4528 = vmatpush3.bf16.msra.mxu1 %v4525_v9  ;;  %v2666_v35 = vsel %vm204_vm0, %v2664_v39, %v2665_v55  ;;  %v4541_v26 = vpack.c.bf16 %v2708_v51, %v2707_v44 }
 0x2e0   :  { %4530 = vmatprep.subr.bf16.mxu1 %v4529_v63 }
 0x2e2   :  { %4148 = vmatmul.mubr.f32.gmra.mrb[52].mxu1 %v6034_v29  ;;  %v2709_v29 = vld [vmem:[#allocation4 + $0x260] sm:$0xff] }
 0x2e3   :  { %4150 = vmatprep.mubr.f32.mxu1 %v6055_v38  ;;  %4532 = vmatpush3.bf16.msra.mxu1 %v4529_v63  ;;  %v4545_v58 = vpack.c.bf16 %v2710_v14, %v2709_v29  ;;  %v2711_v38 = vld [vmem:[#allocation4 + $0x270] sm:$0xff] }
 0x2e4   :  { %4534 = vmatprep.subr.bf16.mxu1 %v4533_v20  ;;  %v4549_v1 = vpack.c.bf16 %v2712_v16, %v2711_v38 }
 0x2e6   :  { %4151 = vmatmul.mubr.f32.gmra.mrb[54].mxu1 %v6072_v45  ;;  %v2668_v45 = vrot.slane %v5922_v18, 4 }
 0x2e7   :  { %4536 = vmatpush3.bf16.msra.mxu1 %v4533_v20  ;;  %4185 = vmatprep.mubr.f32.mxu1 %v2666_v35 }
 0x2e8   :  { %4538 = vmatprep.subr.bf16.mxu1 %v4537_v13  ;;  %v2669_v57 = vsel %vm204_vm0, %v2667_v15, %v2668_v45 }
 0x2eb   :  { %4540 = vmatpush3.bf16.msra.mxu1 %v4537_v13 }
 0x2ec   :  { %4542 = vmatprep.subr.bf16.mxu1 %v4541_v26 }
 0x2ef   :  { %4544 = vmatpush3.bf16.msra.mxu1 %v4541_v26 }
 0x2f0   :  { %4546 = vmatprep.subr.bf16.mxu1 %v4545_v58 }
 0x2f3   :  { %4548 = vmatpush3.bf16.msra.mxu1 %v4545_v58 }
 0x2f4   :  { %4550 = vmatprep.subr.bf16.mxu1 %v4549_v1 }
 0x2f7   :  { %4552 = vmatpush3.bf16.msra.mxu1 %v4549_v1 }
 0x2fa   :  { %4186 = vmatmul.mubr.f32.vlgmr.msra.gmra.mrb[48].mxu1 %v2669_v57 }
 0x2fb   :  { %4188 = vmatprep.mubr.f32.mxu1 %v2672_v6 }
 0x2fe   :  { %4189 = vmatmul.mubr.f32.gmra.mrb[50].mxu1 %v5979_v61  ;;  %v4936_v61 = vmov 0.0|0.0  }
 0x2ff   :  { %4191 = vmatprep.mubr.f32.mxu1 %v6010_v46  ;;  %4553 = vmatprep.subr.bf16.mxu1 %v4936_v61  ;;  %v2955_v46 = vld [vmem:[#allocation6 + $0x40] sm:$0xff] }
 0x302   :  { %4192 = vmatmul.mubr.f32.gmra.mrb[52].mxu1 %v6037_v56  ;;  %v2956_v56 = vld [vmem:[#allocation6 + $0x48] sm:$0xff] }
 0x303   :  { %4194 = vmatprep.mubr.f32.mxu1 %v6058_v24 }
 0x306   :  { %4195 = vmatmul.mubr.f32.gmra.mrb[54].mxu1 %v6075_v12  ;;  %v4554_v12 = vpack.c.bf16 %v2956_v56, %v2955_v46 }
 0x307   :  { %4213 = vmatprep.mubr.msk.f32.mxu1 %vm4938_vm7, %v6355_v52 }
 0x308   :  { %4555 = vmatpush3.bf16.msra.mxu1 %v4554_v12 }
 0x309   :  { %4556 = vmatprep.subr.bf16.mxu1 %v4936_v61 }
 0x30c   :  { %4558 = vmatpush3.bf16.msra.mxu1 %v4557_v7 }
 0x30d   :  { %4559 = vmatprep.subr.bf16.mxu1 %v4936_v61 }
 0x310   :  { %4561 = vmatpush3.bf16.msra.mxu1 %v4560_v47 }
 0x311   :  { %4562 = vmatprep.subr.bf16.mxu1 %v4936_v61 }
 0x314   :  { %4564 = vmatpush3.bf16.msra.mxu1 %v4563_v31 }
 0x315   :  { %4565 = vmatprep.subr.bf16.mxu1 %v4936_v61 }
 0x3cd   :  { %v4187_v18 = vpop.f32.mrb[48].mxu1 }
 0x3ce   :  { %v2834_v19 = vadd.f32 %v4187_v18, %v3779_v59  ;;  %v2779_v62 = vpop.f32.mrb[49].mxu1 }
 0x3cf   :  { %v2833_v10 = vadd.f32 %v3779_v59, %v2779_v62 }
 0x3d0   :  { %v2842_v36 = vmax.f32 %v2834_v19, 0.0 }
 0x3d1   :  { %v2841_v50 = vmax.f32 %v2833_v10, 0.0  ;;  %v4190_v5 = vpop.f32.mrb[50].mxu1 }
 0x3d2   :  { %v2836_v11 = vadd.f32 %v4190_v5, %v3779_v59  ;;  %2859 = vrot.lane.b32.xlu0 %v2842_v36, %s4937_s24  ;;  %v2789_v24 = vpop.f32.mrb[51].mxu1 }
 0x3d3   :  { %v2835_v42 = vadd.f32 %v3779_v59, %v2789_v24  ;;  %2857 = vrot.lane.b32.xlu1 %v2841_v50, %s4937_s24 }
 0x3d4   :  { %v2844_v41 = vmax.f32 %v2836_v11, 0.0 }
 0x3d5   :  { %v2843_v30 = vmax.f32 %v2835_v42, 0.0  ;;  %v4193_v3 = vpop.f32.mrb[52].mxu1 }
 0x3d6   :  { %v2838_v17 = vadd.f32 %v4193_v3, %v3779_v59  ;;  %v2799_v40 = vpop.f32.mrb[53].mxu1 }
 0x3d7   :  { %v2837_v34 = vadd.f32 %v3779_v59, %v2799_v40  ;;  %2863 = vrot.lane.b32.xlu1 %v2844_v41, %s4937_s24  ;;  %2861 = vrot.lane.b32.xlu0 %v2843_v30, %s4937_s24 }
 0x3d8   :  { %v2846_v23 = vmax.f32 %v2838_v17, 0.0 }
 0x3d9   :  { %v2845_v60 = vmax.f32 %v2837_v34, 0.0  ;;  %v4196_v4 = vpop.f32.mrb[54].mxu1 }
 0x3da   :  { %v2840_v43 = vadd.f32 %v4196_v4, %v3779_v59  ;;  %v2809_v9 = vpop.f32.mrb[55].mxu1  ;;  %v2923_v4 = vld [vmem:[#allocation6 + $0x8] sm:$0xff] }
 0x3db   :  { %v2839_v48 = vadd.f32 %v3779_v59, %v2809_v9  ;;  %2867 = vrot.lane.b32.xlu1 %v2846_v23, %s4937_s24  ;;  %2865 = vrot.lane.b32.xlu0 %v2845_v60, %s4937_s24 }
 0x3dc   :  { %v2848_v27 = vmax.f32 %v2840_v43, 0.0 }
 0x3dd   :  { %v2847_v21 = vmax.f32 %v2839_v48, 0.0 }
 0x3df   :  { %2871 = vrot.lane.b32.xlu1 %v2848_v27, %s4937_s24  ;;  %2869 = vrot.lane.b32.xlu0 %v2847_v21, %s4937_s24 }
 0x444   :  { %v2860_v63 = vpop.permute.xlu0 %2859 }
 0x445   :  { %v2882_v49 = vmax.f32 %v2842_v36, %v2860_v63  ;;  %v2858_v2 = vpop.permute.xlu1 %2857 }
 0x446   :  { %v2881_v20 = vmax.f32 %v2841_v50, %v2858_v2 }
 0x447   :  { %2891 = vst.msk [vmem:[#allocation3 + $0x8] sm:$0xff] %vm2889_vm8, %v2882_v49 }
 0x448   :  { %2890 = vst.msk [vmem:[#allocation3] sm:$0xff] %vm2889_vm8, %v2881_v20 }
 0x449   :  { %v2864_v22 = vpop.permute.xlu1 %2863  ;;  %v2862_v25 = vpop.permute.xlu0 %2861 }
 0x44a   :  { %v2884_v55 = vmax.f32 %v2844_v41, %v2864_v22  ;;  %v2883_v39 = vmax.f32 %v2843_v30, %v2862_v25 }
 0x44c   :  { %2893 = vst.msk [vmem:[#allocation3 + $0x18] sm:$0xff] %vm2889_vm8, %v2884_v55  ;;  %2892 = vst.msk [vmem:[#allocation3 + $0x10] sm:$0xff] %vm2889_vm8, %v2883_v39  ;;  %v2924_v55 = vld [vmem:[#allocation6 + $0x10] sm:$0xff]  ;;  %v2925_v39 = vld [vmem:[#allocation6 + $0x18] sm:$0xff] }
 0x44d   :  { %v2868_v13 = vpop.permute.xlu1 %2867  ;;  %v2866_v44 = vpop.permute.xlu0 %2865 }
 0x44e   :  { %v2886_v51 = vmax.f32 %v2846_v23, %v2868_v13  ;;  %v2885_v35 = vmax.f32 %v2845_v60, %v2866_v44  ;;  %v2931_v26 = vld [vmem:[#allocation3 + $0xa] sm:$0x1]  ;;  %v2939_v29 = vld [vmem:[#allocation3 + $0xb] sm:$0x1]  ;;  %v2899_v41 = vld [vmem:[#allocation3 + $0x8] sm:$0x1] }
 0x44f   :  { %v2947_v14 = vmax.f32 %v2931_v26, %v2939_v29  ;;  %v2930_v58 = vld [vmem:[#allocation3 + $0x2] sm:$0x1]  ;;  %v2938_v38 = vld [vmem:[#allocation3 + $0x3] sm:$0x1]  ;;  %v2907_v8 = vld [vmem:[#allocation3 + $0x9] sm:$0x1] }
 0x450   :  { %2895 = vst.msk [vmem:[#allocation3 + $0x28] sm:$0xff] %vm2889_vm8, %v2886_v51  ;;  %2894 = vst.msk [vmem:[#allocation3 + $0x20] sm:$0xff] %vm2889_vm8, %v2885_v35  ;;  %v2946_v59 = vmax.f32 %v2930_v58, %v2938_v38  ;;  %v2922_v60 = vld [vmem:[#allocation6] sm:$0xff]  ;;  %v2915_v9 = vmax.f32 %v2899_v41, %v2907_v8  ;;  %v4569_v38 = vpack.c.bf16 %v2925_v39, %v2924_v55 }
 0x451   :  { %v2872_v16 = vpop.permute.xlu1 %2871  ;;  %v2870_v1 = vpop.permute.xlu0 %2869  ;;  %v2971_v15 = vrot.slane %v2947_v14, 7  ;;  %v2898_v53 = vld [vmem:[#allocation3] sm:$0x1]  ;;  %v2906_v43 = vld [vmem:[#allocation3 + $0x1] sm:$0x1]  ;;  %v4566_v2 = vpack.c.bf16 %v2923_v4, %v2922_v60 }
 0x452   :  { %v2888_v45 = vmax.f32 %v2848_v27, %v2872_v16  ;;  %v2887_v28 = vmax.f32 %v2847_v21, %v2870_v1  ;;  %v2914_v44 = vmax.f32 %v2898_v53, %v2906_v43  ;;  %v3072_v35 = vrot.slane %v2915_v9, 7  ;;  %v3185_v43 = vld [vmem:[#allocation6 + $0x90] sm:$0xff]  ;;  %v3186_v9 = vld [vmem:[#allocation6 + $0x98] sm:$0xff]  ;;  %v3187_v39 = vld [vmem:[#allocation6 + $0xa0] sm:$0xff] }
 0x453   :  { %v2932_v32 = vld [vmem:[#allocation3 + $0x12] sm:$0x1]  ;;  %v2933_v57 = vld [vmem:[#allocation3 + $0x1a] sm:$0x1]  ;;  %v2940_v6 = vld [vmem:[#allocation3 + $0x13] sm:$0x1]  ;;  %v2973_v46 = vsel %vm2972_vm9, %v2971_v15, %v2946_v59 }
 0x454   :  { %2897 = vst.msk [vmem:[#allocation3 + $0x38] sm:$0xff] %vm2889_vm8, %v2888_v45  ;;  %2896 = vst.msk [vmem:[#allocation3 + $0x30] sm:$0xff] %vm2889_vm8, %v2887_v28  ;;  %v2941_v18 = vld [vmem:[#allocation3 + $0x1b] sm:$0x1]  ;;  %v2948_v19 = vmax.f32 %v2932_v32, %v2940_v6  ;;  %v2900_v30 = vld [vmem:[#allocation3 + $0x10] sm:$0x1]  ;;  %v3073_v32 = vsel %vm2972_vm9, %v3072_v35, %v2914_v44 }
 0x455   :  { %v2949_v62 = vmax.f32 %v2933_v57, %v2941_v18  ;;  %v2908_v3 = vld [vmem:[#allocation3 + $0x11] sm:$0x1]  ;;  %v2901_v27 = vld [vmem:[#allocation3 + $0x18] sm:$0x1]  ;;  %v2909_v31 = vld [vmem:[#allocation3 + $0x19] sm:$0x1] }
 0x456   :  { %v2974_v10 = vrot.slane %v2948_v19, 6  ;;  %v2916_v21 = vmax.f32 %v2900_v30, %v2908_v3  ;;  %v2917_v51 = vmax.f32 %v2901_v27, %v2909_v31  ;;  %v2926_v45 = vld [vmem:[#allocation6 + $0x20] sm:$0xff]  ;;  %v2927_v28 = vld [vmem:[#allocation6 + $0x28] sm:$0xff]  ;;  %v3160_v8 = vld [vmem:[#allocation3 + $0x14] sm:$0x1] }
 0x457   :  { %v2934_v36 = vld [vmem:[#allocation3 + $0x22] sm:$0x1]  ;;  %v2935_v50 = vld [vmem:[#allocation3 + $0x2a] sm:$0x1]  ;;  %v2942_v5 = vld [vmem:[#allocation3 + $0x23] sm:$0x1] }
 0x458   :  { %v2943_v56 = vld [vmem:[#allocation3 + $0x2b] sm:$0x1]  ;;  %v2950_v11 = vmax.f32 %v2934_v36, %v2942_v5  ;;  %v2976_v24 = vsel %vm2975_vm10, %v2974_v10, %v2973_v46  ;;  %v2977_v12 = vrot.slane %v2949_v62, 5  ;;  %v2902_v20 = vld [vmem:[#allocation3 + $0x20] sm:$0x1]  ;;  %v3074_v58 = vrot.slane %v2916_v21, 6 }
 0x459   :  { %v2951_v42 = vmax.f32 %v2935_v50, %v2943_v56  ;;  %v2910_v22 = vld [vmem:[#allocation3 + $0x21] sm:$0x1]  ;;  %v2903_v26 = vld [vmem:[#allocation3 + $0x28] sm:$0x1]  ;;  %v2911_v29 = vld [vmem:[#allocation3 + $0x29] sm:$0x1]  ;;  %v4572_v10 = vpack.c.bf16 %v2927_v28, %v2926_v45 }
 0x45a   :  { %v2980_v33 = vrot.slane %v2950_v11, 4  ;;  %v2979_v17 = vsel %vm2978_vm11, %v2977_v12, %v2976_v24  ;;  %v2918_v14 = vmax.f32 %v2902_v20, %v2910_v22  ;;  %v2919_v15 = vmax.f32 %v2903_v26, %v2911_v29  ;;  %v2928_v36 = vld [vmem:[#allocation6 + $0x30] sm:$0xff]  ;;  %v2929_v50 = vld [vmem:[#allocation6 + $0x38] sm:$0xff]  ;;  %v3159_v12 = vld [vmem:[#allocation3 + $0xc] sm:$0x1] }
 0x45b   :  { %v2936_v7 = vld [vmem:[#allocation3 + $0x32] sm:$0x1]  ;;  %v2937_v54 = vld [vmem:[#allocation3 + $0x3a] sm:$0x1]  ;;  %v2944_v37 = vld [vmem:[#allocation3 + $0x33] sm:$0x1]  ;;  %v3075_v19 = vsel %vm2975_vm10, %v3074_v58, %v3073_v32  ;;  %v4575_v41 = vpack.c.bf16 %v2929_v50, %v2928_v36  ;;  %v4581_v22 = vpack.c.bf16 %v3186_v9, %v3185_v43 }
 0x45c   :  { %v2945_v40 = vld [vmem:[#allocation3 + $0x3b] sm:$0x1]  ;;  %v2952_v34 = vmax.f32 %v2936_v7, %v2944_v37  ;;  %v2982_v23 = vsel %vm2981_vm12, %v2980_v33, %v2979_v17  ;;  %v2983_v47 = vrot.slane %v2951_v42, 3  ;;  %v2904_v16 = vld [vmem:[#allocation3 + $0x30] sm:$0x1]  ;;  %v3076_v57 = vrot.slane %v2917_v51, 5 }
 0x45d   :  { %v2953_v0 = vmax.f32 %v2937_v54, %v2945_v40  ;;  %v2912_v1 = vld [vmem:[#allocation3 + $0x31] sm:$0x1]  ;;  %v2905_v6 = vld [vmem:[#allocation3 + $0x38] sm:$0x1]  ;;  %v2913_v59 = vld [vmem:[#allocation3 + $0x39] sm:$0x1] }
 0x45e   :  { %v2986_v48 = vrot.slane %v2952_v34, 2  ;;  %v2985_v63 = vsel %vm2984_vm13, %v2983_v47, %v2982_v23  ;;  %v2920_v18 = vmax.f32 %v2904_v16, %v2912_v1  ;;  %v3078_v62 = vrot.slane %v2918_v14, 4  ;;  %v3167_v42 = vld [vmem:[#allocation3 + $0xd] sm:$0x1]  ;;  %v3168_v33 = vld [vmem:[#allocation3 + $0x15] sm:$0x1] }
 0x45f   :  { %v2989_v49 = vrot.slane %v2953_v0, 1  ;;  %v2921_v5 = vmax.f32 %v2905_v6, %v2913_v59  ;;  %v3077_v46 = vsel %vm2978_vm11, %v3076_v57, %v3075_v19  ;;  %v3080_v56 = vrot.slane %v2919_v15, 3  ;;  %v3183_v30 = vld [vmem:[#allocation6 + $0x80] sm:$0xff]  ;;  %v3184_v3 = vld [vmem:[#allocation6 + $0x88] sm:$0xff]  ;;  %v3161_v34 = vld [vmem:[#allocation3 + $0x1c] sm:$0x1] }
 0x460   :  { %v2988_v25 = vsel %vm2987_vm14, %v2986_v48, %v2985_v63  ;;  %v3079_v11 = vsel %vm2981_vm12, %v3078_v62, %v3077_v46  ;;  %v3082_v24 = vrot.slane %v2920_v18, 2  ;;  %v3158_v37 = vld [vmem:[#allocation3 + $0x4] sm:$0x1]  ;;  %v3175_v17 = vmax.f32 %v3159_v12, %v3167_v42  ;;  %v3166_v23 = vld [vmem:[#allocation3 + $0x5] sm:$0x1]  ;;  %v3189_v1 = vld [vmem:[#allocation6 + $0xb0] sm:$0xff] }
 0x461   :  { %v2991_v13 = vsel %vm2990_vm15, %v2989_v49, %v2988_v25  ;;  %v3081_v7 = vsel %vm2984_vm13, %v3080_v56, %v3079_v11  ;;  %v3084_v54 = vrot.slane %v2921_v5, 1  ;;  %v3169_v47 = vld [vmem:[#allocation3 + $0x1d] sm:$0x1]  ;;  %v3176_v60 = vmax.f32 %v3160_v8, %v3168_v33  ;;  %v3162_v0 = vld [vmem:[#allocation3 + $0x24] sm:$0x1]  ;;  %v3312_v50 = vld [vmem:[#allocation6 + $0xc8] sm:$0xff] }
 0x462   :  { %4214 = vmatmul.mubr.msk.f32.vlgmr.msra.gmra.mrb[56].mxu1 %vm2889_vm8, %v2991_v13  ;;  %v3083_v40 = vsel %vm2987_vm14, %v3082_v24, %v3081_v7  ;;  %v4578_v4 = vpack.c.bf16 %v3184_v3, %v3183_v30  ;;  %v3170_v53 = vld [vmem:[#allocation3 + $0x25] sm:$0x1]  ;;  %v3174_v27 = vmax.f32 %v3158_v37, %v3166_v23  ;;  %v3177_v31 = vmax.f32 %v3161_v34, %v3169_v47  ;;  %v3163_v63 = vld [vmem:[#allocation3 + $0x2c] sm:$0x1]  ;;  %v3171_v49 = vld [vmem:[#allocation3 + $0x2d] sm:$0x1] }
 0x463   :  { %4567 = vmatpush3.bf16.msra.mxu1 %v4566_v2  ;;  %4232 = vmatprep.mubr.msk.f32.mxu1 %vm4938_vm7, %v6355_v52  ;;  %v3085_v48 = vsel %vm2990_vm15, %v3084_v54, %v3083_v40  ;;  %v3199_v21 = vrot.slane %v3175_v17, 7  ;;  %v3178_v2 = vmax.f32 %v3162_v0, %v3170_v53  ;;  %v3201_v20 = vrot.slane %v3176_v60, 6  ;;  %v3164_v25 = vld [vmem:[#allocation3 + $0x34] sm:$0x1]  ;;  %v3172_v55 = vld [vmem:[#allocation3 + $0x35] sm:$0x1] }
 0x464   :  { %4568 = vmatprep.subr.bf16.mxu1 %v4936_v61  ;;  %v3188_v13 = vld [vmem:[#allocation6 + $0xa8] sm:$0xff]  ;;  %v3179_v44 = vmax.f32 %v3163_v63, %v3171_v49  ;;  %v3203_v35 = vrot.slane %v3177_v31, 5  ;;  %v3165_v26 = vld [vmem:[#allocation3 + $0x3c] sm:$0x1]  ;;  %v3173_v29 = vld [vmem:[#allocation3 + $0x3d] sm:$0x1]  ;;  %v3180_v14 = vmax.f32 %v3164_v25, %v3172_v55 }
 0x465   :  { %v3200_v51 = vsel %vm2972_vm9, %v3199_v21, %v3174_v27  ;;  %v4584_v16 = vpack.c.bf16 %v3188_v13, %v3187_v39  ;;  %v3190_v45 = vld [vmem:[#allocation6 + $0xb8] sm:$0xff]  ;;  %v3181_v28 = vmax.f32 %v3165_v26, %v3173_v29  ;;  %v3287_v59 = vld [vmem:[#allocation3 + $0xe] sm:$0x1]  ;;  %v3295_v18 = vld [vmem:[#allocation3 + $0xf] sm:$0x1] }
 0x466   :  { %v3202_v58 = vsel %vm2975_vm10, %v3201_v20, %v3200_v51  ;;  %v3207_v32 = vrot.slane %v3179_v44, 3  ;;  %v3209_v6 = vrot.slane %v3180_v14, 2  ;;  %v4587_v19 = vpack.c.bf16 %v3190_v45, %v3189_v1  ;;  %v3288_v62 = vld [vmem:[#allocation3 + $0x16] sm:$0x1]  ;;  %v3311_v36 = vld [vmem:[#allocation6 + $0xc0] sm:$0xff]  ;;  %v3314_v54 = vld [vmem:[#allocation6 + $0xd8] sm:$0xff] }
 0x467   :  { %4570 = vmatpush3.bf16.msra.mxu1 %v4569_v38  ;;  %v3205_v38 = vrot.slane %v3178_v2, 4  ;;  %v3204_v15 = vsel %vm2978_vm11, %v3203_v35, %v3202_v58  ;;  %v3211_v46 = vrot.slane %v3181_v28, 1  ;;  %v3286_v56 = vld [vmem:[#allocation3 + $0x6] sm:$0x1]  ;;  %v3303_v11 = vmax.f32 %v3287_v59, %v3295_v18  ;;  %v3289_v12 = vld [vmem:[#allocation3 + $0x1e] sm:$0x1] }
 0x468   :  { %4571 = vmatprep.subr.bf16.mxu1 %v4936_v61  ;;  %v3294_v42 = vld [vmem:[#allocation3 + $0x7] sm:$0x1]  ;;  %v4590_v33 = vpack.c.bf16 %v3312_v50, %v3311_v36  ;;  %v3290_v30 = vld [vmem:[#allocation3 + $0x26] sm:$0x1]  ;;  %v3313_v7 = vld [vmem:[#allocation6 + $0xd0] sm:$0xff] }
 0x469   :  { %v3206_v57 = vsel %vm2981_vm12, %v3205_v38, %v3204_v15  ;;  %v3298_v3 = vld [vmem:[#allocation3 + $0x27] sm:$0x1]  ;;  %v3302_v17 = vmax.f32 %v3286_v56, %v3294_v42  ;;  %v3327_v34 = vrot.slane %v3303_v11, 7  ;;  %v3291_v23 = vld [vmem:[#allocation3 + $0x2e] sm:$0x1]  ;;  %v4593_v0 = vpack.c.bf16 %v3314_v54, %v3313_v7  ;;  %v3317_v55 = vld [vmem:[#allocation6 + $0xf0] sm:$0xff] }
 0x46a   :  { %v3208_v5 = vsel %vm2984_vm13, %v3207_v32, %v3206_v57  ;;  %v3299_v47 = vld [vmem:[#allocation3 + $0x2f] sm:$0x1]  ;;  %v3306_v60 = vmax.f32 %v3290_v30, %v3298_v3  ;;  %v3292_v53 = vld [vmem:[#allocation3 + $0x36] sm:$0x1]  ;;  %v3300_v43 = vld [vmem:[#allocation3 + $0x37] sm:$0x1] }
 0x46b   :  { %4573 = vmatpush3.bf16.msra.mxu1 %v4572_v10  ;;  %v3296_v10 = vld [vmem:[#allocation3 + $0x17] sm:$0x1]  ;;  %v3210_v24 = vsel %vm2987_vm14, %v3209_v6, %v3208_v5  ;;  %v3315_v9 = vld [vmem:[#allocation6 + $0xe0] sm:$0xff]  ;;  %v3307_v27 = vmax.f32 %v3291_v23, %v3299_v47  ;;  %v3328_v31 = vsel %vm2972_vm9, %v3327_v34, %v3302_v17  ;;  %v3293_v63 = vld [vmem:[#allocation3 + $0x3e] sm:$0x1]  ;;  %v3308_v2 = vmax.f32 %v3292_v53, %v3300_v43 }
 0x46c   :  { %4574 = vmatprep.subr.bf16.mxu1 %v4936_v61  ;;  %v3304_v8 = vmax.f32 %v3288_v62, %v3296_v10  ;;  %v3212_v37 = vsel %vm2990_vm15, %v3211_v46, %v3210_v24  ;;  %v3301_v49 = vld [vmem:[#allocation3 + $0x3f] sm:$0x1]  ;;  %v3423_v1 = vld [vmem:[%s6342_s7] sm:$0xff]  ;;  %v3424_v45 = vld [vmem:[%s6342_s7 + $0x8] sm:$0xff] }
 0x46d   :  { %v3318_v39 = vld [vmem:[#allocation6 + $0xf8] sm:$0xff]  ;;  %v3309_v13 = vmax.f32 %v3293_v63, %v3301_v49  ;;  %v3335_v51 = vrot.slane %v3307_v27, 3  ;;  %v3337_v26 = vrot.slane %v3308_v2, 2  ;;  %v3425_v28 = vld [vmem:[%s6342_s7 + $0x10] sm:$0xff]  ;;  %v4602_v15 = vpack.c.bf16 %v3424_v45, %v3423_v1  ;;  %v3427_v6 = vld [vmem:[%s6342_s7 + $0x20] sm:$0xff] }
 0x46e   :  { %v4599_v29 = vpack.c.bf16 %v3318_v39, %v3317_v55  ;;  %v3426_v32 = vld [vmem:[%s6342_s7 + $0x18] sm:$0xff]  ;;  %v3428_v59 = vld [vmem:[%s6342_s7 + $0x28] sm:$0xff]  ;;  %v3429_v18 = vld [vmem:[%s6342_s7 + $0x30] sm:$0xff] }
 0x46f   :  { %4576 = vmatpush3.bf16.msra.mxu1 %v4575_v41  ;;  %v3297_v41 = vld [vmem:[#allocation3 + $0x1f] sm:$0x1]  ;;  %v3339_v58 = vrot.slane %v3309_v13, 1  ;;  %v4605_v57 = vpack.c.bf16 %v3426_v32, %v3425_v28  ;;  %v3431_v36 = vld [vmem:[%s6342_s7 + $0x40] sm:$0xff]  ;;  %v3432_v50 = vld [vmem:[%s6342_s7 + $0x48] sm:$0xff] }
 0x470   :  { %4577 = vmatprep.subr.bf16.mxu1 %v4936_v61  ;;  %v3305_v40 = vmax.f32 %v3289_v12, %v3297_v41  ;;  %v3430_v62 = vld [vmem:[%s6342_s7 + $0x38] sm:$0xff]  ;;  %v4614_v5 = vpack.c.bf16 %v3432_v50, %v3431_v36  ;;  %v3433_v46 = vld [vmem:[%s6342_s7 + $0x50] sm:$0xff]  ;;  %v3435_v24 = vld [vmem:[%s6342_s7 + $0x60] sm:$0xff] }
 0x471   :  { %v4611_v10 = vpack.c.bf16 %v3430_v62, %v3429_v18  ;;  %v3434_v56 = vld [vmem:[%s6342_s7 + $0x58] sm:$0xff]  ;;  %v3436_v12 = vld [vmem:[%s6342_s7 + $0x68] sm:$0xff]  ;;  %v3437_v42 = vld [vmem:[%s6342_s7 + $0x70] sm:$0xff] }
 0x472   :  { %4233 = vmatmul.mubr.msk.f32.vlgmr.msra.gmra.mrb[58].mxu1 %vm2889_vm8, %v3085_v48  ;;  %v3316_v48 = vld [vmem:[#allocation6 + $0xe8] sm:$0xff]  ;;  %v3331_v21 = vrot.slane %v3305_v40, 5  ;;  %v4617_v11 = vpack.c.bf16 %v3434_v56, %v3433_v46  ;;  %v4620_v41 = vpack.c.bf16 %v3436_v12, %v3435_v24  ;;  %v3784_v47 = vld [vmem:[%s6341_s6] ss:$0 sm:$0xff]  ;;  %v3519_v27 = vld [vmem:[%s6344_s9 + $0x10] sm:$0xff] }
 0x473   :  { %4579 = vmatpush3.bf16.msra.mxu1 %v4578_v4  ;;  %4251 = vmatprep.mubr.msk.f32.mxu1 %vm4938_vm7, %v6355_v52  ;;  %v3329_v4 = vrot.slane %v3304_v8, 6  ;;  %v4596_v25 = vpack.c.bf16 %v3316_v48, %v3315_v9  ;;  %v3438_v8 = vld [vmem:[%s6342_s7 + $0x78] sm:$0xff]  ;;  %v3518_v53 = vld [vmem:[%s6344_s9 + $0x8] sm:$0xff]  ;;  %v3521_v63 = vld [vmem:[%s6344_s9 + $0x20] sm:$0xff] }
 0x474   :  { %4580 = vmatprep.subr.bf16.mxu1 %v4936_v61  ;;  %v3522_v49 = vld [vmem:[%s6344_s9 + $0x28] sm:$0xff]  ;;  %v3527_v13 = vld [vmem:[%s6344_s9 + $0x50] sm:$0xff] }
 0x475   :  { %v3330_v20 = vsel %vm2975_vm10, %v3329_v4, %v3328_v31  ;;  %v3520_v31 = vld [vmem:[%s6344_s9 + $0x18] sm:$0xff]  ;;  %v4632_v2 = vpack.c.bf16 %v3522_v49, %v3521_v63  ;;  %v3526_v55 = vld [vmem:[%s6344_s9 + $0x48] sm:$0xff] }
 0x476   :  { %v3332_v44 = vsel %vm2978_vm11, %v3331_v21, %v3330_v20  ;;  %v4629_v21 = vpack.c.bf16 %v3520_v31, %v3519_v27  ;;  %v3523_v20 = vld [vmem:[%s6344_s9 + $0x30] sm:$0xff] }
 0x477   :  { %4582 = vmatpush3.bf16.msra.mxu1 %v4581_v22  ;;  %v3333_v22 = vrot.slane %v3306_v60, 4 }
 0x478   :  { %4583 = vmatprep.subr.bf16.mxu1 %v4936_v61 }
 0x479   :  { %v3334_v35 = vsel %vm2981_vm12, %v3333_v22, %v3332_v44  ;;  %v3528_v44 = vld [vmem:[%s6344_s9 + $0x58] sm:$0xff] }
 0x47a   :  { %v3336_v14 = vsel %vm2984_vm13, %v3335_v51, %v3334_v35  ;;  %v4641_v51 = vpack.c.bf16 %v3528_v44, %v3527_v13  ;;  %v3529_v35 = vld [vmem:[%s6344_s9 + $0x60] sm:$0xff] }
 0x47b   :  { %4585 = vmatpush3.bf16.msra.mxu1 %v4584_v16  ;;  %v3338_v38 = vsel %vm2987_vm14, %v3337_v26, %v3336_v14  ;;  %v3530_v26 = vld [vmem:[%s6344_s9 + $0x68] sm:$0xff]  ;;  %v3531_v14 = vld [vmem:[%s6344_s9 + $0x70] sm:$0xff] }
 0x47c   :  { %4586 = vmatprep.subr.bf16.mxu1 %v4936_v61  ;;  %v3340_v16 = vsel %vm2990_vm15, %v3339_v58, %v3338_v38  ;;  %v3532_v58 = vld [vmem:[%s6344_s9 + $0x78] sm:$0xff] }
 0x47d   :  { %v4647_v38 = vpack.c.bf16 %v3532_v58, %v3531_v14 }
 0x47f   :  { %4588 = vmatpush3.bf16.msra.mxu1 %v4587_v19  ;;  %v4608_v19 = vpack.c.bf16 %v3428_v59, %v3427_v6 }
 0x480   :  { %4589 = vmatprep.subr.bf16.mxu1 %v4936_v61 }
 0x482   :  { %4252 = vmatmul.mubr.msk.f32.vlgmr.msra.gmra.mrb[60].mxu1 %vm2889_vm8, %v3212_v37 }
 0x483   :  { %4591 = vmatpush3.bf16.msra.mxu1 %v4590_v33  ;;  %4270 = vmatprep.mubr.msk.f32.mxu1 %vm4938_vm7, %v6355_v52  ;;  %v4623_v33 = vpack.c.bf16 %v3438_v8, %v3437_v42 }
 0x484   :  { %4592 = vmatprep.subr.bf16.mxu1 %v4936_v61 }
 0x487   :  { %4594 = vmatpush3.bf16.msra.mxu1 %v4593_v0  ;;  %v3517_v0 = vld [vmem:[%s6344_s9] sm:$0xff] }
 0x488   :  { %4595 = vmatprep.subr.bf16.mxu1 %v4936_v61  ;;  %v4626_v9 = vpack.c.bf16 %v3518_v53, %v3517_v0 }
 0x48b   :  { %4597 = vmatpush3.bf16.msra.mxu1 %v4596_v25  ;;  %v3525_v25 = vld [vmem:[%s6344_s9 + $0x40] sm:$0xff] }
 0x48c   :  { %4598 = vmatprep.subr.bf16.mxu1 %v4936_v61  ;;  %v4638_v39 = vpack.c.bf16 %v3526_v55, %v3525_v25 }
 0x48f   :  { %4600 = vmatpush3.bf16.msra.mxu1 %v4599_v29  ;;  %v4644_v29 = vpack.c.bf16 %v3530_v26, %v3529_v35 }
 0x490   :  { %4601 = vmatprep.subr.bf16.mxu1 %v4936_v61 }
 0x492   :  { %4271 = vmatmul.mubr.msk.f32.vlgmr.msra.gmra.mrb[62].mxu1 %vm2889_vm8, %v3340_v16  ;;  %v3785_v16 = vld [vmem:[%s6343_s8] ss:$0 sm:$0xff] }
 0x493   :  { %4305 = vmatprep.mubr.msk.f32.mxu1 %vm4938_vm7, %v6355_v52  ;;  %4603 = vmatpush3.bf16.msra.mxu1 %v4602_v15 }
 0x494   :  { %4604 = vmatprep.subr.bf16.mxu1 %v4936_v61 }
 0x497   :  { %4606 = vmatpush3.bf16.msra.mxu1 %v4605_v57 }
 0x498   :  { %4607 = vmatprep.subr.bf16.mxu1 %v4936_v61 }
 0x49b   :  { %4609 = vmatpush3.bf16.msra.mxu1 %v4608_v19 }
 0x49c   :  { %4610 = vmatprep.subr.bf16.mxu1 %v4936_v61 }
 0x49f   :  { %4612 = vmatpush3.bf16.msra.mxu1 %v4611_v10 }
 0x4a0   :  { %4613 = vmatprep.subr.bf16.mxu1 %v4936_v61 }
 0x4a3   :  { %4615 = vmatpush3.bf16.msra.mxu1 %v4614_v5 }
 0x4a4   :  { %4616 = vmatprep.subr.bf16.mxu1 %v4936_v61 }
 0x4a7   :  { %4618 = vmatpush3.bf16.msra.mxu1 %v4617_v11 }
 0x4a8   :  { %4619 = vmatprep.subr.bf16.mxu1 %v4936_v61 }
 0x4ab   :  { %4621 = vmatpush3.bf16.msra.mxu1 %v4620_v41 }
 0x4ac   :  { %4622 = vmatprep.subr.bf16.mxu1 %v4936_v61 }
 0x4af   :  { %4624 = vmatpush3.bf16.msra.mxu1 %v4623_v33 }
 0x4b0   :  { %4625 = vmatprep.subr.bf16.mxu1 %v4936_v61 }
 0x535   :  { %v3060_v30 = vpop.f32.mrb[56].mxu1 }
 0x536   :  { %v4215_v3 = vpop.f32.mrb[57].mxu1 }
 0x545   :  { %v3154_v7 = vpop.f32.mrb[58].mxu1 }
 0x546   :  { %v3155_v54 = vadd.f32 %v3154_v7, %v3060_v30  ;;  %v4234_v37 = vpop.f32.mrb[59].mxu1 }
 0x555   :  { %v3281_v17 = vpop.f32.mrb[60].mxu1 }
 0x556   :  { %v3285_v40 = vadd.f32 %v3281_v17, %v3155_v54  ;;  %v4253_v34 = vpop.f32.mrb[61].mxu1 }
 0x565   :  { %v3409_v23 = vpop.f32.mrb[62].mxu1 }
 0x566   :  { %v3413_v60 = vadd.f32 %v3409_v23, %v3285_v40  ;;  %v4272_v4 = vpop.f32.mrb[63].mxu1 }
 0x568   :  { %v3421_v43 = vadd.f32 %v3784_v47, %v3413_v60 }
 0x56a   :  { %v3422_v48 = vmax.f32 %v3421_v43, 0.0 }
 0x56c   :  { %4306 = vmatmul.mubr.f32.vlgmr.msra.gmra.mrb[64].mxu1 %v3422_v48 }
 0x56d   :  { %4627 = vmatpush3.bf16.msra.mxu1 %v4626_v9  ;;  %4340 = vmatprep.mubr.msk.f32.mxu1 %vm4938_vm7, %v6355_v52  ;;  %v3524_v52 = vld [vmem:[%s6344_s9 + $0x38] sm:$0xff] }
 0x56e   :  { %4628 = vmatprep.subr.bf16.mxu1 %v4936_v61  ;;  %v4635_v22 = vpack.c.bf16 %v3524_v52, %v3523_v20 }
 0x571   :  { %4630 = vmatpush3.bf16.msra.mxu1 %v4629_v21 }
 0x572   :  { %4631 = vmatprep.subr.bf16.mxu1 %v4936_v61 }
 0x575   :  { %4633 = vmatpush3.bf16.msra.mxu1 %v4632_v2 }
 0x576   :  { %4634 = vmatprep.subr.bf16.mxu1 %v4936_v61 }
 0x579   :  { %4636 = vmatpush3.bf16.msra.mxu1 %v4635_v22 }
 0x57a   :  { %4637 = vmatprep.subr.bf16.mxu1 %v4936_v61 }
 0x57d   :  { %4639 = vmatpush3.bf16.msra.mxu1 %v4638_v39 }
 0x57e   :  { %4640 = vmatprep.subr.bf16.mxu1 %v4936_v61 }
 0x581   :  { %4642 = vmatpush3.bf16.msra.mxu1 %v4641_v51 }
 0x582   :  { %4643 = vmatprep.subr.bf16.mxu1 %v4936_v61 }
 0x585   :  { %4645 = vmatpush3.bf16.msra.mxu1 %v4644_v29 }
 0x586   :  { %4646 = vmatprep.subr.bf16.mxu1 %v4936_v61  ;;  %v3786_v61 = vld [vmem:[%s6345_s10] ss:$0 sm:$0xff] }
 0x589   :  { %4648 = vmatpush3.bf16.msra.mxu1 %v4647_v38 }
 0x63f   :  { %v3512_v1 = vpop.f32.mrb[64].mxu1 }
 0x640   :  { %v3513_v45 = vadd.f32 %v3785_v16, %v3512_v1  ;;  %v4307_v28 = vpop.f32.mrb[65].mxu1 }
 0x642   :  { %v3516_v15 = vmax.f32 %v3513_v45, 0.0 }
 0x644   :  { %4341 = vmatmul.mubr.f32.vlgmr.msra.gmra.mrb[66].mxu1 %v3516_v15 }
 0x717   :  { %v3606_v32 = vpop.f32.mrb[66].mxu1 }
 0x718   :  { %v3607_v57 = vadd.f32 %v3786_v61, %v3606_v32  ;;  %v4342_v6 = vpop.f32.mrb[67].mxu1 }
 0x71a   :  { %3610 = vst [vmem:[%s6346_s11] sm:$0xff] %v3607_v57 }
 0x71b   :  { %3615 = vsyncpa [#allocation5], 1 }
 0x71c   :  { %3616 = vsyncpa [#allocation7], 1 }

</bundles_post_ra>
